<compile_context>
chip_gen: v7x
topology: tpu7x:2x2x1
jax: 0.10.0
libtpu: 0.0.40
codegen_flags: <defaults>
</compile_context>

<pallas_src>
import math
import functools

import jax
import jax.numpy as jnp
from jax.experimental import pallas as pl
from jax.experimental.pallas import tpu as pltpu


# ---------------------------------------------------------------------------
# In-kernel helpers
# ---------------------------------------------------------------------------
def _split_heads(x2d, b, l, h, d):
    """(b*l, h*d) -> (b*h, l, d) via static lane slices + leading-dim stack/reshape."""
    parts = [x2d[:, i * d:(i + 1) * d].reshape(b, l, d) for i in range(h)]
    return jnp.stack(parts, axis=1).reshape(b * h, l, d)


def _merge_heads(x, b, l, h, d):
    """(b*h, l, d) -> (b*l, h*d): inverse of _split_heads."""
    x = x.reshape(b, h, l, d)
    parts = [x[:, i] for i in range(h)]
    return jnp.concatenate(parts, axis=-1).reshape(b * l, h * d)


def _mha(qh, kh, vh, dim_V):
    """softmax(Q K^T / sqrt(dim_V)) V per merged (batch, head) group.

    qh: (G, Lq, d), kh/vh: (G, Lk, d), all already in the MXU compute dtype.
    Returns f32 (G, Lq, d).  Softmax stays f32; normalisation uses the EUP approx
    reciprocal (separate issue slot -> nearly free).
    """
    scale = 1.0 / math.sqrt(dim_V)                         # matches torch: / sqrt(dim_V)
    s = jnp.einsum("bqd,bkd->bqk", qh, kh,
                   preferred_element_type=jnp.float32) * scale
    s = s - jnp.max(s, axis=-1, keepdims=True)             # stable softmax
    p = jnp.exp(s)
    p = p * pl.reciprocal(jnp.sum(p, axis=-1, keepdims=True), approx=True)
    return jnp.einsum("bqk,bkd->bqd", p.astype(vh.dtype), vh,
                      preferred_element_type=jnp.float32)


# ---------------------------------------------------------------------------
# Fused ISAB kernel.  Grid = (batch tiles [parallel], N tiles [arbitrary]).
# MAB0 + MAB1's K/V projections run once per batch tile (first N step) and are
# kept in VMEM scratch; each step then computes MAB1 for its (TB, TN) X tile.
# ---------------------------------------------------------------------------
def isab_kernel(xk_ref, xq_ref, i_ref,
                wq0, bq0, wk0, bk0, wv0, bv0, wo0, bo0,
                wq1, bq1, wk1, bk1, wv1, bv1, wo1, bo1,
                o_ref, k1_ref, v1_ref,
                *, num_heads, dim_V, compute_dtype):
    cd = compute_dtype
    TB, N, dim_in = xk_ref.shape
    TN = xq_ref.shape[1]
    num_inds = i_ref.shape[1]
    dim_pad = o_ref.shape[-1]
    H = num_heads
    d = dim_V // num_heads

    # ---------------- MAB0: H = MAB(I, X); only on the first N step ----------------
    @pl.when(pl.program_id(1) == 0)
    def _mab0():
        x2d = xk_ref[...].reshape(TB * N, dim_in)            # cd, (TB*N, dim_in)
        ind = i_ref[0]                                       # cd, (ni, dim_V)

        q0p = jnp.dot(ind, wq0[...], preferred_element_type=jnp.float32) + bq0[...]
        kp0 = (jnp.dot(x2d, wk0[...], preferred_element_type=jnp.float32)
               + bk0[...]).astype(cd)
        vp0 = (jnp.dot(x2d, wv0[...], preferred_element_type=jnp.float32)
               + bv0[...]).astype(cd)

        q0h = _split_heads(q0p, 1, num_inds, H, d)           # f32 (H, ni, d), batch-invariant
        k0h = _split_heads(kp0, TB, N, H, d)                 # cd  (TB*H, N, d)
        v0h = _split_heads(vp0, TB, N, H, d)

        # Only the tiny query block is broadcast over the batch tile, in the MXU dtype.
        q0b = jnp.broadcast_to(q0h.astype(cd)[None], (TB, H, num_inds, d))
        q0b = q0b.reshape(TB * H, num_inds, d)

        av0 = _mha(q0b, k0h, v0h, dim_V)                     # f32 (TB*H, ni, d)
        o0 = (av0.reshape(TB, H, num_inds, d) + q0h[None]).reshape(TB * H, num_inds, d)
        h2d = _merge_heads(o0, TB, num_inds, H, d)           # f32 (TB*ni, dim_V)

        fo0 = jnp.dot(h2d.astype(cd), wo0[...],
                      preferred_element_type=jnp.float32) + bo0[...]
        h_cd = (h2d + jnp.maximum(fo0, 0.0)).astype(cd)      # H = O + relu(fc_o(O)), hoisted cast

        # Pre-project MAB1 keys/values once; reused by every N tile of this batch tile.
        k1_ref[...] = (jnp.dot(h_cd, wk1[...],
                               preferred_element_type=jnp.float32) + bk1[...]).astype(cd)
        v1_ref[...] = (jnp.dot(h_cd, wv1[...],
                               preferred_element_type=jnp.float32) + bv1[...]).astype(cd)

    # ---------------- MAB1 on this (batch, N) tile: out = MAB(X_tile, H) ----------------
    xq2d = xq_ref[...].reshape(TB * TN, dim_in)              # cd
    qp1 = jnp.dot(xq2d, wq1[...], preferred_element_type=jnp.float32) + bq1[...]
    q1h = _split_heads(qp1, TB, TN, H, d)                    # f32 (TB*H, TN, d)
    k1h = _split_heads(k1_ref[...], TB, num_inds, H, d)      # cd
    v1h = _split_heads(v1_ref[...], TB, num_inds, H, d)

    av1 = _mha(q1h.astype(cd), k1h, v1h, dim_V)              # f32
    o2d = _merge_heads(av1 + q1h, TB, TN, H, d)              # f32 (TB*TN, dim_V)

    o2d_cd = o2d.astype(cd)                                  # hoisted cast
    fo1 = jnp.dot(o2d_cd, wo1[...], preferred_element_type=jnp.float32) + bo1[...]
    if dim_pad > dim_V:                                      # lane-padded fc_o -> dense store
        o2d = jnp.pad(o2d, ((0, 0), (0, dim_pad - dim_V)))
    out = o2d + jnp.maximum(fo1, 0.0)                        # O + relu(fc_o(O))
    o_ref[...] = out.reshape(TB, TN, dim_pad).astype(o_ref.dtype)


# ---------------------------------------------------------------------------
# Wrapper: chip config, VMEM-aware tile picking, pallas_call plumbing
# ---------------------------------------------------------------------------
def _round_up(x, m):
    return ((x + m - 1) // m) * m


def _chip_config(mxu_dtype=None):
    """Per-generation MXU dtype, scoped-VMEM limit, tile-picker budget and row cap."""
    try:
        kind = jax.devices()[0].device_kind.lower()
    except Exception:
        kind = ""
    if "v7" in kind or "7x" in kind:     # v7x: 64 MiB VMEM/TC, 2 TCs -> stay well under
        cfg = dict(mxu=jnp.bfloat16, vmem_limit=48 << 20, vmem_budget=36 << 20, max_rows=1024)
    elif "v6" in kind:                   # v6e: 128 MiB VMEM, 256-wide MXU -> bigger tiles
        cfg = dict(mxu=jnp.bfloat16, vmem_limit=96 << 20, vmem_budget=72 << 20, max_rows=2048)
    elif "v5" in kind:                   # v5e: bf16-native MXU, 128 MiB VMEM
        cfg = dict(mxu=jnp.bfloat16, vmem_limit=64 << 20, vmem_budget=48 << 20, max_rows=1024)
    elif "tpu" in kind:                  # older TPUs: bf16 MXU, conservative VMEM
        cfg = dict(mxu=jnp.bfloat16, vmem_limit=48 << 20, vmem_budget=32 << 20, max_rows=1024)
    else:                                # unknown backend: conservative / exact
        cfg = dict(mxu=jnp.float32, vmem_limit=32 << 20, vmem_budget=24 << 20, max_rows=512)
    if mxu_dtype is not None:
        cfg["mxu"] = mxu_dtype
    return cfg


def _pick_tiles(B, N, dim_in, dim_V, dim_pad, num_inds, num_heads,
                cd_bytes, vmem_budget, max_rows):
    """Largest (TB, TN) whose estimated VMEM working set fits the budget.

    Keeps >= 2 batch grid steps when B >= 2 (megacore sharding on v7x) and respects the
    (8,128) rule for the N tile (second-minor dim of the X / output blocks).
    """
    f32 = 4

    def est(tb, tn):
        rows0, rows1 = tb * N, tb * tn
        weights = ((3 * dim_in * dim_V + 4 * dim_V * dim_V + dim_V * dim_pad) * cd_bytes
                   + 8 * dim_pad * f32 + num_inds * dim_V * cd_bytes)
        io = (2 * rows0 * dim_in * cd_bytes       # X block for MAB0 K/V (double-buffered)
              + 2 * rows1 * dim_in * cd_bytes     # X tile for MAB1 queries
              + 2 * rows1 * dim_pad * f32)        # output tile
        scratch = 2 * tb * num_inds * dim_V * cd_bytes
        mab0 = (2 * rows0 * dim_V * (f32 + cd_bytes)              # kp0/vp0 + head splits
                + 2 * tb * num_heads * num_inds * N * f32         # scores / probs
                + 6 * tb * num_inds * dim_V * f32)                # q0 / AV / O / H temps
        mab1 = (6 * rows1 * dim_V * f32                           # qp1/q1/AV/O/fc_o temps
                + 2 * tb * num_heads * tn * num_inds * f32
                + rows1 * dim_pad * f32)
        return int(1.25 * (weights + io + scratch + max(mab0, mab1)))

    tb_cands = [t for t in range(1, B + 1) if B % t == 0]
    if B >= 2:                                   # keep the batch grid >= 2 steps
        tb_cands = [t for t in tb_cands if B // t >= 2] or [1]
    tn_cands = [t for t in range(1, N + 1) if N % t == 0 and (t % 8 == 0 or t == N)]

    best = None
    for tb in tb_cands:
        for tn in tn_cands:
            if tb * tn > max_rows:
                continue
            if est(tb, tn) > vmem_budget:
                continue
            key = (tb * tn, tn, tb)
            if best is None or key > best[0]:
                best = (key, tb, tn)
    if best is None:                             # nothing fits the estimate: go minimal
        return 1, min(tn_cands)
    return best[1], best[2]


def isab_forward(X, params, num_heads, *, batch_tile=None, n_tile=None, mxu_dtype=None):
    """Fused ISAB forward: MAB1(X, MAB0(I, X)) as one pallas_call."""
    B, N, dim_in = X.shape
    I = params["I"]
    _, num_inds, dim_V = I.shape
    assert dim_V % num_heads == 0

    cfg = _chip_config(mxu_dtype)
    cd = cfg["mxu"]
    cd_bytes = jnp.dtype(cd).itemsize

    # Lane-pad the final fc_o only when dim_V >= 128 and off-multiple: for small dim_V the
    # write amplification of padding to 128 outweighs the dense-store win.
    if dim_V >= 128 and dim_V % 128 != 0:
        dim_pad = _round_up(dim_V, 128)
    else:
        dim_pad = dim_V

    tb_auto, tn_auto = _pick_tiles(B, N, dim_in, dim_V, dim_pad, num_inds, num_heads,
                                   cd_bytes, cfg["vmem_budget"], cfg["max_rows"])
    TB = batch_tile if batch_tile is not None else tb_auto
    TN = n_tile if n_tile is not None else tn_auto
    assert B % TB == 0 and N % TN == 0, (TB, TN)
    assert TN == N or TN % 8 == 0, TN

    m0, m1 = params["mab0"], params["mab1"]
    wo1, bo1 = m1["wo"], m1["bo"]
    if dim_pad != dim_V:
        wo1 = jnp.pad(wo1, ((0, 0), (0, dim_pad - dim_V)))
        bo1 = jnp.pad(bo1, ((0, 0), (0, dim_pad - dim_V)))

    w = lambda a: a.astype(cd)                   # MXU operands in cd; biases stay f32
    weight_args = [
        w(m0["wq"]), m0["bq"], w(m0["wk"]), m0["bk"],
        w(m0["wv"]), m0["bv"], w(m0["wo"]), m0["bo"],
        w(m1["wq"]), m1["bq"], w(m1["wk"]), m1["bk"],
        w(m1["wv"]), m1["bv"], w(wo1), bo1,
    ]
    x_in = X.astype(cd)
    i_in = I.astype(cd)

    kernel = functools.partial(isab_kernel, num_heads=num_heads, dim_V=dim_V,
                               compute_dtype=cd)

    cost = None
    try:                                         # advisory scheduling hint only
        flops = 2 * B * (3 * N * dim_in * dim_V + 4 * num_inds * dim_V * dim_V
                         + 4 * N * num_inds * dim_V + N * dim_V * dim_pad)
        bytes_accessed = (2 * B * N * dim_in * cd_bytes
                          + B * N * dim_pad * X.dtype.itemsize
                          + int(I.size) * cd_bytes
                          + sum(int(a.size) * a.dtype.itemsize for a in weight_args))
        cost = pl.CostEstimate(flops=int(flops),
                               transcendentals=int(2 * B * num_heads * N * num_inds),
                               bytes_accessed=int(bytes_accessed))
    except Exception:
        cost = None

    def _resident(shape, single_buffer):
        zeros = (0,) * len(shape)
        idx = lambda b, n, _z=zeros: _z
        if single_buffer:                        # block index never changes -> 1 buffer
            return pl.BlockSpec(shape, idx, pipeline_mode=pl.Buffered(1))
        return pl.BlockSpec(shape, idx)

    def _run(single_buffer):
        in_specs = ([pl.BlockSpec((TB, N, dim_in), lambda b, n: (b, 0, 0)),    # MAB0 K/V
                     pl.BlockSpec((TB, TN, dim_in), lambda b, n: (b, n, 0)),   # MAB1 queries
                     _resident(i_in.shape, single_buffer)]                     # I (resident)
                    + [_resident(a.shape, single_buffer) for a in weight_args])
        return pl.pallas_call(
            kernel,
            out_shape=jax.ShapeDtypeStruct((B, N, dim_pad), X.dtype),
            grid=(B // TB, N // TN),
            in_specs=in_specs,
            out_specs=pl.BlockSpec((TB, TN, dim_pad), lambda b, n: (b, n, 0)),
            scratch_shapes=[pltpu.VMEM((TB * num_inds, dim_V), cd),    # MAB1 keys (proj of H)
                            pltpu.VMEM((TB * num_inds, dim_V), cd)],   # MAB1 values
            compiler_params=pltpu.CompilerParams(
                dimension_semantics=("parallel", "arbitrary"),
                vmem_limit_bytes=cfg["vmem_limit"]),
            cost_estimate=cost,
        )(x_in, x_in, i_in, *weight_args)

    try:
        out_full = _run(single_buffer=hasattr(pl, "Buffered"))
    except Exception:
        out_full = _run(single_buffer=False)     # graceful fallback to default buffering

    return out_full[..., :dim_V] if dim_pad != dim_V else out_full


# ---------------------------------------------------------------------------
# Deterministic parameter init (shapes follow the PyTorch module __init__).
# Linear weights are stored as (in, out) so both kernel and reference do x @ W + b.
# ---------------------------------------------------------------------------
def init_linear(key, din, dout):
    kw, kb = jax.random.split(key)
    bound = 1.0 / math.sqrt(din)
    w = jax.random.uniform(kw, (din, dout), jnp.float32, -bound, bound)
    b = jax.random.uniform(kb, (1, dout), jnp.float32, -bound, bound)
    return w, b


def init_mab(key, dim_Q, dim_K, dim_V):
    kq, kk, kv, ko = jax.random.split(key, 4)
    wq, bq = init_linear(kq, dim_Q, dim_V)
    wk, bk = init_linear(kk, dim_K, dim_V)
    wv, bv = init_linear(kv, dim_K, dim_V)
    wo, bo = init_linear(ko, dim_V, dim_V)
    return dict(wq=wq, bq=bq, wk=wk, bk=bk, wv=wv, bv=bv, wo=wo, bo=bo)


def init_isab(key, dim_in, dim_out, num_inds):
    ki, k0, k1 = jax.random.split(key, 3)
    bound = math.sqrt(6.0 / (num_inds + dim_out))     # xavier-style init for I
    I = jax.random.uniform(ki, (1, num_inds, dim_out), jnp.float32, -bound, bound)
    mab0 = init_mab(k0, dim_out, dim_in, dim_out)     # MAB(dim_out, dim_in, dim_out)
    mab1 = init_mab(k1, dim_in, dim_out, dim_out)     # MAB(dim_in, dim_out, dim_out)
    return dict(I=I, mab0=mab0, mab1=mab1)


# ---------------------------------------------------------------------------
# Pure-JAX reference (mirrors the PyTorch module, ln=False) for self-check.
# ---------------------------------------------------------------------------
def _mab_ref(Q, K, p, num_heads, dim_V):
    Qp = Q @ p["wq"] + p["bq"]
    Kp = K @ p["wk"] + p["bk"]
    Vp = K @ p["wv"] + p["bv"]
    split = lambda x: jnp.concatenate(jnp.split(x, num_heads, axis=2), axis=0)
    Q_, K_, V_ = split(Qp), split(Kp), split(Vp)
    A = jax.nn.softmax(Q_ @ jnp.swapaxes(K_, 1, 2) / math.sqrt(dim_V), axis=2)
    O = jnp.concatenate(jnp.split(Q_ + A @ V_, num_heads, axis=0), axis=2)
    return O + jax.nn.relu(O @ p["wo"] + p["bo"])


def isab_ref(X, params, num_heads):
    B = X.shape[0]
    dim_V = params["I"].shape[-1]
    I = jnp.broadcast_to(params["I"], (B,) + params["I"].shape[1:])
    H = _mab_ref(I, X, params["mab0"], num_heads, dim_V)
    return _mab_ref(X, H, params["mab1"], num_heads, dim_V)


# ---------------------------------------------------------------------------
if __name__ == "__main__":
    # Small shapes consistent with the module: X is (batch, set_size, dim_in).
    B, N, dim_in = 2, 16, 4
    dim_out, num_heads, num_inds = 32, 4, 8

    key = jax.random.PRNGKey(0)
    kx, kp = jax.random.split(key)
    X = jax.random.normal(kx, (B, N, dim_in), dtype=jnp.float32)
    params = init_isab(kp, dim_in, dim_out, num_inds)

    # Production path: chip-default MXU dtype (bf16 on any TPU generation).
    out = jax.block_until_ready(isab_forward(X, params, num_heads))
    assert out.shape == (B, N, dim_out), out.shape
    assert bool(jnp.all(jnp.isfinite(out)))

    ref = isab_ref(X, params, num_heads)

    # Tight check of the f32 MXU path (tolerance absorbs the approx-reciprocal softmax).
    out_f32 = jax.block_until_ready(
        isab_forward(X, params, num_heads, mxu_dtype=jnp.float32))
    assert bool(jnp.allclose(out_f32, ref, atol=2e-2, rtol=2e-2)), \
        float(jnp.max(jnp.abs(out_f32 - ref)))

    # Loose check of the bf16 MXU-operand path (f32 accumulation) against the reference.
    out_bf16 = jax.block_until_ready(
        isab_forward(X, params, num_heads, mxu_dtype=jnp.bfloat16))
    assert bool(jnp.allclose(out_bf16, ref, atol=1e-1, rtol=1e-1)), \
        float(jnp.max(jnp.abs(out_bf16 - ref)))

    print("KERNEL_OK")
</pallas_src>

<mosaic_0001>
module attributes {stable_mosaic.version = 11 : i64} {
  func.func @isab_kernel(%arg0: i32, %arg1: i32, %arg2: memref<1x16x4xf32, #tpu.memory_space<vmem>>, %arg3: memref<1x16x4xf32, #tpu.memory_space<vmem>>, %arg4: memref<1x8x32xf32, #tpu.memory_space<vmem>>, %arg5: memref<32x32xf32, #tpu.memory_space<vmem>>, %arg6: memref<1x32xf32, #tpu.memory_space<vmem>>, %arg7: memref<4x32xf32, #tpu.memory_space<vmem>>, %arg8: memref<1x32xf32, #tpu.memory_space<vmem>>, %arg9: memref<4x32xf32, #tpu.memory_space<vmem>>, %arg10: memref<1x32xf32, #tpu.memory_space<vmem>>, %arg11: memref<32x32xf32, #tpu.memory_space<vmem>>, %arg12: memref<1x32xf32, #tpu.memory_space<vmem>>, %arg13: memref<4x32xf32, #tpu.memory_space<vmem>>, %arg14: memref<1x32xf32, #tpu.memory_space<vmem>>, %arg15: memref<32x32xf32, #tpu.memory_space<vmem>>, %arg16: memref<1x32xf32, #tpu.memory_space<vmem>>, %arg17: memref<32x32xf32, #tpu.memory_space<vmem>>, %arg18: memref<1x32xf32, #tpu.memory_space<vmem>>, %arg19: memref<32x32xf32, #tpu.memory_space<vmem>>, %arg20: memref<1x32xf32, #tpu.memory_space<vmem>>, %arg21: memref<1x16x32xf32, #tpu.memory_space<vmem>>, %arg22: memref<8x32xf32, #tpu.memory_space<vmem>>, %arg23: memref<8x32xf32, #tpu.memory_space<vmem>>) attributes {dimension_semantics = [#tpu.dimension_semantics<parallel>, #tpu.dimension_semantics<arbitrary>], iteration_bounds = array<i64: 2, 1>, scalar_prefetch = 0 : i64, scratch_operands = 2 : i64, tpu.core_type = #tpu.core_type<tc>, window_params = [{transform_indices = @transform_0, window_bounds = array<i64: 1, 16, 4>}, {transform_indices = @transform_1, window_bounds = array<i64: 1, 16, 4>}, {pipeline_mode = #tpu.pipeline_mode<synchronous>, transform_indices = @transform_2, window_bounds = array<i64: 1, 8, 32>}, {pipeline_mode = #tpu.pipeline_mode<synchronous>, transform_indices = @transform_3, window_bounds = array<i64: 32, 32>}, {pipeline_mode = #tpu.pipeline_mode<synchronous>, transform_indices = @transform_4, window_bounds = array<i64: 1, 32>}, {pipeline_mode = #tpu.pipeline_mode<synchronous>, transform_indices = @transform_5, window_bounds = array<i64: 4, 32>}, {pipeline_mode = #tpu.pipeline_mode<synchronous>, transform_indices = @transform_6, window_bounds = array<i64: 1, 32>}, {pipeline_mode = #tpu.pipeline_mode<synchronous>, transform_indices = @transform_7, window_bounds = array<i64: 4, 32>}, {pipeline_mode = #tpu.pipeline_mode<synchronous>, transform_indices = @transform_8, window_bounds = array<i64: 1, 32>}, {pipeline_mode = #tpu.pipeline_mode<synchronous>, transform_indices = @transform_9, window_bounds = array<i64: 32, 32>}, {pipeline_mode = #tpu.pipeline_mode<synchronous>, transform_indices = @transform_10, window_bounds = array<i64: 1, 32>}, {pipeline_mode = #tpu.pipeline_mode<synchronous>, transform_indices = @transform_11, window_bounds = array<i64: 4, 32>}, {pipeline_mode = #tpu.pipeline_mode<synchronous>, transform_indices = @transform_12, window_bounds = array<i64: 1, 32>}, {pipeline_mode = #tpu.pipeline_mode<synchronous>, transform_indices = @transform_13, window_bounds = array<i64: 32, 32>}, {pipeline_mode = #tpu.pipeline_mode<synchronous>, transform_indices = @transform_14, window_bounds = array<i64: 1, 32>}, {pipeline_mode = #tpu.pipeline_mode<synchronous>, transform_indices = @transform_15, window_bounds = array<i64: 32, 32>}, {pipeline_mode = #tpu.pipeline_mode<synchronous>, transform_indices = @transform_16, window_bounds = array<i64: 1, 32>}, {pipeline_mode = #tpu.pipeline_mode<synchronous>, transform_indices = @transform_17, window_bounds = array<i64: 32, 32>}, {pipeline_mode = #tpu.pipeline_mode<synchronous>, transform_indices = @transform_18, window_bounds = array<i64: 1, 32>}, {transform_indices = @transform_19, window_bounds = array<i64: 1, 16, 32>}]} {
    %c0_i32 = arith.constant 0 : i32
    %0 = arith.cmpi eq, %arg1, %c0_i32 : i32
    %1 = arith.extui %0 : i1 to i32
    %c0_i32_0 = arith.constant 0 : i32
    %2 = arith.cmpi ne, %1, %c0_i32_0 : i32
    scf.if %2 {
      %c0_25 = arith.constant 0 : index
      %c0_26 = arith.constant 0 : index
      %c0_27 = arith.constant 0 : index
      %90 = vector.load %arg2[%c0_25, %c0_26, %c0_27] : memref<1x16x4xf32, #tpu.memory_space<vmem>>, vector<1x16x4xf32>
      %91 = vector.shape_cast %90 : vector<1x16x4xf32> to vector<16x4xf32>
      %c0_28 = arith.constant 0 : index
      %c0_29 = arith.constant 0 : index
      %c0_30 = arith.constant 0 : index
      %92 = vector.load %arg4[%c0_28, %c0_29, %c0_30] : memref<1x8x32xf32, #tpu.memory_space<vmem>>, vector<1x8x32xf32>
      %93 = vector.shape_cast %92 : vector<1x8x32xf32> to vector<8x32xf32>
      %c0_31 = arith.constant 0 : index
      %c0_32 = arith.constant 0 : index
      %94 = vector.load %arg5[%c0_31, %c0_32] : memref<32x32xf32, #tpu.memory_space<vmem>>, vector<32x32xf32>
      %cst_33 = arith.constant dense<0.000000e+00> : vector<8x32xf32>
      %95 = tpu.matmul %93, %94, %cst_33 {dimension_numbers = #tpu.dot_dimension_numbers<[1], [0], [0], [1], [0, 0, 1, 1], [], []>} : vector<8x32xf32>, vector<32x32xf32>, vector<8x32xf32> -> vector<8x32xf32>
      %c0_34 = arith.constant 0 : index
      %c0_35 = arith.constant 0 : index
      %96 = vector.load %arg6[%c0_34, %c0_35] : memref<1x32xf32, #tpu.memory_space<vmem>>, vector<1x32xf32>
      %97 = vector.broadcast %96 : vector<1x32xf32> to vector<8x32xf32>
      %98 = arith.addf %95, %97 : vector<8x32xf32>
      %c0_36 = arith.constant 0 : index
      %c0_37 = arith.constant 0 : index
      %99 = vector.load %arg7[%c0_36, %c0_37] : memref<4x32xf32, #tpu.memory_space<vmem>>, vector<4x32xf32>
      %cst_38 = arith.constant dense<0.000000e+00> : vector<16x32xf32>
      %100 = tpu.matmul %91, %99, %cst_38 {dimension_numbers = #tpu.dot_dimension_numbers<[1], [0], [0], [1], [0, 0, 1, 1], [], []>} : vector<16x4xf32>, vector<4x32xf32>, vector<16x32xf32> -> vector<16x32xf32>
      %c0_39 = arith.constant 0 : index
      %c0_40 = arith.constant 0 : index
      %101 = vector.load %arg8[%c0_39, %c0_40] : memref<1x32xf32, #tpu.memory_space<vmem>>, vector<1x32xf32>
      %102 = vector.broadcast %101 : vector<1x32xf32> to vector<16x32xf32>
      %103 = arith.addf %100, %102 : vector<16x32xf32>
      %c0_41 = arith.constant 0 : index
      %c0_42 = arith.constant 0 : index
      %104 = vector.load %arg9[%c0_41, %c0_42] : memref<4x32xf32, #tpu.memory_space<vmem>>, vector<4x32xf32>
      %cst_43 = arith.constant dense<0.000000e+00> : vector<16x32xf32>
      %105 = tpu.matmul %91, %104, %cst_43 {dimension_numbers = #tpu.dot_dimension_numbers<[1], [0], [0], [1], [0, 0, 1, 1], [], []>} : vector<16x4xf32>, vector<4x32xf32>, vector<16x32xf32> -> vector<16x32xf32>
      %c0_44 = arith.constant 0 : index
      %c0_45 = arith.constant 0 : index
      %106 = vector.load %arg10[%c0_44, %c0_45] : memref<1x32xf32, #tpu.memory_space<vmem>>, vector<1x32xf32>
      %107 = vector.broadcast %106 : vector<1x32xf32> to vector<16x32xf32>
      %108 = arith.addf %105, %107 : vector<16x32xf32>
      %109 = vector.extract_strided_slice %98 {offsets = [0, 0], sizes = [8, 8], strides = [1, 1]} : vector<8x32xf32> to vector<8x8xf32>
      %110 = vector.shape_cast %109 : vector<8x8xf32> to vector<1x8x8xf32>
      %111 = vector.extract_strided_slice %98 {offsets = [0, 8], sizes = [8, 8], strides = [1, 1]} : vector<8x32xf32> to vector<8x8xf32>
      %112 = vector.shape_cast %111 : vector<8x8xf32> to vector<1x8x8xf32>
      %113 = vector.extract_strided_slice %98 {offsets = [0, 16], sizes = [8, 8], strides = [1, 1]} : vector<8x32xf32> to vector<8x8xf32>
      %114 = vector.shape_cast %113 : vector<8x8xf32> to vector<1x8x8xf32>
      %115 = vector.extract_strided_slice %98 {offsets = [0, 24], sizes = [8, 8], strides = [1, 1]} : vector<8x32xf32> to vector<8x8xf32>
      %116 = vector.shape_cast %115 : vector<8x8xf32> to vector<1x8x8xf32>
      %117 = vector.shape_cast %110 : vector<1x8x8xf32> to vector<1x1x8x8xf32>
      %118 = vector.shape_cast %112 : vector<1x8x8xf32> to vector<1x1x8x8xf32>
      %119 = vector.shape_cast %114 : vector<1x8x8xf32> to vector<1x1x8x8xf32>
      %120 = vector.shape_cast %116 : vector<1x8x8xf32> to vector<1x1x8x8xf32>
      %121 = tpu.concatenate %117, %118, %119, %120 in 1 : vector<1x1x8x8xf32>, vector<1x1x8x8xf32>, vector<1x1x8x8xf32>, vector<1x1x8x8xf32> -> vector<1x4x8x8xf32>
      %122 = vector.shape_cast %121 : vector<1x4x8x8xf32> to vector<4x8x8xf32>
      %123 = vector.extract_strided_slice %103 {offsets = [0, 0], sizes = [16, 8], strides = [1, 1]} : vector<16x32xf32> to vector<16x8xf32>
      %124 = vector.shape_cast %123 : vector<16x8xf32> to vector<1x16x8xf32>
      %125 = vector.extract_strided_slice %103 {offsets = [0, 8], sizes = [16, 8], strides = [1, 1]} : vector<16x32xf32> to vector<16x8xf32>
      %126 = vector.shape_cast %125 : vector<16x8xf32> to vector<1x16x8xf32>
      %127 = vector.extract_strided_slice %103 {offsets = [0, 16], sizes = [16, 8], strides = [1, 1]} : vector<16x32xf32> to vector<16x8xf32>
      %128 = vector.shape_cast %127 : vector<16x8xf32> to vector<1x16x8xf32>
      %129 = vector.extract_strided_slice %103 {offsets = [0, 24], sizes = [16, 8], strides = [1, 1]} : vector<16x32xf32> to vector<16x8xf32>
      %130 = vector.shape_cast %129 : vector<16x8xf32> to vector<1x16x8xf32>
      %131 = vector.shape_cast %124 : vector<1x16x8xf32> to vector<1x1x16x8xf32>
      %132 = vector.shape_cast %126 : vector<1x16x8xf32> to vector<1x1x16x8xf32>
      %133 = vector.shape_cast %128 : vector<1x16x8xf32> to vector<1x1x16x8xf32>
      %134 = vector.shape_cast %130 : vector<1x16x8xf32> to vector<1x1x16x8xf32>
      %135 = tpu.concatenate %131, %132, %133, %134 in 1 : vector<1x1x16x8xf32>, vector<1x1x16x8xf32>, vector<1x1x16x8xf32>, vector<1x1x16x8xf32> -> vector<1x4x16x8xf32>
      %136 = vector.shape_cast %135 : vector<1x4x16x8xf32> to vector<4x16x8xf32>
      %137 = vector.extract_strided_slice %108 {offsets = [0, 0], sizes = [16, 8], strides = [1, 1]} : vector<16x32xf32> to vector<16x8xf32>
      %138 = vector.shape_cast %137 : vector<16x8xf32> to vector<1x16x8xf32>
      %139 = vector.extract_strided_slice %108 {offsets = [0, 8], sizes = [16, 8], strides = [1, 1]} : vector<16x32xf32> to vector<16x8xf32>
      %140 = vector.shape_cast %139 : vector<16x8xf32> to vector<1x16x8xf32>
      %141 = vector.extract_strided_slice %108 {offsets = [0, 16], sizes = [16, 8], strides = [1, 1]} : vector<16x32xf32> to vector<16x8xf32>
      %142 = vector.shape_cast %141 : vector<16x8xf32> to vector<1x16x8xf32>
      %143 = vector.extract_strided_slice %108 {offsets = [0, 24], sizes = [16, 8], strides = [1, 1]} : vector<16x32xf32> to vector<16x8xf32>
      %144 = vector.shape_cast %143 : vector<16x8xf32> to vector<1x16x8xf32>
      %145 = vector.shape_cast %138 : vector<1x16x8xf32> to vector<1x1x16x8xf32>
      %146 = vector.shape_cast %140 : vector<1x16x8xf32> to vector<1x1x16x8xf32>
      %147 = vector.shape_cast %142 : vector<1x16x8xf32> to vector<1x1x16x8xf32>
      %148 = vector.shape_cast %144 : vector<1x16x8xf32> to vector<1x1x16x8xf32>
      %149 = tpu.concatenate %145, %146, %147, %148 in 1 : vector<1x1x16x8xf32>, vector<1x1x16x8xf32>, vector<1x1x16x8xf32>, vector<1x1x16x8xf32> -> vector<1x4x16x8xf32>
      %150 = vector.shape_cast %149 : vector<1x4x16x8xf32> to vector<4x16x8xf32>
      %151 = vector.shape_cast %122 : vector<4x8x8xf32> to vector<1x4x8x8xf32>
      %152 = vector.shape_cast %151 : vector<1x4x8x8xf32> to vector<4x8x8xf32>
      "tpu.trace_start"() <{level = 10 : i32, message = "bqd,bkd->bqk"}> : () -> ()
      %cst_46 = arith.constant dense<0.000000e+00> : vector<4x8x16xf32>
      %153 = tpu.matmul %152, %136, %cst_46 {dimension_numbers = #tpu.dot_dimension_numbers<[2], [2], [1], [1], [0, 0, 0, 1, 1, 1], [0], [0]>} : vector<4x8x8xf32>, vector<4x16x8xf32>, vector<4x8x16xf32> -> vector<4x8x16xf32>
      "tpu.trace_stop"() : () -> ()
      %cst_47 = arith.constant 0.176776692 : f32
      %154 = vector.broadcast %cst_47 : f32 to vector<4x8x16xf32>
      %155 = arith.mulf %153, %154 : vector<4x8x16xf32>
      %cst_48 = arith.constant dense<0xFF800000> : vector<4x8xf32>
      %156 = vector.multi_reduction <maximumf>, %155, %cst_48 [2] : vector<4x8x16xf32> to vector<4x8xf32>
      %157 = vector.shape_cast %156 : vector<4x8xf32> to vector<4x8x1xf32>
      %158 = vector.broadcast %157 : vector<4x8x1xf32> to vector<4x8x16xf32>
      %159 = arith.subf %155, %158 : vector<4x8x16xf32>
      %160 = math.exp %159 : vector<4x8x16xf32>
      %cst_49 = arith.constant dense<0.000000e+00> : vector<4x8xf32>
      %161 = vector.multi_reduction <add>, %160, %cst_49 [2] : vector<4x8x16xf32> to vector<4x8xf32>
      %162 = vector.shape_cast %161 : vector<4x8xf32> to vector<4x8x1xf32>
      %163 = tpu.reciprocal %162 {approx = true} : vector<4x8x1xf32> -> vector<4x8x1xf32>
      %164 = vector.broadcast %163 : vector<4x8x1xf32> to vector<4x8x16xf32>
      %165 = arith.mulf %160, %164 : vector<4x8x16xf32>
      "tpu.trace_start"() <{level = 10 : i32, message = "bqk,bkd->bqd"}> : () -> ()
      %cst_50 = arith.constant dense<0.000000e+00> : vector<4x8x8xf32>
      %166 = tpu.matmul %165, %150, %cst_50 {dimension_numbers = #tpu.dot_dimension_numbers<[2], [1], [1], [2], [0, 0, 0, 1, 1, 2], [0], [0]>} : vector<4x8x16xf32>, vector<4x16x8xf32>, vector<4x8x8xf32> -> vector<4x8x8xf32>
      "tpu.trace_stop"() : () -> ()
      %167 = vector.shape_cast %166 : vector<4x8x8xf32> to vector<1x4x8x8xf32>
      %168 = vector.shape_cast %122 : vector<4x8x8xf32> to vector<1x4x8x8xf32>
      %169 = arith.addf %167, %168 : vector<1x4x8x8xf32>
      %170 = vector.shape_cast %169 : vector<1x4x8x8xf32> to vector<4x8x8xf32>
      %171 = vector.shape_cast %170 : vector<4x8x8xf32> to vector<1x4x8x8xf32>
      %172 = vector.extract_strided_slice %171 {offsets = [0, 0, 0, 0], sizes = [1, 1, 8, 8], strides = [1, 1, 1, 1]} : vector<1x4x8x8xf32> to vector<1x1x8x8xf32>
      %173 = vector.shape_cast %172 : vector<1x1x8x8xf32> to vector<1x8x8xf32>
      %174 = vector.extract_strided_slice %171 {offsets = [0, 1, 0, 0], sizes = [1, 1, 8, 8], strides = [1, 1, 1, 1]} : vector<1x4x8x8xf32> to vector<1x1x8x8xf32>
      %175 = vector.shape_cast %174 : vector<1x1x8x8xf32> to vector<1x8x8xf32>
      %176 = vector.extract_strided_slice %171 {offsets = [0, 2, 0, 0], sizes = [1, 1, 8, 8], strides = [1, 1, 1, 1]} : vector<1x4x8x8xf32> to vector<1x1x8x8xf32>
      %177 = vector.shape_cast %176 : vector<1x1x8x8xf32> to vector<1x8x8xf32>
      %178 = vector.extract_strided_slice %171 {offsets = [0, 3, 0, 0], sizes = [1, 1, 8, 8], strides = [1, 1, 1, 1]} : vector<1x4x8x8xf32> to vector<1x1x8x8xf32>
      %179 = vector.shape_cast %178 : vector<1x1x8x8xf32> to vector<1x8x8xf32>
      %180 = tpu.concatenate %173, %175, %177, %179 in 2 : vector<1x8x8xf32>, vector<1x8x8xf32>, vector<1x8x8xf32>, vector<1x8x8xf32> -> vector<1x8x32xf32>
      %181 = vector.shape_cast %180 : vector<1x8x32xf32> to vector<8x32xf32>
      %c0_51 = arith.constant 0 : index
      %c0_52 = arith.constant 0 : index
      %182 = vector.load %arg11[%c0_51, %c0_52] : memref<32x32xf32, #tpu.memory_space<vmem>>, vector<32x32xf32>
      %cst_53 = arith.constant dense<0.000000e+00> : vector<8x32xf32>
      %183 = tpu.matmul %181, %182, %cst_53 {dimension_numbers = #tpu.dot_dimension_numbers<[1], [0], [0], [1], [0, 0, 1, 1], [], []>} : vector<8x32xf32>, vector<32x32xf32>, vector<8x32xf32> -> vector<8x32xf32>
      %c0_54 = arith.constant 0 : index
      %c0_55 = arith.constant 0 : index
      %184 = vector.load %arg12[%c0_54, %c0_55] : memref<1x32xf32, #tpu.memory_space<vmem>>, vector<1x32xf32>
      %185 = vector.broadcast %184 : vector<1x32xf32> to vector<8x32xf32>
      %186 = arith.addf %183, %185 : vector<8x32xf32>
      %cst_56 = arith.constant 0.000000e+00 : f32
      %187 = vector.broadcast %cst_56 : f32 to vector<8x32xf32>
      %188 = arith.maximumf %186, %187 : vector<8x32xf32>
      %189 = arith.addf %181, %188 : vector<8x32xf32>
      %c0_57 = arith.constant 0 : index
      %c0_58 = arith.constant 0 : index
      %190 = vector.load %arg15[%c0_57, %c0_58] : memref<32x32xf32, #tpu.memory_space<vmem>>, vector<32x32xf32>
      %cst_59 = arith.constant dense<0.000000e+00> : vector<8x32xf32>
      %191 = tpu.matmul %189, %190, %cst_59 {dimension_numbers = #tpu.dot_dimension_numbers<[1], [0], [0], [1], [0, 0, 1, 1], [], []>} : vector<8x32xf32>, vector<32x32xf32>, vector<8x32xf32> -> vector<8x32xf32>
      %c0_60 = arith.constant 0 : index
      %c0_61 = arith.constant 0 : index
      %192 = vector.load %arg16[%c0_60, %c0_61] : memref<1x32xf32, #tpu.memory_space<vmem>>, vector<1x32xf32>
      %193 = vector.broadcast %192 : vector<1x32xf32> to vector<8x32xf32>
      %194 = arith.addf %191, %193 : vector<8x32xf32>
      %c0_62 = arith.constant 0 : index
      %c0_63 = arith.constant 0 : index
      %195 = vector.load %arg22[%c0_62, %c0_63] : memref<8x32xf32, #tpu.memory_space<vmem>>, vector<8x32xf32>
      tpu.vector_store %arg22[%c0_62, %c0_63], %194 {strides = array<i32>} : memref<8x32xf32, #tpu.memory_space<vmem>>, vector<8x32xf32>,
      %c0_64 = arith.constant 0 : index
      %c0_65 = arith.constant 0 : index
      %196 = vector.load %arg17[%c0_64, %c0_65] : memref<32x32xf32, #tpu.memory_space<vmem>>, vector<32x32xf32>
      %cst_66 = arith.constant dense<0.000000e+00> : vector<8x32xf32>
      %197 = tpu.matmul %189, %196, %cst_66 {dimension_numbers = #tpu.dot_dimension_numbers<[1], [0], [0], [1], [0, 0, 1, 1], [], []>} : vector<8x32xf32>, vector<32x32xf32>, vector<8x32xf32> -> vector<8x32xf32>
      %c0_67 = arith.constant 0 : index
      %c0_68 = arith.constant 0 : index
      %198 = vector.load %arg18[%c0_67, %c0_68] : memref<1x32xf32, #tpu.memory_space<vmem>>, vector<1x32xf32>
      %199 = vector.broadcast %198 : vector<1x32xf32> to vector<8x32xf32>
      %200 = arith.addf %197, %199 : vector<8x32xf32>
      %c0_69 = arith.constant 0 : index
      %c0_70 = arith.constant 0 : index
      %201 = vector.load %arg23[%c0_69, %c0_70] : memref<8x32xf32, #tpu.memory_space<vmem>>, vector<8x32xf32>
      tpu.vector_store %arg23[%c0_69, %c0_70], %200 {strides = array<i32>} : memref<8x32xf32, #tpu.memory_space<vmem>>, vector<8x32xf32>,
    } else {
    }
    %c0 = arith.constant 0 : index
    %c0_1 = arith.constant 0 : index
    %c0_2 = arith.constant 0 : index
    %3 = vector.load %arg3[%c0, %c0_1, %c0_2] : memref<1x16x4xf32, #tpu.memory_space<vmem>>, vector<1x16x4xf32>
    %4 = vector.shape_cast %3 : vector<1x16x4xf32> to vector<16x4xf32>
    %c0_3 = arith.constant 0 : index
    %c0_4 = arith.constant 0 : index
    %5 = vector.load %arg13[%c0_3, %c0_4] : memref<4x32xf32, #tpu.memory_space<vmem>>, vector<4x32xf32>
    %cst = arith.constant dense<0.000000e+00> : vector<16x32xf32>
    %6 = tpu.matmul %4, %5, %cst {dimension_numbers = #tpu.dot_dimension_numbers<[1], [0], [0], [1], [0, 0, 1, 1], [], []>} : vector<16x4xf32>, vector<4x32xf32>, vector<16x32xf32> -> vector<16x32xf32>
    %c0_5 = arith.constant 0 : index
    %c0_6 = arith.constant 0 : index
    %7 = vector.load %arg14[%c0_5, %c0_6] : memref<1x32xf32, #tpu.memory_space<vmem>>, vector<1x32xf32>
    %8 = vector.broadcast %7 : vector<1x32xf32> to vector<16x32xf32>
    %9 = arith.addf %6, %8 : vector<16x32xf32>
    %10 = vector.extract_strided_slice %9 {offsets = [0, 0], sizes = [16, 8], strides = [1, 1]} : vector<16x32xf32> to vector<16x8xf32>
    %11 = vector.shape_cast %10 : vector<16x8xf32> to vector<1x16x8xf32>
    %12 = vector.extract_strided_slice %9 {offsets = [0, 8], sizes = [16, 8], strides = [1, 1]} : vector<16x32xf32> to vector<16x8xf32>
    %13 = vector.shape_cast %12 : vector<16x8xf32> to vector<1x16x8xf32>
    %14 = vector.extract_strided_slice %9 {offsets = [0, 16], sizes = [16, 8], strides = [1, 1]} : vector<16x32xf32> to vector<16x8xf32>
    %15 = vector.shape_cast %14 : vector<16x8xf32> to vector<1x16x8xf32>
    %16 = vector.extract_strided_slice %9 {offsets = [0, 24], sizes = [16, 8], strides = [1, 1]} : vector<16x32xf32> to vector<16x8xf32>
    %17 = vector.shape_cast %16 : vector<16x8xf32> to vector<1x16x8xf32>
    %18 = vector.shape_cast %11 : vector<1x16x8xf32> to vector<1x1x16x8xf32>
    %19 = vector.shape_cast %13 : vector<1x16x8xf32> to vector<1x1x16x8xf32>
    %20 = vector.shape_cast %15 : vector<1x16x8xf32> to vector<1x1x16x8xf32>
    %21 = vector.shape_cast %17 : vector<1x16x8xf32> to vector<1x1x16x8xf32>
    %22 = tpu.concatenate %18, %19, %20, %21 in 1 : vector<1x1x16x8xf32>, vector<1x1x16x8xf32>, vector<1x1x16x8xf32>, vector<1x1x16x8xf32> -> vector<1x4x16x8xf32>
    %23 = vector.shape_cast %22 : vector<1x4x16x8xf32> to vector<4x16x8xf32>
    %c0_7 = arith.constant 0 : index
    %c0_8 = arith.constant 0 : index
    %24 = vector.load %arg22[%c0_7, %c0_8] : memref<8x32xf32, #tpu.memory_space<vmem>>, vector<8x32xf32>
    %25 = vector.extract_strided_slice %24 {offsets = [0, 0], sizes = [8, 8], strides = [1, 1]} : vector<8x32xf32> to vector<8x8xf32>
    %26 = vector.shape_cast %25 : vector<8x8xf32> to vector<1x8x8xf32>
    %27 = vector.extract_strided_slice %24 {offsets = [0, 8], sizes = [8, 8], strides = [1, 1]} : vector<8x32xf32> to vector<8x8xf32>
    %28 = vector.shape_cast %27 : vector<8x8xf32> to vector<1x8x8xf32>
    %29 = vector.extract_strided_slice %24 {offsets = [0, 16], sizes = [8, 8], strides = [1, 1]} : vector<8x32xf32> to vector<8x8xf32>
    %30 = vector.shape_cast %29 : vector<8x8xf32> to vector<1x8x8xf32>
    %31 = vector.extract_strided_slice %24 {offsets = [0, 24], sizes = [8, 8], strides = [1, 1]} : vector<8x32xf32> to vector<8x8xf32>
    %32 = vector.shape_cast %31 : vector<8x8xf32> to vector<1x8x8xf32>
    %33 = vector.shape_cast %26 : vector<1x8x8xf32> to vector<1x1x8x8xf32>
    %34 = vector.shape_cast %28 : vector<1x8x8xf32> to vector<1x1x8x8xf32>
    %35 = vector.shape_cast %30 : vector<1x8x8xf32> to vector<1x1x8x8xf32>
    %36 = vector.shape_cast %32 : vector<1x8x8xf32> to vector<1x1x8x8xf32>
    %37 = tpu.concatenate %33, %34, %35, %36 in 1 : vector<1x1x8x8xf32>, vector<1x1x8x8xf32>, vector<1x1x8x8xf32>, vector<1x1x8x8xf32> -> vector<1x4x8x8xf32>
    %38 = vector.shape_cast %37 : vector<1x4x8x8xf32> to vector<4x8x8xf32>
    %c0_9 = arith.constant 0 : index
    %c0_10 = arith.constant 0 : index
    %39 = vector.load %arg23[%c0_9, %c0_10] : memref<8x32xf32, #tpu.memory_space<vmem>>, vector<8x32xf32>
    %40 = vector.extract_strided_slice %39 {offsets = [0, 0], sizes = [8, 8], strides = [1, 1]} : vector<8x32xf32> to vector<8x8xf32>
    %41 = vector.shape_cast %40 : vector<8x8xf32> to vector<1x8x8xf32>
    %42 = vector.extract_strided_slice %39 {offsets = [0, 8], sizes = [8, 8], strides = [1, 1]} : vector<8x32xf32> to vector<8x8xf32>
    %43 = vector.shape_cast %42 : vector<8x8xf32> to vector<1x8x8xf32>
    %44 = vector.extract_strided_slice %39 {offsets = [0, 16], sizes = [8, 8], strides = [1, 1]} : vector<8x32xf32> to vector<8x8xf32>
    %45 = vector.shape_cast %44 : vector<8x8xf32> to vector<1x8x8xf32>
    %46 = vector.extract_strided_slice %39 {offsets = [0, 24], sizes = [8, 8], strides = [1, 1]} : vector<8x32xf32> to vector<8x8xf32>
    %47 = vector.shape_cast %46 : vector<8x8xf32> to vector<1x8x8xf32>
    %48 = vector.shape_cast %41 : vector<1x8x8xf32> to vector<1x1x8x8xf32>
    %49 = vector.shape_cast %43 : vector<1x8x8xf32> to vector<1x1x8x8xf32>
    %50 = vector.shape_cast %45 : vector<1x8x8xf32> to vector<1x1x8x8xf32>
    %51 = vector.shape_cast %47 : vector<1x8x8xf32> to vector<1x1x8x8xf32>
    %52 = tpu.concatenate %48, %49, %50, %51 in 1 : vector<1x1x8x8xf32>, vector<1x1x8x8xf32>, vector<1x1x8x8xf32>, vector<1x1x8x8xf32> -> vector<1x4x8x8xf32>
    %53 = vector.shape_cast %52 : vector<1x4x8x8xf32> to vector<4x8x8xf32>
    "tpu.trace_start"() <{level = 10 : i32, message = "bqd,bkd->bqk"}> : () -> ()
    %cst_11 = arith.constant dense<0.000000e+00> : vector<4x16x8xf32>
    %54 = tpu.matmul %23, %38, %cst_11 {dimension_numbers = #tpu.dot_dimension_numbers<[2], [2], [1], [1], [0, 0, 0, 1, 1, 1], [0], [0]>} : vector<4x16x8xf32>, vector<4x8x8xf32>, vector<4x16x8xf32> -> vector<4x16x8xf32>
    "tpu.trace_stop"() : () -> ()
    %cst_12 = arith.constant 0.176776692 : f32
    %55 = vector.broadcast %cst_12 : f32 to vector<4x16x8xf32>
    %56 = arith.mulf %54, %55 : vector<4x16x8xf32>
    %cst_13 = arith.constant dense<0xFF800000> : vector<4x16xf32>
    %57 = vector.multi_reduction <maximumf>, %56, %cst_13 [2] : vector<4x16x8xf32> to vector<4x16xf32>
    %58 = vector.shape_cast %57 : vector<4x16xf32> to vector<4x16x1xf32>
    %59 = vector.broadcast %58 : vector<4x16x1xf32> to vector<4x16x8xf32>
    %60 = arith.subf %56, %59 : vector<4x16x8xf32>
    %61 = math.exp %60 : vector<4x16x8xf32>
    %cst_14 = arith.constant dense<0.000000e+00> : vector<4x16xf32>
    %62 = vector.multi_reduction <add>, %61, %cst_14 [2] : vector<4x16x8xf32> to vector<4x16xf32>
    %63 = vector.shape_cast %62 : vector<4x16xf32> to vector<4x16x1xf32>
    %64 = tpu.reciprocal %63 {approx = true} : vector<4x16x1xf32> -> vector<4x16x1xf32>
    %65 = vector.broadcast %64 : vector<4x16x1xf32> to vector<4x16x8xf32>
    %66 = arith.mulf %61, %65 : vector<4x16x8xf32>
    "tpu.trace_start"() <{level = 10 : i32, message = "bqk,bkd->bqd"}> : () -> ()
    %cst_15 = arith.constant dense<0.000000e+00> : vector<4x16x8xf32>
    %67 = tpu.matmul %66, %53, %cst_15 {dimension_numbers = #tpu.dot_dimension_numbers<[2], [1], [1], [2], [0, 0, 0, 1, 1, 2], [0], [0]>} : vector<4x16x8xf32>, vector<4x8x8xf32>, vector<4x16x8xf32> -> vector<4x16x8xf32>
    "tpu.trace_stop"() : () -> ()
    %68 = arith.addf %67, %23 : vector<4x16x8xf32>
    %69 = vector.shape_cast %68 : vector<4x16x8xf32> to vector<1x4x16x8xf32>
    %70 = vector.extract_strided_slice %69 {offsets = [0, 0, 0, 0], sizes = [1, 1, 16, 8], strides = [1, 1, 1, 1]} : vector<1x4x16x8xf32> to vector<1x1x16x8xf32>
    %71 = vector.shape_cast %70 : vector<1x1x16x8xf32> to vector<1x16x8xf32>
    %72 = vector.extract_strided_slice %69 {offsets = [0, 1, 0, 0], sizes = [1, 1, 16, 8], strides = [1, 1, 1, 1]} : vector<1x4x16x8xf32> to vector<1x1x16x8xf32>
    %73 = vector.shape_cast %72 : vector<1x1x16x8xf32> to vector<1x16x8xf32>
    %74 = vector.extract_strided_slice %69 {offsets = [0, 2, 0, 0], sizes = [1, 1, 16, 8], strides = [1, 1, 1, 1]} : vector<1x4x16x8xf32> to vector<1x1x16x8xf32>
    %75 = vector.shape_cast %74 : vector<1x1x16x8xf32> to vector<1x16x8xf32>
    %76 = vector.extract_strided_slice %69 {offsets = [0, 3, 0, 0], sizes = [1, 1, 16, 8], strides = [1, 1, 1, 1]} : vector<1x4x16x8xf32> to vector<1x1x16x8xf32>
    %77 = vector.shape_cast %76 : vector<1x1x16x8xf32> to vector<1x16x8xf32>
    %78 = tpu.concatenate %71, %73, %75, %77 in 2 : vector<1x16x8xf32>, vector<1x16x8xf32>, vector<1x16x8xf32>, vector<1x16x8xf32> -> vector<1x16x32xf32>
    %79 = vector.shape_cast %78 : vector<1x16x32xf32> to vector<16x32xf32>
    %c0_16 = arith.constant 0 : index
    %c0_17 = arith.constant 0 : index
    %80 = vector.load %arg19[%c0_16, %c0_17] : memref<32x32xf32, #tpu.memory_space<vmem>>, vector<32x32xf32>
    %cst_18 = arith.constant dense<0.000000e+00> : vector<16x32xf32>
    %81 = tpu.matmul %79, %80, %cst_18 {dimension_numbers = #tpu.dot_dimension_numbers<[1], [0], [0], [1], [0, 0, 1, 1], [], []>} : vector<16x32xf32>, vector<32x32xf32>, vector<16x32xf32> -> vector<16x32xf32>
    %c0_19 = arith.constant 0 : index
    %c0_20 = arith.constant 0 : index
    %82 = vector.load %arg20[%c0_19, %c0_20] : memref<1x32xf32, #tpu.memory_space<vmem>>, vector<1x32xf32>
    %83 = vector.broadcast %82 : vector<1x32xf32> to vector<16x32xf32>
    %84 = arith.addf %81, %83 : vector<16x32xf32>
    %cst_21 = arith.constant 0.000000e+00 : f32
    %85 = vector.broadcast %cst_21 : f32 to vector<16x32xf32>
    %86 = arith.maximumf %84, %85 : vector<16x32xf32>
    %87 = arith.addf %79, %86 : vector<16x32xf32>
    %88 = vector.shape_cast %87 : vector<16x32xf32> to vector<1x16x32xf32>
    %c0_22 = arith.constant 0 : index
    %c0_23 = arith.constant 0 : index
    %c0_24 = arith.constant 0 : index
    %89 = vector.load %arg21[%c0_22, %c0_23, %c0_24] : memref<1x16x32xf32, #tpu.memory_space<vmem>>, vector<1x16x32xf32>
    tpu.vector_store %arg21[%c0_22, %c0_23, %c0_24], %88 {strides = array<i32>} : memref<1x16x32xf32, #tpu.memory_space<vmem>>, vector<1x16x32xf32>,
    return
  }
  func.func @transform_0(%arg0: i32, %arg1: i32) -> (i32, i32, i32) {
    %c0_i32 = arith.constant 0 : i32
    %c0_i32_0 = arith.constant 0 : i32
    %c0_i32_1 = arith.constant 0 : i32
    return %arg0, %c0_i32, %c0_i32_0 : i32, i32, i32
  }
  func.func @transform_1(%arg0: i32, %arg1: i32) -> (i32, i32, i32) {
    %c0_i32 = arith.constant 0 : i32
    %c0_i32_0 = arith.constant 0 : i32
    return %arg0, %arg1, %c0_i32 : i32, i32, i32
  }
  func.func @transform_2(%arg0: i32, %arg1: i32) -> (i32, i32, i32) {
    %c0_i32 = arith.constant 0 : i32
    %c0_i32_0 = arith.constant 0 : i32
    %c0_i32_1 = arith.constant 0 : i32
    %c0_i32_2 = arith.constant 0 : i32
    return %c0_i32, %c0_i32_0, %c0_i32_1 : i32, i32, i32
  }
  func.func @transform_3(%arg0: i32, %arg1: i32) -> (i32, i32) {
    %c0_i32 = arith.constant 0 : i32
    %c0_i32_0 = arith.constant 0 : i32
    %c0_i32_1 = arith.constant 0 : i32
    return %c0_i32, %c0_i32_0 : i32, i32
  }
  func.func @transform_4(%arg0: i32, %arg1: i32) -> (i32, i32) {
    %c0_i32 = arith.constant 0 : i32
    %c0_i32_0 = arith.constant 0 : i32
    %c0_i32_1 = arith.constant 0 : i32
    return %c0_i32, %c0_i32_0 : i32, i32
  }
  func.func @transform_5(%arg0: i32, %arg1: i32) -> (i32, i32) {
    %c0_i32 = arith.constant 0 : i32
    %c0_i32_0 = arith.constant 0 : i32
    %c0_i32_1 = arith.constant 0 : i32
    return %c0_i32, %c0_i32_0 : i32, i32
  }
  func.func @transform_6(%arg0: i32, %arg1: i32) -> (i32, i32) {
    %c0_i32 = arith.constant 0 : i32
    %c0_i32_0 = arith.constant 0 : i32
    %c0_i32_1 = arith.constant 0 : i32
    return %c0_i32, %c0_i32_0 : i32, i32
  }
  func.func @transform_7(%arg0: i32, %arg1: i32) -> (i32, i32) {
    %c0_i32 = arith.constant 0 : i32
    %c0_i32_0 = arith.constant 0 : i32
    %c0_i32_1 = arith.constant 0 : i32
    return %c0_i32, %c0_i32_0 : i32, i32
  }
  func.func @transform_8(%arg0: i32, %arg1: i32) -> (i32, i32) {
    %c0_i32 = arith.constant 0 : i32
    %c0_i32_0 = arith.constant 0 : i32
    %c0_i32_1 = arith.constant 0 : i32
    return %c0_i32, %c0_i32_0 : i32, i32
  }
  func.func @transform_9(%arg0: i32, %arg1: i32) -> (i32, i32) {
    %c0_i32 = arith.constant 0 : i32
    %c0_i32_0 = arith.constant 0 : i32
    %c0_i32_1 = arith.constant 0 : i32
    return %c0_i32, %c0_i32_0 : i32, i32
  }
  func.func @transform_10(%arg0: i32, %arg1: i32) -> (i32, i32) {
    %c0_i32 = arith.constant 0 : i32
    %c0_i32_0 = arith.constant 0 : i32
    %c0_i32_1 = arith.constant 0 : i32
    return %c0_i32, %c0_i32_0 : i32, i32
  }
  func.func @transform_11(%arg0: i32, %arg1: i32) -> (i32, i32) {
    %c0_i32 = arith.constant 0 : i32
    %c0_i32_0 = arith.constant 0 : i32
    %c0_i32_1 = arith.constant 0 : i32
    return %c0_i32, %c0_i32_0 : i32, i32
  }
  func.func @transform_12(%arg0: i32, %arg1: i32) -> (i32, i32) {
    %c0_i32 = arith.constant 0 : i32
    %c0_i32_0 = arith.constant 0 : i32
    %c0_i32_1 = arith.constant 0 : i32
    return %c0_i32, %c0_i32_0 : i32, i32
  }
  func.func @transform_13(%arg0: i32, %arg1: i32) -> (i32, i32) {
    %c0_i32 = arith.constant 0 : i32
    %c0_i32_0 = arith.constant 0 : i32
    %c0_i32_1 = arith.constant 0 : i32
    return %c0_i32, %c0_i32_0 : i32, i32
  }
  func.func @transform_14(%arg0: i32, %arg1: i32) -> (i32, i32) {
    %c0_i32 = arith.constant 0 : i32
    %c0_i32_0 = arith.constant 0 : i32
    %c0_i32_1 = arith.constant 0 : i32
    return %c0_i32, %c0_i32_0 : i32, i32
  }
  func.func @transform_15(%arg0: i32, %arg1: i32) -> (i32, i32) {
    %c0_i32 = arith.constant 0 : i32
    %c0_i32_0 = arith.constant 0 : i32
    %c0_i32_1 = arith.constant 0 : i32
    return %c0_i32, %c0_i32_0 : i32, i32
  }
  func.func @transform_16(%arg0: i32, %arg1: i32) -> (i32, i32) {
    %c0_i32 = arith.constant 0 : i32
    %c0_i32_0 = arith.constant 0 : i32
    %c0_i32_1 = arith.constant 0 : i32
    return %c0_i32, %c0_i32_0 : i32, i32
  }
  func.func @transform_17(%arg0: i32, %arg1: i32) -> (i32, i32) {
    %c0_i32 = arith.constant 0 : i32
    %c0_i32_0 = arith.constant 0 : i32
    %c0_i32_1 = arith.constant 0 : i32
    return %c0_i32, %c0_i32_0 : i32, i32
  }
  func.func @transform_18(%arg0: i32, %arg1: i32) -> (i32, i32) {
    %c0_i32 = arith.constant 0 : i32
    %c0_i32_0 = arith.constant 0 : i32
    %c0_i32_1 = arith.constant 0 : i32
    return %c0_i32, %c0_i32_0 : i32, i32
  }
  func.func @transform_19(%arg0: i32, %arg1: i32) -> (i32, i32, i32) {
    %c0_i32 = arith.constant 0 : i32
    %c0_i32_0 = arith.constant 0 : i32
    return %arg0, %arg1, %c0_i32 : i32, i32, i32
  }
}

module attributes {stable_mosaic.version = 11 : i64} {
  func.func @isab_kernel(%arg0: i32, %arg1: i32, %arg2: memref<1x16x4xf32, #tpu.memory_space<vmem>>, %arg3: memref<1x16x4xf32, #tpu.memory_space<vmem>>, %arg4: memref<1x8x32xf32, #tpu.memory_space<vmem>>, %arg5: memref<32x32xf32, #tpu.memory_space<vmem>>, %arg6: memref<1x32xf32, #tpu.memory_space<vmem>>, %arg7: memref<4x32xf32, #tpu.memory_space<vmem>>, %arg8: memref<1x32xf32, #tpu.memory_space<vmem>>, %arg9: memref<4x32xf32, #tpu.memory_space<vmem>>, %arg10: memref<1x32xf32, #tpu.memory_space<vmem>>, %arg11: memref<32x32xf32, #tpu.memory_space<vmem>>, %arg12: memref<1x32xf32, #tpu.memory_space<vmem>>, %arg13: memref<4x32xf32, #tpu.memory_space<vmem>>, %arg14: memref<1x32xf32, #tpu.memory_space<vmem>>, %arg15: memref<32x32xf32, #tpu.memory_space<vmem>>, %arg16: memref<1x32xf32, #tpu.memory_space<vmem>>, %arg17: memref<32x32xf32, #tpu.memory_space<vmem>>, %arg18: memref<1x32xf32, #tpu.memory_space<vmem>>, %arg19: memref<32x32xf32, #tpu.memory_space<vmem>>, %arg20: memref<1x32xf32, #tpu.memory_space<vmem>>, %arg21: memref<1x16x32xf32, #tpu.memory_space<vmem>>, %arg22: memref<8x32xf32, #tpu.memory_space<vmem>>, %arg23: memref<8x32xf32, #tpu.memory_space<vmem>>) attributes {dimension_semantics = [#tpu.dimension_semantics<parallel>, #tpu.dimension_semantics<arbitrary>], iteration_bounds = array<i64: 2, 1>, scalar_prefetch = 0 : i64, scratch_operands = 2 : i64, tpu.core_type = #tpu.core_type<tc>, window_params = [{transform_indices = @transform_0, window_bounds = array<i64: 1, 16, 4>}, {transform_indices = @transform_1, window_bounds = array<i64: 1, 16, 4>}, {pipeline_mode = #tpu.pipeline_mode<synchronous>, transform_indices = @transform_2, window_bounds = array<i64: 1, 8, 32>}, {pipeline_mode = #tpu.pipeline_mode<synchronous>, transform_indices = @transform_3, window_bounds = array<i64: 32, 32>}, {pipeline_mode = #tpu.pipeline_mode<synchronous>, transform_indices = @transform_4, window_bounds = array<i64: 1, 32>}, {pipeline_mode = #tpu.pipeline_mode<synchronous>, transform_indices = @transform_5, window_bounds = array<i64: 4, 32>}, {pipeline_mode = #tpu.pipeline_mode<synchronous>, transform_indices = @transform_6, window_bounds = array<i64: 1, 32>}, {pipeline_mode = #tpu.pipeline_mode<synchronous>, transform_indices = @transform_7, window_bounds = array<i64: 4, 32>}, {pipeline_mode = #tpu.pipeline_mode<synchronous>, transform_indices = @transform_8, window_bounds = array<i64: 1, 32>}, {pipeline_mode = #tpu.pipeline_mode<synchronous>, transform_indices = @transform_9, window_bounds = array<i64: 32, 32>}, {pipeline_mode = #tpu.pipeline_mode<synchronous>, transform_indices = @transform_10, window_bounds = array<i64: 1, 32>}, {pipeline_mode = #tpu.pipeline_mode<synchronous>, transform_indices = @transform_11, window_bounds = array<i64: 4, 32>}, {pipeline_mode = #tpu.pipeline_mode<synchronous>, transform_indices = @transform_12, window_bounds = array<i64: 1, 32>}, {pipeline_mode = #tpu.pipeline_mode<synchronous>, transform_indices = @transform_13, window_bounds = array<i64: 32, 32>}, {pipeline_mode = #tpu.pipeline_mode<synchronous>, transform_indices = @transform_14, window_bounds = array<i64: 1, 32>}, {pipeline_mode = #tpu.pipeline_mode<synchronous>, transform_indices = @transform_15, window_bounds = array<i64: 32, 32>}, {pipeline_mode = #tpu.pipeline_mode<synchronous>, transform_indices = @transform_16, window_bounds = array<i64: 1, 32>}, {pipeline_mode = #tpu.pipeline_mode<synchronous>, transform_indices = @transform_17, window_bounds = array<i64: 32, 32>}, {pipeline_mode = #tpu.pipeline_mode<synchronous>, transform_indices = @transform_18, window_bounds = array<i64: 1, 32>}, {transform_indices = @transform_19, window_bounds = array<i64: 1, 16, 32>}]} {
    %c0_i32 = arith.constant 0 : i32
    %0 = arith.cmpi eq, %arg1, %c0_i32 : i32
    %1 = arith.extui %0 : i1 to i32
    %c0_i32_0 = arith.constant 0 : i32
    %2 = arith.cmpi ne, %1, %c0_i32_0 : i32
    scf.if %2 {
      %c0_25 = arith.constant 0 : index
      %c0_26 = arith.constant 0 : index
      %c0_27 = arith.constant 0 : index
      %90 = vector.load %arg2[%c0_25, %c0_26, %c0_27] : memref<1x16x4xf32, #tpu.memory_space<vmem>>, vector<1x16x4xf32>
      %91 = vector.shape_cast %90 : vector<1x16x4xf32> to vector<16x4xf32>
      %c0_28 = arith.constant 0 : index
      %c0_29 = arith.constant 0 : index
      %c0_30 = arith.constant 0 : index
      %92 = vector.load %arg4[%c0_28, %c0_29, %c0_30] : memref<1x8x32xf32, #tpu.memory_space<vmem>>, vector<1x8x32xf32>
      %93 = vector.shape_cast %92 : vector<1x8x32xf32> to vector<8x32xf32>
      %c0_31 = arith.constant 0 : index
      %c0_32 = arith.constant 0 : index
      %94 = vector.load %arg5[%c0_31, %c0_32] : memref<32x32xf32, #tpu.memory_space<vmem>>, vector<32x32xf32>
      %cst_33 = arith.constant dense<0.000000e+00> : vector<8x32xf32>
      %95 = tpu.matmul %93, %94, %cst_33 {dimension_numbers = #tpu.dot_dimension_numbers<[1], [0], [0], [1], [0, 0, 1, 1], [], []>} : vector<8x32xf32>, vector<32x32xf32>, vector<8x32xf32> -> vector<8x32xf32>
      %c0_34 = arith.constant 0 : index
      %c0_35 = arith.constant 0 : index
      %96 = vector.load %arg6[%c0_34, %c0_35] : memref<1x32xf32, #tpu.memory_space<vmem>>, vector<1x32xf32>
      %97 = vector.broadcast %96 : vector<1x32xf32> to vector<8x32xf32>
      %98 = arith.addf %95, %97 : vector<8x32xf32>
      %c0_36 = arith.constant 0 : index
      %c0_37 = arith.constant 0 : index
      %99 = vector.load %arg7[%c0_36, %c0_37] : memref<4x32xf32, #tpu.memory_space<vmem>>, vector<4x32xf32>
      %cst_38 = arith.constant dense<0.000000e+00> : vector<16x32xf32>
      %100 = tpu.matmul %91, %99, %cst_38 {dimension_numbers = #tpu.dot_dimension_numbers<[1], [0], [0], [1], [0, 0, 1, 1], [], []>} : vector<16x4xf32>, vector<4x32xf32>, vector<16x32xf32> -> vector<16x32xf32>
      %c0_39 = arith.constant 0 : index
      %c0_40 = arith.constant 0 : index
      %101 = vector.load %arg8[%c0_39, %c0_40] : memref<1x32xf32, #tpu.memory_space<vmem>>, vector<1x32xf32>
      %102 = vector.broadcast %101 : vector<1x32xf32> to vector<16x32xf32>
      %103 = arith.addf %100, %102 : vector<16x32xf32>
      %c0_41 = arith.constant 0 : index
      %c0_42 = arith.constant 0 : index
      %104 = vector.load %arg9[%c0_41, %c0_42] : memref<4x32xf32, #tpu.memory_space<vmem>>, vector<4x32xf32>
      %cst_43 = arith.constant dense<0.000000e+00> : vector<16x32xf32>
      %105 = tpu.matmul %91, %104, %cst_43 {dimension_numbers = #tpu.dot_dimension_numbers<[1], [0], [0], [1], [0, 0, 1, 1], [], []>} : vector<16x4xf32>, vector<4x32xf32>, vector<16x32xf32> -> vector<16x32xf32>
      %c0_44 = arith.constant 0 : index
      %c0_45 = arith.constant 0 : index
      %106 = vector.load %arg10[%c0_44, %c0_45] : memref<1x32xf32, #tpu.memory_space<vmem>>, vector<1x32xf32>
      %107 = vector.broadcast %106 : vector<1x32xf32> to vector<16x32xf32>
      %108 = arith.addf %105, %107 : vector<16x32xf32>
      %109 = vector.extract_strided_slice %98 {offsets = [0, 0], sizes = [8, 8], strides = [1, 1]} : vector<8x32xf32> to vector<8x8xf32>
      %110 = vector.shape_cast %109 : vector<8x8xf32> to vector<1x8x8xf32>
      %111 = vector.extract_strided_slice %98 {offsets = [0, 8], sizes = [8, 8], strides = [1, 1]} : vector<8x32xf32> to vector<8x8xf32>
      %112 = vector.shape_cast %111 : vector<8x8xf32> to vector<1x8x8xf32>
      %113 = vector.extract_strided_slice %98 {offsets = [0, 16], sizes = [8, 8], strides = [1, 1]} : vector<8x32xf32> to vector<8x8xf32>
      %114 = vector.shape_cast %113 : vector<8x8xf32> to vector<1x8x8xf32>
      %115 = vector.extract_strided_slice %98 {offsets = [0, 24], sizes = [8, 8], strides = [1, 1]} : vector<8x32xf32> to vector<8x8xf32>
      %116 = vector.shape_cast %115 : vector<8x8xf32> to vector<1x8x8xf32>
      %117 = vector.shape_cast %110 : vector<1x8x8xf32> to vector<1x1x8x8xf32>
      %118 = vector.shape_cast %112 : vector<1x8x8xf32> to vector<1x1x8x8xf32>
      %119 = vector.shape_cast %114 : vector<1x8x8xf32> to vector<1x1x8x8xf32>
      %120 = vector.shape_cast %116 : vector<1x8x8xf32> to vector<1x1x8x8xf32>
      %121 = tpu.concatenate %117, %118, %119, %120 in 1 : vector<1x1x8x8xf32>, vector<1x1x8x8xf32>, vector<1x1x8x8xf32>, vector<1x1x8x8xf32> -> vector<1x4x8x8xf32>
      %122 = vector.shape_cast %121 : vector<1x4x8x8xf32> to vector<4x8x8xf32>
      %123 = vector.extract_strided_slice %103 {offsets = [0, 0], sizes = [16, 8], strides = [1, 1]} : vector<16x32xf32> to vector<16x8xf32>
      %124 = vector.shape_cast %123 : vector<16x8xf32> to vector<1x16x8xf32>
      %125 = vector.extract_strided_slice %103 {offsets = [0, 8], sizes = [16, 8], strides = [1, 1]} : vector<16x32xf32> to vector<16x8xf32>
      %126 = vector.shape_cast %125 : vector<16x8xf32> to vector<1x16x8xf32>
      %127 = vector.extract_strided_slice %103 {offsets = [0, 16], sizes = [16, 8], strides = [1, 1]} : vector<16x32xf32> to vector<16x8xf32>
      %128 = vector.shape_cast %127 : vector<16x8xf32> to vector<1x16x8xf32>
      %129 = vector.extract_strided_slice %103 {offsets = [0, 24], sizes = [16, 8], strides = [1, 1]} : vector<16x32xf32> to vector<16x8xf32>
      %130 = vector.shape_cast %129 : vector<16x8xf32> to vector<1x16x8xf32>
      %131 = vector.shape_cast %124 : vector<1x16x8xf32> to vector<1x1x16x8xf32>
      %132 = vector.shape_cast %126 : vector<1x16x8xf32> to vector<1x1x16x8xf32>
      %133 = vector.shape_cast %128 : vector<1x16x8xf32> to vector<1x1x16x8xf32>
      %134 = vector.shape_cast %130 : vector<1x16x8xf32> to vector<1x1x16x8xf32>
      %135 = tpu.concatenate %131, %132, %133, %134 in 1 : vector<1x1x16x8xf32>, vector<1x1x16x8xf32>, vector<1x1x16x8xf32>, vector<1x1x16x8xf32> -> vector<1x4x16x8xf32>
      %136 = vector.shape_cast %135 : vector<1x4x16x8xf32> to vector<4x16x8xf32>
      %137 = vector.extract_strided_slice %108 {offsets = [0, 0], sizes = [16, 8], strides = [1, 1]} : vector<16x32xf32> to vector<16x8xf32>
      %138 = vector.shape_cast %137 : vector<16x8xf32> to vector<1x16x8xf32>
      %139 = vector.extract_strided_slice %108 {offsets = [0, 8], sizes = [16, 8], strides = [1, 1]} : vector<16x32xf32> to vector<16x8xf32>
      %140 = vector.shape_cast %139 : vector<16x8xf32> to vector<1x16x8xf32>
      %141 = vector.extract_strided_slice %108 {offsets = [0, 16], sizes = [16, 8], strides = [1, 1]} : vector<16x32xf32> to vector<16x8xf32>
      %142 = vector.shape_cast %141 : vector<16x8xf32> to vector<1x16x8xf32>
      %143 = vector.extract_strided_slice %108 {offsets = [0, 24], sizes = [16, 8], strides = [1, 1]} : vector<16x32xf32> to vector<16x8xf32>
      %144 = vector.shape_cast %143 : vector<16x8xf32> to vector<1x16x8xf32>
      %145 = vector.shape_cast %138 : vector<1x16x8xf32> to vector<1x1x16x8xf32>
      %146 = vector.shape_cast %140 : vector<1x16x8xf32> to vector<1x1x16x8xf32>
      %147 = vector.shape_cast %142 : vector<1x16x8xf32> to vector<1x1x16x8xf32>
      %148 = vector.shape_cast %144 : vector<1x16x8xf32> to vector<1x1x16x8xf32>
      %149 = tpu.concatenate %145, %146, %147, %148 in 1 : vector<1x1x16x8xf32>, vector<1x1x16x8xf32>, vector<1x1x16x8xf32>, vector<1x1x16x8xf32> -> vector<1x4x16x8xf32>
      %150 = vector.shape_cast %149 : vector<1x4x16x8xf32> to vector<4x16x8xf32>
      %151 = vector.shape_cast %122 : vector<4x8x8xf32> to vector<1x4x8x8xf32>
      %152 = vector.shape_cast %151 : vector<1x4x8x8xf32> to vector<4x8x8xf32>
      "tpu.trace_start"() <{level = 10 : i32, message = "bqd,bkd->bqk"}> : () -> ()
      %cst_46 = arith.constant dense<0.000000e+00> : vector<4x8x16xf32>
      %153 = tpu.matmul %152, %136, %cst_46 {dimension_numbers = #tpu.dot_dimension_numbers<[2], [2], [1], [1], [0, 0, 0, 1, 1, 1], [0], [0]>} : vector<4x8x8xf32>, vector<4x16x8xf32>, vector<4x8x16xf32> -> vector<4x8x16xf32>
      "tpu.trace_stop"() : () -> ()
      %cst_47 = arith.constant 0.176776692 : f32
      %154 = vector.broadcast %cst_47 : f32 to vector<4x8x16xf32>
      %155 = arith.mulf %153, %154 : vector<4x8x16xf32>
      %cst_48 = arith.constant dense<0xFF800000> : vector<4x8xf32>
      %156 = vector.multi_reduction <maximumf>, %155, %cst_48 [2] : vector<4x8x16xf32> to vector<4x8xf32>
      %157 = vector.shape_cast %156 : vector<4x8xf32> to vector<4x8x1xf32>
      %158 = vector.broadcast %157 : vector<4x8x1xf32> to vector<4x8x16xf32>
      %159 = arith.subf %155, %158 : vector<4x8x16xf32>
      %160 = math.exp %159 : vector<4x8x16xf32>
      %cst_49 = arith.constant dense<0.000000e+00> : vector<4x8xf32>
      %161 = vector.multi_reduction <add>, %160, %cst_49 [2] : vector<4x8x16xf32> to vector<4x8xf32>
      %162 = vector.shape_cast %161 : vector<4x8xf32> to vector<4x8x1xf32>
      %163 = tpu.reciprocal %162 {approx = true} : vector<4x8x1xf32> -> vector<4x8x1xf32>
      %164 = vector.broadcast %163 : vector<4x8x1xf32> to vector<4x8x16xf32>
      %165 = arith.mulf %160, %164 : vector<4x8x16xf32>
      "tpu.trace_start"() <{level = 10 : i32, message = "bqk,bkd->bqd"}> : () -> ()
      %cst_50 = arith.constant dense<0.000000e+00> : vector<4x8x8xf32>
      %166 = tpu.matmul %165, %150, %cst_50 {dimension_numbers = #tpu.dot_dimension_numbers<[2], [1], [1], [2], [0, 0, 0, 1, 1, 2], [0], [0]>} : vector<4x8x16xf32>, vector<4x16x8xf32>, vector<4x8x8xf32> -> vector<4x8x8xf32>
      "tpu.trace_stop"() : () -> ()
      %167 = vector.shape_cast %166 : vector<4x8x8xf32> to vector<1x4x8x8xf32>
      %168 = vector.shape_cast %122 : vector<4x8x8xf32> to vector<1x4x8x8xf32>
      %169 = arith.addf %167, %168 : vector<1x4x8x8xf32>
      %170 = vector.shape_cast %169 : vector<1x4x8x8xf32> to vector<4x8x8xf32>
      %171 = vector.shape_cast %170 : vector<4x8x8xf32> to vector<1x4x8x8xf32>
      %172 = vector.extract_strided_slice %171 {offsets = [0, 0, 0, 0], sizes = [1, 1, 8, 8], strides = [1, 1, 1, 1]} : vector<1x4x8x8xf32> to vector<1x1x8x8xf32>
      %173 = vector.shape_cast %172 : vector<1x1x8x8xf32> to vector<1x8x8xf32>
      %174 = vector.extract_strided_slice %171 {offsets = [0, 1, 0, 0], sizes = [1, 1, 8, 8], strides = [1, 1, 1, 1]} : vector<1x4x8x8xf32> to vector<1x1x8x8xf32>
      %175 = vector.shape_cast %174 : vector<1x1x8x8xf32> to vector<1x8x8xf32>
      %176 = vector.extract_strided_slice %171 {offsets = [0, 2, 0, 0], sizes = [1, 1, 8, 8], strides = [1, 1, 1, 1]} : vector<1x4x8x8xf32> to vector<1x1x8x8xf32>
      %177 = vector.shape_cast %176 : vector<1x1x8x8xf32> to vector<1x8x8xf32>
      %178 = vector.extract_strided_slice %171 {offsets = [0, 3, 0, 0], sizes = [1, 1, 8, 8], strides = [1, 1, 1, 1]} : vector<1x4x8x8xf32> to vector<1x1x8x8xf32>
      %179 = vector.shape_cast %178 : vector<1x1x8x8xf32> to vector<1x8x8xf32>
      %180 = tpu.concatenate %173, %175, %177, %179 in 2 : vector<1x8x8xf32>, vector<1x8x8xf32>, vector<1x8x8xf32>, vector<1x8x8xf32> -> vector<1x8x32xf32>
      %181 = vector.shape_cast %180 : vector<1x8x32xf32> to vector<8x32xf32>
      %c0_51 = arith.constant 0 : index
      %c0_52 = arith.constant 0 : index
      %182 = vector.load %arg11[%c0_51, %c0_52] : memref<32x32xf32, #tpu.memory_space<vmem>>, vector<32x32xf32>
      %cst_53 = arith.constant dense<0.000000e+00> : vector<8x32xf32>
      %183 = tpu.matmul %181, %182, %cst_53 {dimension_numbers = #tpu.dot_dimension_numbers<[1], [0], [0], [1], [0, 0, 1, 1], [], []>} : vector<8x32xf32>, vector<32x32xf32>, vector<8x32xf32> -> vector<8x32xf32>
      %c0_54 = arith.constant 0 : index
      %c0_55 = arith.constant 0 : index
      %184 = vector.load %arg12[%c0_54, %c0_55] : memref<1x32xf32, #tpu.memory_space<vmem>>, vector<1x32xf32>
      %185 = vector.broadcast %184 : vector<1x32xf32> to vector<8x32xf32>
      %186 = arith.addf %183, %185 : vector<8x32xf32>
      %cst_56 = arith.constant 0.000000e+00 : f32
      %187 = vector.broadcast %cst_56 : f32 to vector<8x32xf32>
      %188 = arith.maximumf %186, %187 : vector<8x32xf32>
      %189 = arith.addf %181, %188 : vector<8x32xf32>
      %c0_57 = arith.constant 0 : index
      %c0_58 = arith.constant 0 : index
      %190 = vector.load %arg15[%c0_57, %c0_58] : memref<32x32xf32, #tpu.memory_space<vmem>>, vector<32x32xf32>
      %cst_59 = arith.constant dense<0.000000e+00> : vector<8x32xf32>
      %191 = tpu.matmul %189, %190, %cst_59 {dimension_numbers = #tpu.dot_dimension_numbers<[1], [0], [0], [1], [0, 0, 1, 1], [], []>} : vector<8x32xf32>, vector<32x32xf32>, vector<8x32xf32> -> vector<8x32xf32>
      %c0_60 = arith.constant 0 : index
      %c0_61 = arith.constant 0 : index
      %192 = vector.load %arg16[%c0_60, %c0_61] : memref<1x32xf32, #tpu.memory_space<vmem>>, vector<1x32xf32>
      %193 = vector.broadcast %192 : vector<1x32xf32> to vector<8x32xf32>
      %194 = arith.addf %191, %193 : vector<8x32xf32>
      %c0_62 = arith.constant 0 : index
      %c0_63 = arith.constant 0 : index
      %195 = vector.load %arg22[%c0_62, %c0_63] : memref<8x32xf32, #tpu.memory_space<vmem>>, vector<8x32xf32>
      tpu.vector_store %arg22[%c0_62, %c0_63], %194 {strides = array<i32>} : memref<8x32xf32, #tpu.memory_space<vmem>>, vector<8x32xf32>,
      %c0_64 = arith.constant 0 : index
      %c0_65 = arith.constant 0 : index
      %196 = vector.load %arg17[%c0_64, %c0_65] : memref<32x32xf32, #tpu.memory_space<vmem>>, vector<32x32xf32>
      %cst_66 = arith.constant dense<0.000000e+00> : vector<8x32xf32>
      %197 = tpu.matmul %189, %196, %cst_66 {dimension_numbers = #tpu.dot_dimension_numbers<[1], [0], [0], [1], [0, 0, 1, 1], [], []>} : vector<8x32xf32>, vector<32x32xf32>, vector<8x32xf32> -> vector<8x32xf32>
      %c0_67 = arith.constant 0 : index
      %c0_68 = arith.constant 0 : index
      %198 = vector.load %arg18[%c0_67, %c0_68] : memref<1x32xf32, #tpu.memory_space<vmem>>, vector<1x32xf32>
      %199 = vector.broadcast %198 : vector<1x32xf32> to vector<8x32xf32>
      %200 = arith.addf %197, %199 : vector<8x32xf32>
      %c0_69 = arith.constant 0 : index
      %c0_70 = arith.constant 0 : index
      %201 = vector.load %arg23[%c0_69, %c0_70] : memref<8x32xf32, #tpu.memory_space<vmem>>, vector<8x32xf32>
      tpu.vector_store %arg23[%c0_69, %c0_70], %200 {strides = array<i32>} : memref<8x32xf32, #tpu.memory_space<vmem>>, vector<8x32xf32>,
    } else {
    }
    %c0 = arith.constant 0 : index
    %c0_1 = arith.constant 0 : index
    %c0_2 = arith.constant 0 : index
    %3 = vector.load %arg3[%c0, %c0_1, %c0_2] : memref<1x16x4xf32, #tpu.memory_space<vmem>>, vector<1x16x4xf32>
    %4 = vector.shape_cast %3 : vector<1x16x4xf32> to vector<16x4xf32>
    %c0_3 = arith.constant 0 : index
    %c0_4 = arith.constant 0 : index
    %5 = vector.load %arg13[%c0_3, %c0_4] : memref<4x32xf32, #tpu.memory_space<vmem>>, vector<4x32xf32>
    %cst = arith.constant dense<0.000000e+00> : vector<16x32xf32>
    %6 = tpu.matmul %4, %5, %cst {dimension_numbers = #tpu.dot_dimension_numbers<[1], [0], [0], [1], [0, 0, 1, 1], [], []>} : vector<16x4xf32>, vector<4x32xf32>, vector<16x32xf32> -> vector<16x32xf32>
    %c0_5 = arith.constant 0 : index
    %c0_6 = arith.constant 0 : index
    %7 = vector.load %arg14[%c0_5, %c0_6] : memref<1x32xf32, #tpu.memory_space<vmem>>, vector<1x32xf32>
    %8 = vector.broadcast %7 : vector<1x32xf32> to vector<16x32xf32>
    %9 = arith.addf %6, %8 : vector<16x32xf32>
    %10 = vector.extract_strided_slice %9 {offsets = [0, 0], sizes = [16, 8], strides = [1, 1]} : vector<16x32xf32> to vector<16x8xf32>
    %11 = vector.shape_cast %10 : vector<16x8xf32> to vector<1x16x8xf32>
    %12 = vector.extract_strided_slice %9 {offsets = [0, 8], sizes = [16, 8], strides = [1, 1]} : vector<16x32xf32> to vector<16x8xf32>
    %13 = vector.shape_cast %12 : vector<16x8xf32> to vector<1x16x8xf32>
    %14 = vector.extract_strided_slice %9 {offsets = [0, 16], sizes = [16, 8], strides = [1, 1]} : vector<16x32xf32> to vector<16x8xf32>
    %15 = vector.shape_cast %14 : vector<16x8xf32> to vector<1x16x8xf32>
    %16 = vector.extract_strided_slice %9 {offsets = [0, 24], sizes = [16, 8], strides = [1, 1]} : vector<16x32xf32> to vector<16x8xf32>
    %17 = vector.shape_cast %16 : vector<16x8xf32> to vector<1x16x8xf32>
    %18 = vector.shape_cast %11 : vector<1x16x8xf32> to vector<1x1x16x8xf32>
    %19 = vector.shape_cast %13 : vector<1x16x8xf32> to vector<1x1x16x8xf32>
    %20 = vector.shape_cast %15 : vector<1x16x8xf32> to vector<1x1x16x8xf32>
    %21 = vector.shape_cast %17 : vector<1x16x8xf32> to vector<1x1x16x8xf32>
    %22 = tpu.concatenate %18, %19, %20, %21 in 1 : vector<1x1x16x8xf32>, vector<1x1x16x8xf32>, vector<1x1x16x8xf32>, vector<1x1x16x8xf32> -> vector<1x4x16x8xf32>
    %23 = vector.shape_cast %22 : vector<1x4x16x8xf32> to vector<4x16x8xf32>
    %c0_7 = arith.constant 0 : index
    %c0_8 = arith.constant 0 : index
    %24 = vector.load %arg22[%c0_7, %c0_8] : memref<8x32xf32, #tpu.memory_space<vmem>>, vector<8x32xf32>
    %25 = vector.extract_strided_slice %24 {offsets = [0, 0], sizes = [8, 8], strides = [1, 1]} : vector<8x32xf32> to vector<8x8xf32>
    %26 = vector.shape_cast %25 : vector<8x8xf32> to vector<1x8x8xf32>
    %27 = vector.extract_strided_slice %24 {offsets = [0, 8], sizes = [8, 8], strides = [1, 1]} : vector<8x32xf32> to vector<8x8xf32>
    %28 = vector.shape_cast %27 : vector<8x8xf32> to vector<1x8x8xf32>
    %29 = vector.extract_strided_slice %24 {offsets = [0, 16], sizes = [8, 8], strides = [1, 1]} : vector<8x32xf32> to vector<8x8xf32>
    %30 = vector.shape_cast %29 : vector<8x8xf32> to vector<1x8x8xf32>
    %31 = vector.extract_strided_slice %24 {offsets = [0, 24], sizes = [8, 8], strides = [1, 1]} : vector<8x32xf32> to vector<8x8xf32>
    %32 = vector.shape_cast %31 : vector<8x8xf32> to vector<1x8x8xf32>
    %33 = vector.shape_cast %26 : vector<1x8x8xf32> to vector<1x1x8x8xf32>
    %34 = vector.shape_cast %28 : vector<1x8x8xf32> to vector<1x1x8x8xf32>
    %35 = vector.shape_cast %30 : vector<1x8x8xf32> to vector<1x1x8x8xf32>
    %36 = vector.shape_cast %32 : vector<1x8x8xf32> to vector<1x1x8x8xf32>
    %37 = tpu.concatenate %33, %34, %35, %36 in 1 : vector<1x1x8x8xf32>, vector<1x1x8x8xf32>, vector<1x1x8x8xf32>, vector<1x1x8x8xf32> -> vector<1x4x8x8xf32>
    %38 = vector.shape_cast %37 : vector<1x4x8x8xf32> to vector<4x8x8xf32>
    %c0_9 = arith.constant 0 : index
    %c0_10 = arith.constant 0 : index
    %39 = vector.load %arg23[%c0_9, %c0_10] : memref<8x32xf32, #tpu.memory_space<vmem>>, vector<8x32xf32>
    %40 = vector.extract_strided_slice %39 {offsets = [0, 0], sizes = [8, 8], strides = [1, 1]} : vector<8x32xf32> to vector<8x8xf32>
    %41 = vector.shape_cast %40 : vector<8x8xf32> to vector<1x8x8xf32>
    %42 = vector.extract_strided_slice %39 {offsets = [0, 8], sizes = [8, 8], strides = [1, 1]} : vector<8x32xf32> to vector<8x8xf32>
    %43 = vector.shape_cast %42 : vector<8x8xf32> to vector<1x8x8xf32>
    %44 = vector.extract_strided_slice %39 {offsets = [0, 16], sizes = [8, 8], strides = [1, 1]} : vector<8x32xf32> to vector<8x8xf32>
    %45 = vector.shape_cast %44 : vector<8x8xf32> to vector<1x8x8xf32>
    %46 = vector.extract_strided_slice %39 {offsets = [0, 24], sizes = [8, 8], strides = [1, 1]} : vector<8x32xf32> to vector<8x8xf32>
    %47 = vector.shape_cast %46 : vector<8x8xf32> to vector<1x8x8xf32>
    %48 = vector.shape_cast %41 : vector<1x8x8xf32> to vector<1x1x8x8xf32>
    %49 = vector.shape_cast %43 : vector<1x8x8xf32> to vector<1x1x8x8xf32>
    %50 = vector.shape_cast %45 : vector<1x8x8xf32> to vector<1x1x8x8xf32>
    %51 = vector.shape_cast %47 : vector<1x8x8xf32> to vector<1x1x8x8xf32>
    %52 = tpu.concatenate %48, %49, %50, %51 in 1 : vector<1x1x8x8xf32>, vector<1x1x8x8xf32>, vector<1x1x8x8xf32>, vector<1x1x8x8xf32> -> vector<1x4x8x8xf32>
    %53 = vector.shape_cast %52 : vector<1x4x8x8xf32> to vector<4x8x8xf32>
    "tpu.trace_start"() <{level = 10 : i32, message = "bqd,bkd->bqk"}> : () -> ()
    %cst_11 = arith.constant dense<0.000000e+00> : vector<4x16x8xf32>
    %54 = tpu.matmul %23, %38, %cst_11 {dimension_numbers = #tpu.dot_dimension_numbers<[2], [2], [1], [1], [0, 0, 0, 1, 1, 1], [0], [0]>} : vector<4x16x8xf32>, vector<4x8x8xf32>, vector<4x16x8xf32> -> vector<4x16x8xf32>
    "tpu.trace_stop"() : () -> ()
    %cst_12 = arith.constant 0.176776692 : f32
    %55 = vector.broadcast %cst_12 : f32 to vector<4x16x8xf32>
    %56 = arith.mulf %54, %55 : vector<4x16x8xf32>
    %cst_13 = arith.constant dense<0xFF800000> : vector<4x16xf32>
    %57 = vector.multi_reduction <maximumf>, %56, %cst_13 [2] : vector<4x16x8xf32> to vector<4x16xf32>
    %58 = vector.shape_cast %57 : vector<4x16xf32> to vector<4x16x1xf32>
    %59 = vector.broadcast %58 : vector<4x16x1xf32> to vector<4x16x8xf32>
    %60 = arith.subf %56, %59 : vector<4x16x8xf32>
    %61 = math.exp %60 : vector<4x16x8xf32>
    %cst_14 = arith.constant dense<0.000000e+00> : vector<4x16xf32>
    %62 = vector.multi_reduction <add>, %61, %cst_14 [2] : vector<4x16x8xf32> to vector<4x16xf32>
    %63 = vector.shape_cast %62 : vector<4x16xf32> to vector<4x16x1xf32>
    %64 = tpu.reciprocal %63 {approx = true} : vector<4x16x1xf32> -> vector<4x16x1xf32>
    %65 = vector.broadcast %64 : vector<4x16x1xf32> to vector<4x16x8xf32>
    %66 = arith.mulf %61, %65 : vector<4x16x8xf32>
    "tpu.trace_start"() <{level = 10 : i32, message = "bqk,bkd->bqd"}> : () -> ()
    %cst_15 = arith.constant dense<0.000000e+00> : vector<4x16x8xf32>
    %67 = tpu.matmul %66, %53, %cst_15 {dimension_numbers = #tpu.dot_dimension_numbers<[2], [1], [1], [2], [0, 0, 0, 1, 1, 2], [0], [0]>} : vector<4x16x8xf32>, vector<4x8x8xf32>, vector<4x16x8xf32> -> vector<4x16x8xf32>
    "tpu.trace_stop"() : () -> ()
    %68 = arith.addf %67, %23 : vector<4x16x8xf32>
    %69 = vector.shape_cast %68 : vector<4x16x8xf32> to vector<1x4x16x8xf32>
    %70 = vector.extract_strided_slice %69 {offsets = [0, 0, 0, 0], sizes = [1, 1, 16, 8], strides = [1, 1, 1, 1]} : vector<1x4x16x8xf32> to vector<1x1x16x8xf32>
    %71 = vector.shape_cast %70 : vector<1x1x16x8xf32> to vector<1x16x8xf32>
    %72 = vector.extract_strided_slice %69 {offsets = [0, 1, 0, 0], sizes = [1, 1, 16, 8], strides = [1, 1, 1, 1]} : vector<1x4x16x8xf32> to vector<1x1x16x8xf32>
    %73 = vector.shape_cast %72 : vector<1x1x16x8xf32> to vector<1x16x8xf32>
    %74 = vector.extract_strided_slice %69 {offsets = [0, 2, 0, 0], sizes = [1, 1, 16, 8], strides = [1, 1, 1, 1]} : vector<1x4x16x8xf32> to vector<1x1x16x8xf32>
    %75 = vector.shape_cast %74 : vector<1x1x16x8xf32> to vector<1x16x8xf32>
    %76 = vector.extract_strided_slice %69 {offsets = [0, 3, 0, 0], sizes = [1, 1, 16, 8], strides = [1, 1, 1, 1]} : vector<1x4x16x8xf32> to vector<1x1x16x8xf32>
    %77 = vector.shape_cast %76 : vector<1x1x16x8xf32> to vector<1x16x8xf32>
    %78 = tpu.concatenate %71, %73, %75, %77 in 2 : vector<1x16x8xf32>, vector<1x16x8xf32>, vector<1x16x8xf32>, vector<1x16x8xf32> -> vector<1x16x32xf32>
    %79 = vector.shape_cast %78 : vector<1x16x32xf32> to vector<16x32xf32>
    %c0_16 = arith.constant 0 : index
    %c0_17 = arith.constant 0 : index
    %80 = vector.load %arg19[%c0_16, %c0_17] : memref<32x32xf32, #tpu.memory_space<vmem>>, vector<32x32xf32>
    %cst_18 = arith.constant dense<0.000000e+00> : vector<16x32xf32>
    %81 = tpu.matmul %79, %80, %cst_18 {dimension_numbers = #tpu.dot_dimension_numbers<[1], [0], [0], [1], [0, 0, 1, 1], [], []>} : vector<16x32xf32>, vector<32x32xf32>, vector<16x32xf32> -> vector<16x32xf32>
    %c0_19 = arith.constant 0 : index
    %c0_20 = arith.constant 0 : index
    %82 = vector.load %arg20[%c0_19, %c0_20] : memref<1x32xf32, #tpu.memory_space<vmem>>, vector<1x32xf32>
    %83 = vector.broadcast %82 : vector<1x32xf32> to vector<16x32xf32>
    %84 = arith.addf %81, %83 : vector<16x32xf32>
    %cst_21 = arith.constant 0.000000e+00 : f32
    %85 = vector.broadcast %cst_21 : f32 to vector<16x32xf32>
    %86 = arith.maximumf %84, %85 : vector<16x32xf32>
    %87 = arith.addf %79, %86 : vector<16x32xf32>
    %88 = vector.shape_cast %87 : vector<16x32xf32> to vector<1x16x32xf32>
    %c0_22 = arith.constant 0 : index
    %c0_23 = arith.constant 0 : index
    %c0_24 = arith.constant 0 : index
    %89 = vector.load %arg21[%c0_22, %c0_23, %c0_24] : memref<1x16x32xf32, #tpu.memory_space<vmem>>, vector<1x16x32xf32>
    tpu.vector_store %arg21[%c0_22, %c0_23, %c0_24], %88 {strides = array<i32>} : memref<1x16x32xf32, #tpu.memory_space<vmem>>, vector<1x16x32xf32>,
    return
  }
  func.func @transform_0(%arg0: i32, %arg1: i32) -> (i32, i32, i32) {
    %c0_i32 = arith.constant 0 : i32
    %c0_i32_0 = arith.constant 0 : i32
    %c0_i32_1 = arith.constant 0 : i32
    return %arg0, %c0_i32, %c0_i32_0 : i32, i32, i32
  }
  func.func @transform_1(%arg0: i32, %arg1: i32) -> (i32, i32, i32) {
    %c0_i32 = arith.constant 0 : i32
    %c0_i32_0 = arith.constant 0 : i32
    return %arg0, %arg1, %c0_i32 : i32, i32, i32
  }
  func.func @transform_2(%arg0: i32, %arg1: i32) -> (i32, i32, i32) {
    %c0_i32 = arith.constant 0 : i32
    %c0_i32_0 = arith.constant 0 : i32
    %c0_i32_1 = arith.constant 0 : i32
    %c0_i32_2 = arith.constant 0 : i32
    return %c0_i32, %c0_i32_0, %c0_i32_1 : i32, i32, i32
  }
  func.func @transform_3(%arg0: i32, %arg1: i32) -> (i32, i32) {
    %c0_i32 = arith.constant 0 : i32
    %c0_i32_0 = arith.constant 0 : i32
    %c0_i32_1 = arith.constant 0 : i32
    return %c0_i32, %c0_i32_0 : i32, i32
  }
  func.func @transform_4(%arg0: i32, %arg1: i32) -> (i32, i32) {
    %c0_i32 = arith.constant 0 : i32
    %c0_i32_0 = arith.constant 0 : i32
    %c0_i32_1 = arith.constant 0 : i32
    return %c0_i32, %c0_i32_0 : i32, i32
  }
  func.func @transform_5(%arg0: i32, %arg1: i32) -> (i32, i32) {
    %c0_i32 = arith.constant 0 : i32
    %c0_i32_0 = arith.constant 0 : i32
    %c0_i32_1 = arith.constant 0 : i32
    return %c0_i32, %c0_i32_0 : i32, i32
  }
  func.func @transform_6(%arg0: i32, %arg1: i32) -> (i32, i32) {
    %c0_i32 = arith.constant 0 : i32
    %c0_i32_0 = arith.constant 0 : i32
    %c0_i32_1 = arith.constant 0 : i32
    return %c0_i32, %c0_i32_0 : i32, i32
  }
  func.func @transform_7(%arg0: i32, %arg1: i32) -> (i32, i32) {
    %c0_i32 = arith.constant 0 : i32
    %c0_i32_0 = arith.constant 0 : i32
    %c0_i32_1 = arith.constant 0 : i32
    return %c0_i32, %c0_i32_0 : i32, i32
  }
  func.func @transform_8(%arg0: i32, %arg1: i32) -> (i32, i32) {
    %c0_i32 = arith.constant 0 : i32
    %c0_i32_0 = arith.constant 0 : i32
    %c0_i32_1 = arith.constant 0 : i32
    return %c0_i32, %c0_i32_0 : i32, i32
  }
  func.func @transform_9(%arg0: i32, %arg1: i32) -> (i32, i32) {
    %c0_i32 = arith.constant 0 : i32
    %c0_i32_0 = arith.constant 0 : i32
    %c0_i32_1 = arith.constant 0 : i32
    return %c0_i32, %c0_i32_0 : i32, i32
  }
  func.func @transform_10(%arg0: i32, %arg1: i32) -> (i32, i32) {
    %c0_i32 = arith.constant 0 : i32
    %c0_i32_0 = arith.constant 0 : i32
    %c0_i32_1 = arith.constant 0 : i32
    return %c0_i32, %c0_i32_0 : i32, i32
  }
  func.func @transform_11(%arg0: i32, %arg1: i32) -> (i32, i32) {
    %c0_i32 = arith.constant 0 : i32
    %c0_i32_0 = arith.constant 0 : i32
    %c0_i32_1 = arith.constant 0 : i32
    return %c0_i32, %c0_i32_0 : i32, i32
  }
  func.func @transform_12(%arg0: i32, %arg1: i32) -> (i32, i32) {
    %c0_i32 = arith.constant 0 : i32
    %c0_i32_0 = arith.constant 0 : i32
    %c0_i32_1 = arith.constant 0 : i32
    return %c0_i32, %c0_i32_0 : i32, i32
  }
  func.func @transform_13(%arg0: i32, %arg1: i32) -> (i32, i32) {
    %c0_i32 = arith.constant 0 : i32
    %c0_i32_0 = arith.constant 0 : i32
    %c0_i32_1 = arith.constant 0 : i32
    return %c0_i32, %c0_i32_0 : i32, i32
  }
  func.func @transform_14(%arg0: i32, %arg1: i32) -> (i32, i32) {
    %c0_i32 = arith.constant 0 : i32
    %c0_i32_0 = arith.constant 0 : i32
    %c0_i32_1 = arith.constant 0 : i32
    return %c0_i32, %c0_i32_0 : i32, i32
  }
  func.func @transform_15(%arg0: i32, %arg1: i32) -> (i32, i32) {
    %c0_i32 = arith.constant 0 : i32
    %c0_i32_0 = arith.constant 0 : i32
    %c0_i32_1 = arith.constant 0 : i32
    return %c0_i32, %c0_i32_0 : i32, i32
  }
  func.func @transform_16(%arg0: i32, %arg1: i32) -> (i32, i32) {
    %c0_i32 = arith.constant 0 : i32
    %c0_i32_0 = arith.constant 0 : i32
    %c0_i32_1 = arith.constant 0 : i32
    return %c0_i32, %c0_i32_0 : i32, i32
  }
  func.func @transform_17(%arg0: i32, %arg1: i32) -> (i32, i32) {
    %c0_i32 = arith.constant 0 : i32
    %c0_i32_0 = arith.constant 0 : i32
    %c0_i32_1 = arith.constant 0 : i32
    return %c0_i32, %c0_i32_0 : i32, i32
  }
  func.func @transform_18(%arg0: i32, %arg1: i32) -> (i32, i32) {
    %c0_i32 = arith.constant 0 : i32
    %c0_i32_0 = arith.constant 0 : i32
    %c0_i32_1 = arith.constant 0 : i32
    return %c0_i32, %c0_i32_0 : i32, i32
  }
  func.func @transform_19(%arg0: i32, %arg1: i32) -> (i32, i32, i32) {
    %c0_i32 = arith.constant 0 : i32
    %c0_i32_0 = arith.constant 0 : i32
    return %arg0, %arg1, %c0_i32 : i32, i32, i32
  }
}

</mosaic_0001>

<bundles_post_ra>
// kernel: tpu_custom_call.1
= control target key start
LH: loop header
LB: loop body
LE: loop exit
PB: predicated region body
PF: predicated region fallthrough
CT: control target
= control target key end

     0   :  { %s4959_s0 = inlined_call_operand.vmem [shape: f32[2,16,4], index: 0, kind: input, shape index: {}]   ;;  %s4960_s1 = inlined_call_operand.vmem [shape: f32[2,16,4], index: 1, kind: input, shape index: {}]   ;;  %s4961_s2 = inlined_call_operand.hbm [shape: f32[1,8,32], index: 2, kind: input, shape index: {}]   ;;  %s4962_s3 = inlined_call_operand.vmem [shape: f32[32,32], index: 3, kind: input, shape index: {}]   ;;  %s4963_s4 = inlined_call_operand.vmem [shape: f32[1,32], index: 4, kind: input, shape index: {}]   ;;  %s4964_s5 = inlined_call_operand.hbm [shape: f32[4,32], index: 5, kind: input, shape index: {}]   ;;  %s4965_s6 = inlined_call_operand.hbm [shape: f32[1,32], index: 6, kind: input, shape index: {}]   ;;  %s4966_s7 = inlined_call_operand.hbm [shape: f32[4,32], index: 7, kind: input, shape index: {}]   ;;  %s4967_s8 = inlined_call_operand.hbm [shape: f32[1,32], index: 8, kind: input, shape index: {}]   ;;  %s4968_s9 = inlined_call_operand.vmem [shape: f32[32,32], index: 9, kind: input, shape index: {}]   ;;  %s4969_s10 = inlined_call_operand.hbm [shape: f32[1,32], index: 10, kind: input, shape index: {}]   ;;  %s4970_s11 = inlined_call_operand.hbm [shape: f32[4,32], index: 11, kind: input, shape index: {}]   ;;  %s4971_s12 = inlined_call_operand.hbm [shape: f32[1,32], index: 12, kind: input, shape index: {}]   ;;  %s4972_s13 = inlined_call_operand.vmem [shape: f32[32,32], index: 13, kind: input, shape index: {}]   ;;  %s4973_s14 = inlined_call_operand.vmem [shape: f32[1,32], index: 14, kind: input, shape index: {}]   ;;  %s4974_s15 = inlined_call_operand.vmem [shape: f32[32,32], index: 15, kind: input, shape index: {}]   ;;  %s4975_s16 = inlined_call_operand.vmem [shape: f32[1,32], index: 16, kind: input, shape index: {}]   ;;  %s4976_s17 = inlined_call_operand.hbm [shape: f32[32,32], index: 17, kind: input, shape index: {}]   ;;  %s4977_s18 = inlined_call_operand.vmem [shape: f32[1,32], index: 18, kind: input, shape index: {}]   ;;  %s4978_s19 = inlined_call_operand.hbm [shape: f32[2,16,32], index: 19, kind: output, shape index: {}]  }
   0x1   :  { %4996 = sst [smem:[#allocation35_spill]] %s4959_s0 }
   0x2   :  { %4997 = sst [smem:[#allocation36_spill]] %s4960_s1 }
   0x3   :  { %4998 = sst [smem:[#allocation37_spill]] %s4961_s2 }
   0x4   :  { %4999 = sst [smem:[#allocation38_spill]] %s4962_s3 }
   0x5   :  { %5000 = sst [smem:[#allocation39_spill]] %s4964_s5 }
   0x6   :  { %5001 = sst [smem:[#allocation40_spill]] %s4966_s7 }
   0x7   :  { %5002 = sst [smem:[#allocation41_spill]] %s4969_s10 }
   0x8   :  { %5003 = sst [smem:[#allocation42_spill]] %s4977_s18 }
   0x9   :  { %5004 = sst [smem:[#allocation43_spill]] %s4978_s19 }
   0xa   :  { %24 = vsyncpa [#allocation5], 0 }
   0xb   :  { %25 = vsyncpa [#allocation8], 0 }
   0xc   :  { %26 = vsyncpa [#allocation11], 0 }
   0xd   :  { %27 = vsyncpa [#allocation14], 0 }
   0xe   :  { %28 = vsyncpa [#allocation17], 0 }
   0xf   :  { %29 = vsyncpa [#allocation6], 0 }
  0x10   :  { %31 = vsyncpa [#allocation6 + $0x1], 0  ;;  %s4322_s0 = smov 0   ;;  %s4324_s30 = smov 0  }
  0x11   :  { %s4326_s20 = smov 0   ;;  %s4328_s21 = smov 0  }
  0x12   :  { %s4330_s1 = smov 0   ;;  %s4332_s22 = smov 0  }
  0x13 LB: > { %5005 = sst [smem:[#allocation26_spill]] %s4178_s0  ;;  %s3208_s2 = sadd.s32 4294967295, %s4198_s22   ;;  %s4198_s22 = sphi %s4332_s22, %s37_s22   ;;  %s4194_s1 = sphi %s4330_s1, %s5047_s1   ;;  %s4190_s21 = sphi %s4328_s21, %s5046_s21   ;;  %s4186_s20 = sphi %s4326_s20, %s5045_s20   ;;  %s4182_s30 = sphi %s4324_s30, %s5044_s30   ;;  %s4178_s0 = sphi %s4322_s0, %s5043_s0  }
  0x14   : > { %5006 = sst [smem:[#allocation27_spill]] %s4182_s30  ;;  %s3209_s23 = sadd.s32 4294967294, %s4198_s22  }
  0x15   : > { %5007 = sst [smem:[#allocation28_spill]] %s4186_s20  ;;  %s49_s24 = sadd.s32 1, %s4194_s1 }
  0x16   : > { %5008 = sst [smem:[#allocation29_spill]] %s4194_s1  ;;  %s469_s25 = sadd.s32 1, %s4186_s20 }
  0x17   : > { %5009 = sst [smem:[#allocation30_spill]] %s4198_s22  ;;  %p51_p0 = scmp.ge.s32.totalorder %s49_s24, 2 }
  0x18   : > { %p479_p1 = scmp.ne.s32.totalorder %s4186_s20, %s4182_s30  ;;  %p480_p2 = scmp.eq.s32.totalorder %s3208_s2, 1 }
  0x19   : > { %p485_p3 = scmp.ne.s32.totalorder %s4182_s30, %s4178_s0  ;;  %s5049_s24 = smov (%p51_p0, %s49_s24), 0 }
  0x1a   : > { %5010 = sst [smem:[#allocation31_spill]] %s5049_s24  ;;  %p4362_p4 = por %p480_p2, %p479_p1 }
  0x1b   : > { %p486_p5 = scmp.eq.s32.totalorder %s3209_s23, 1  ;;  %s464_s26 = ssub.s32 %s4194_s1, %s5049_s24 }
  0x1c   : > { %s5011_s3 = scalar_select %p4362_p4, 1, 0 }
  0x1d   : > { %p3210_p6 = scmp.ge.s32.totalorder %s4198_s22, 1  ;;  %p467_p7 = scmp.eq.s32.totalorder %s464_s26, 0 }
  0x1e   : > { %5012 = sst [smem:[#allocation32_spill]] %s5011_s3  ;;  %p4369_p8 = por %p486_p5, %p485_p3 }
  0x1f   : > { %p493_p9 = scmp.lt.s32.totalorder %s4198_s22, 3  ;;  %p4381_p11 = scmp.eq.s32.totalorder %s3208_s2, 0 }
  0x20   : > { %s5013_s27 = scalar_select %p4369_p8, 1, 0 }
  0x21   : > { %s4375_s28 = scalar_select %p467_p7, %s4186_s20, %s469_s25  }
  0x22   : > { %5014 = sst [smem:[#allocation33_spill]] %s5013_s27  ;;  %p4377_p10 = pnand %p3210_p6, %p493_p9 }
  0x23   : > { %5015 = sst [smem:[#allocation34_spill]] %s4375_s28  ;;  %s4200_s23 = smov [#allocation7]  }
  0x24   : > { %s5016_s29 = scalar_select %p4377_p10, 1, 0 }
  0x25   : > { %s5017_s0 = scalar_select %p4381_p11, 1, 0 }
  0x26   : > { %p3650_p12 = pneg %p4377_p10  ;;  %s523_s26 = sshll.u32 %s4200_s23, 4  ;;  %s524_s26 = int_to_ptr.vmem [resolvable:$true] %s523_s26 }
  0x27   : > { %s4201_s24 = smov [#allocation10]   ;;  %s4202_s2 = smov [#allocation13]  }
  0x28   : > { %s545_s1 = sshll.u32 %s4201_s24, 4  ;;  %p4389_p13 = pnand %p4381_p11, %p3650_p12  ;;  %s4393_s1 = int_to_ptr.vmem [resolvable:$true] %s545_s1 }
  0x29   : > { %s4395_s28 = sshll.u32 %s4202_s2, 4  ;;  %s5019_s5 = sld [smem:[#allocation39_spill]]  ;;  %s571_s28 = int_to_ptr.vmem [resolvable:$true] %s4395_s28 }
  0x2a   : > { %p4405_p1 = pneg %p4389_p13 }
  0x2f   : > { %s3848_s22 = scalar_lea.hbm %s5019_s5, 64 }
  0x30   : > { %p3849_p0 = scmp.ne.s32.totalorder %s5019_s5, %s3848_s22  ;;  %p3855_p5 = scmp.lt.u32.totalorder %s3848_s22, %s5019_s5 }
  0x32   : > { %p3851_p2 = pnand %p4405_p1, %p3849_p0 }
  0x34   : > { %p3852_p3 = pneg %p3851_p2 }
  0x36   : > { %p3857_p6 = pnand %p3855_p5, %p3852_p3 }
  0x38   : > { %3860 = shalt.err (!%p3857_p6)
}
  0x39   : > { %s3861_s20 = scalar_lea.vmem %s524_s26, 64  ;;  %p3869_p8 = scmp.lt.s32.totalorder %s524_s26, %s524_s26 }
  0x3a   : > { %p3862_p7 = scmp.ne.s32.totalorder %s524_s26, %s3861_s20  ;;  %p3870_p4 = scmp.lt.s32.totalorder %s3861_s20, %s3861_s20 }
  0x3c   : > { %p3864_p9 = pnand %p3862_p7, %p4405_p1  ;;  %p3871_p11 = por %p3870_p4, %p3869_p8 }
  0x3e   : > { %p3865_p12 = pneg %p3864_p9 }
  0x40   : > { %p3872_p10 = pnand %p3871_p11, %p3865_p12 }
  0x42   : > { %3875 = shalt.err (!%p3872_p10)
}
  0x43   : > { %3656 = dma.hbm_to_vmem [thread:$0]  (!%p4389_p13), %s5019_s5, 64, %s524_s26, [#allocation8]  }
  0x44   : > { %s5021_s7 = sld [smem:[#allocation40_spill]] }
  0x4a   : > { %s3876_s23 = scalar_lea.hbm %s5021_s7, 64 }
  0x4b   : > { %p3877_p0 = scmp.ne.s32.totalorder %s5021_s7, %s3876_s23  ;;  %p3883_p8 = scmp.lt.u32.totalorder %s3876_s23, %s5021_s7 }
  0x4d   : > { %p3879_p2 = pnand %p3877_p0, %p4405_p1 }
  0x4f   : > { %p3880_p4 = pneg %p3879_p2 }
  0x51   : > { %p3885_p10 = pnand %p3883_p8, %p3880_p4 }
  0x53   : > { %3888 = shalt.err (!%p3885_p10)
}
  0x54   : > { %s3889_s26 = scalar_lea.vmem %s4393_s1, 64  ;;  %p3897_p6 = scmp.lt.s32.totalorder %s4393_s1, %s4393_s1 }
  0x55   : > { %p3890_p11 = scmp.ne.s32.totalorder %s4393_s1, %s3889_s26  ;;  %p3898_p7 = scmp.lt.s32.totalorder %s3889_s26, %s3889_s26 }
  0x57   : > { %p3892_p3 = pnand %p3890_p11, %p4405_p1  ;;  %p3899_p9 = por %p3898_p7, %p3897_p6 }
  0x59   : > { %p3893_p5 = pneg %p3892_p3 }
  0x5b   : > { %p3900_p12 = pnand %p3899_p9, %p3893_p5 }
  0x5d   : > { %3903 = shalt.err (!%p3900_p12)
}
  0x5e   : > { %3662 = dma.hbm_to_vmem [thread:$0]  (!%p4389_p13), %s5021_s7, 64, %s4393_s1, [#allocation11]  }
  0x5f   : > { %s4203_s19 = smov [#allocation16]   ;;  %s5022_s10 = sld [smem:[#allocation41_spill]] }
  0x60   : > { %s592_s27 = sshll.u32 %s4203_s19, 4  ;;  %s593_s27 = int_to_ptr.vmem [resolvable:$true] %s592_s27 }
  0x65   : > { %s3904_s23 = scalar_lea.hbm %s5022_s10, 16 }
  0x66   : > { %p3905_p0 = scmp.ne.s32.totalorder %s5022_s10, %s3904_s23  ;;  %p3911_p8 = scmp.lt.u32.totalorder %s3904_s23, %s5022_s10 }
  0x68   : > { %p3907_p2 = pnand %p3905_p0, %p4405_p1 }
  0x6a   : > { %p3908_p4 = pneg %p3907_p2 }
  0x6c   : > { %p3913_p10 = pnand %p3911_p8, %p3908_p4 }
  0x6e   : > { %3916 = shalt.err (!%p3913_p10)
}
  0x6f   : > { %s3917_s1 = scalar_lea.vmem %s571_s28, 16  ;;  %s3924_s18 = scalar_lea.vmem %s571_s28, 32 }
  0x70   : > { %p3918_p11 = scmp.ne.s32.totalorder %s571_s28, %s3917_s1  ;;  %p3925_p6 = scmp.lt.s32.totalorder %s571_s28, %s571_s28 }
  0x71   : > { %p3926_p7 = scmp.lt.s32.totalorder %s3924_s18, %s3917_s1 }
  0x72   : > { %p3920_p3 = pnand %p3918_p11, %p4405_p1 }
  0x73   : > { %p3927_p9 = por %p3926_p7, %p3925_p6 }
  0x74   : > { %p3921_p5 = pneg %p3920_p3 }
  0x76   : > { %p3928_p12 = pnand %p3927_p9, %p3921_p5 }
  0x78   : > { %3931 = shalt.err (!%p3928_p12)
}
  0x79   : > { %3668 = dma.hbm_to_vmem [thread:$0]  (!%p4389_p13), %s5022_s10, 16, %s571_s28, [#allocation14]  }
  0x7a   : > { %s3932_s3 = scalar_lea.hbm %s4971_s12, 16 }
  0x7b   : > { %p3933_p0 = scmp.ne.s32.totalorder %s4971_s12, %s3932_s3  ;;  %p3939_p8 = scmp.lt.u32.totalorder %s3932_s3, %s4971_s12 }
  0x7d   : > { %p3935_p2 = pnand %p3933_p0, %p4405_p1 }
  0x7f   : > { %p3936_p4 = pneg %p3935_p2 }
  0x81   : > { %p3941_p10 = pnand %p3939_p8, %p3936_p4 }
  0x83   : > { %3944 = shalt.err (!%p3941_p10)
}
  0x84   : > { %s3945_s1 = scalar_lea.vmem %s593_s27, 16  ;;  %s3952_s28 = scalar_lea.vmem %s593_s27, 32 }
  0x85   : > { %p3946_p11 = scmp.ne.s32.totalorder %s593_s27, %s3945_s1  ;;  %p3953_p6 = scmp.lt.s32.totalorder %s593_s27, %s593_s27 }
  0x86   : > { %p3954_p7 = scmp.lt.s32.totalorder %s3952_s28, %s3945_s1 }
  0x87   : > { %p3948_p3 = pnand %p3946_p11, %p4405_p1 }
  0x88   : > { %p3955_p9 = por %p3954_p7, %p3953_p6 }
  0x89   : > { %p3949_p5 = pneg %p3948_p3 }
  0x8b   : > { %p3956_p12 = pnand %p3955_p9, %p3949_p5 }
  0x8d   : > { %3959 = shalt.err (!%p3956_p12)
}
  0x8e   : > { %3674 = dma.hbm_to_vmem [thread:$0]  (!%p4389_p13), %s4971_s12, 16, %s593_s27, [#allocation17]  }
  0x8f   : > { %s4204_s19 = smov [#allocation4]   ;;  %s4205_s22 = smov [#allocation9]  }
  0x90   : > { %s506_s5 = sshll.u32 %s4204_s19, 4  ;;  %s534_s3 = sshll.u32 %s4205_s22, 4  ;;  %s507_s5 = int_to_ptr.vmem [resolvable:$true] %s506_s5  ;;  %s535_s3 = int_to_ptr.vmem [resolvable:$true] %s534_s3 }
  0x91   : > { %s5023_s20 = sld [smem:[#allocation37_spill]] }
  0x97   : > { %s5024_s26 = smov %s5023_s20  ;;  %s3960_s7 = scalar_lea.hbm %s5023_s20, 128 }
  0x98   : > { %p3961_p0 = scmp.ne.s32.totalorder %s5024_s26, %s3960_s7  ;;  %p3967_p8 = scmp.lt.u32.totalorder %s3960_s7, %s5024_s26 }
  0x9a   : > { %p3963_p2 = pnand %p3961_p0, %p4405_p1 }
  0x9c   : > { %p3964_p4 = pneg %p3963_p2 }
  0x9e   : > { %p3969_p10 = pnand %p3967_p8, %p3964_p4 }
  0xa0   : > { %3972 = shalt.err (!%p3969_p10)
}
  0xa1   : > { %s3973_s27 = scalar_lea.vmem %s507_s5, 128  ;;  %p3981_p6 = scmp.lt.s32.totalorder %s507_s5, %s507_s5 }
  0xa2   : > { %p3974_p11 = scmp.ne.s32.totalorder %s507_s5, %s3973_s27  ;;  %p3982_p7 = scmp.lt.s32.totalorder %s3973_s27, %s3973_s27 }
  0xa4   : > { %p3976_p3 = pnand %p3974_p11, %p4405_p1  ;;  %p3983_p9 = por %p3982_p7, %p3981_p6 }
  0xa6   : > { %p3977_p5 = pneg %p3976_p3 }
  0xa8   : > { %p3984_p12 = pnand %p3983_p9, %p3977_p5 }
  0xaa   : > { %3987 = shalt.err (!%p3984_p12)
}
  0xab   : > { %3653 = dma.hbm_to_vmem [thread:$0]  (!%p4389_p13), %s5024_s26, 128, %s507_s5, [#allocation5]  }
  0xac   : > { %s3988_s22 = scalar_lea.hbm %s4965_s6, 16 }
  0xad   : > { %p3989_p0 = scmp.ne.s32.totalorder %s4965_s6, %s3988_s22  ;;  %p3995_p8 = scmp.lt.u32.totalorder %s3988_s22, %s4965_s6 }
  0xaf   : > { %p3991_p2 = pnand %p3989_p0, %p4405_p1 }
  0xb1   : > { %p3992_p4 = pneg %p3991_p2 }
  0xb3   : > { %p3997_p10 = pnand %p3995_p8, %p3992_p4 }
  0xb5   : > { %4000 = shalt.err (!%p3997_p10)
}
  0xb6   : > { %s4001_s28 = scalar_lea.vmem %s535_s3, 16  ;;  %s4008_s5 = scalar_lea.vmem %s535_s3, 32 }
  0xb7   : > { %p4002_p11 = scmp.ne.s32.totalorder %s535_s3, %s4001_s28  ;;  %p4009_p6 = scmp.lt.s32.totalorder %s535_s3, %s535_s3 }
  0xb8   : > { %p4010_p7 = scmp.lt.s32.totalorder %s4008_s5, %s4001_s28 }
  0xb9   : > { %p4004_p3 = pnand %p4002_p11, %p4405_p1 }
  0xba   : > { %p4011_p9 = por %p4010_p7, %p4009_p6 }
  0xbb   : > { %p4005_p5 = pneg %p4004_p3 }
  0xbd   : > { %p4012_p12 = pnand %p4011_p9, %p4005_p5 }
  0xbf   : > { %4015 = shalt.err (!%p4012_p12)
}
  0xc0   : > { %3659 = dma.hbm_to_vmem [thread:$0]  (!%p4389_p13), %s4965_s6, 16, %s535_s3, [#allocation8]  }
  0xc1   : > { %s4206_s30 = smov [#allocation12]   ;;  %s4207_s7 = smov [#allocation15]  }
  0xc2   : > { %s556_s19 = sshll.u32 %s4206_s30, 4  ;;  %s581_s10 = sshll.u32 %s4207_s7, 4  ;;  %s557_s19 = int_to_ptr.vmem [resolvable:$true] %s556_s19  ;;  %s582_s10 = int_to_ptr.vmem [resolvable:$true] %s581_s10 }
  0xc3   : > { %s4016_s2 = scalar_lea.hbm %s4967_s8, 16 }
  0xc4   : > { %p4017_p0 = scmp.ne.s32.totalorder %s4967_s8, %s4016_s2  ;;  %p4023_p8 = scmp.lt.u32.totalorder %s4016_s2, %s4967_s8 }
  0xc6   : > { %p4019_p2 = pnand %p4017_p0, %p4405_p1 }
  0xc8   : > { %p4020_p4 = pneg %p4019_p2 }
  0xca   : > { %p4025_p10 = pnand %p4023_p8, %p4020_p4 }
  0xcc   : > { %4028 = shalt.err (!%p4025_p10)
}
  0xcd   : > { %s4029_s3 = scalar_lea.vmem %s557_s19, 16  ;;  %s4036_s18 = scalar_lea.vmem %s557_s19, 32 }
  0xce   : > { %p4030_p11 = scmp.ne.s32.totalorder %s557_s19, %s4029_s3  ;;  %p4037_p6 = scmp.lt.s32.totalorder %s557_s19, %s557_s19 }
  0xcf   : > { %p4038_p7 = scmp.lt.s32.totalorder %s4036_s18, %s4029_s3 }
  0xd0   : > { %p4032_p3 = pnand %p4030_p11, %p4405_p1 }
  0xd1   : > { %p4039_p9 = por %p4038_p7, %p4037_p6 }
  0xd2   : > { %p4033_p5 = pneg %p4032_p3 }
  0xd4   : > { %p4040_p12 = pnand %p4039_p9, %p4033_p5 }
  0xd6   : > { %4043 = shalt.err (!%p4040_p12)
}
  0xd7   : > { %3665 = dma.hbm_to_vmem [thread:$0]  (!%p4389_p13), %s4967_s8, 16, %s557_s19, [#allocation11]  }
  0xd8   : > { %s4044_s23 = scalar_lea.hbm %s4970_s11, 64 }
  0xd9   : > { %p4045_p0 = scmp.ne.s32.totalorder %s4970_s11, %s4044_s23  ;;  %p4051_p8 = scmp.lt.u32.totalorder %s4044_s23, %s4970_s11 }
  0xdb   : > { %p4047_p2 = pnand %p4045_p0, %p4405_p1 }
  0xdd   : > { %p4048_p4 = pneg %p4047_p2 }
  0xdf   : > { %p4053_p10 = pnand %p4051_p8, %p4048_p4 }
  0xe1   : > { %4056 = shalt.err (!%p4053_p10)
}
  0xe2   : > { %s4057_s5 = scalar_lea.vmem %s582_s10, 64  ;;  %p4065_p6 = scmp.lt.s32.totalorder %s582_s10, %s582_s10 }
  0xe3   : > { %p4058_p11 = scmp.ne.s32.totalorder %s582_s10, %s4057_s5  ;;  %p4066_p7 = scmp.lt.s32.totalorder %s4057_s5, %s4057_s5 }
  0xe5   : > { %p4060_p3 = pnand %p4058_p11, %p4405_p1  ;;  %p4067_p9 = por %p4066_p7, %p4065_p6 }
  0xe7   : > { %p4061_p5 = pneg %p4060_p3 }
  0xe9   : > { %p4068_p12 = pnand %p4067_p9, %p4061_p5 }
  0xeb   : > { %4071 = shalt.err (!%p4068_p12)
}
  0xec   : > { %3671 = dma.hbm_to_vmem [thread:$0]  (!%p4389_p13), %s4970_s11, 64, %s582_s10, [#allocation14]  }
  0xed   : > { %s4208_s18 = smov [#allocation18]   ;;  %s4072_s22 = scalar_lea.hbm %s4976_s17, 512 }
  0xee   : > { %s614_s27 = sshll.u32 %s4208_s18, 4  ;;  %p4073_p0 = scmp.ne.s32.totalorder %s4976_s17, %s4072_s22  ;;  %s615_s27 = int_to_ptr.vmem [resolvable:$true] %s614_s27 }
  0xef   : > { %p4079_p8 = scmp.lt.u32.totalorder %s4072_s22, %s4976_s17 }
  0xf0   : > { %p4075_p2 = pnand %p4073_p0, %p4405_p1 }
  0xf2   : > { %p4076_p4 = pneg %p4075_p2 }
  0xf4   : > { %p4081_p10 = pnand %p4079_p8, %p4076_p4 }
  0xf6   : > { %4084 = shalt.err (!%p4081_p10)
}
  0xf7   : > { %s4085_s10 = scalar_lea.vmem %s615_s27, 512  ;;  %p4093_p6 = scmp.lt.s32.totalorder %s615_s27, %s615_s27 }
  0xf8   : > { %p4086_p11 = scmp.ne.s32.totalorder %s615_s27, %s4085_s10  ;;  %p4094_p7 = scmp.lt.s32.totalorder %s4085_s10, %s4085_s10 }
  0xfa   : > { %p4088_p3 = pnand %p4086_p11, %p4405_p1  ;;  %p4095_p9 = por %p4094_p7, %p4093_p6 }
  0xfc   : > { %p4089_p5 = pneg %p4088_p3 }
  0xfe   : > { %p4096_p12 = pnand %p4095_p9, %p4089_p5 }
 0x100   : > { %4099 = shalt.err (!%p4096_p12)
}
 0x101   : > { %s4209_s28 = smov 128   ;;  %s4210_s5 = smov 8  }
 0x102   : > { %3677 = dma.hbm_to_vmem [thread:$0]  (!%p4389_p13), %s4976_s17, 512, %s615_s27, [#allocation17], %s4209_s28, %s4209_s28, %s4210_s5  }
 0x103   : > { %p5025_p0 = scmp.ne.s32.totalorder %s5016_s29, 0 }
 0x104   : > { %p5026_p2 = scmp.ne.s32.totalorder (!%p5025_p0), %s5017_s0, 0 }
 0x105   : > { %654 = sbr.rel (%p5025_p0) target bundleno = 3159 (0xc57), region = 96 }
 0x10c   : > { %4153 = dma.done.wait (%p5026_p2), [#allocation5], 128  }
 0x10d   : > { %4155 = vsyncadd (%p5026_p2), [#allocation5], 4294967168 }
 0x10e   : > { %4157 = dma.done.wait (%p5026_p2), [#allocation8], 80  }
 0x10f   : > { %4159 = vsyncadd (%p5026_p2), [#allocation8], 4294967216 }
 0x110   : > { %4161 = dma.done.wait (%p5026_p2), [#allocation11], 80  }
 0x111   : > { %4163 = vsyncadd (%p5026_p2), [#allocation11], 4294967216 }
 0x112   : > { %4165 = dma.done.wait (%p5026_p2), [#allocation14], 80  }
 0x113   : > { %4167 = vsyncadd (%p5026_p2), [#allocation14], 4294967216 }
 0x114   : > { %4169 = dma.done.wait (%p5026_p2), [#allocation17], 528  }
 0x115   : > { %4171 = vsyncadd (%p5026_p2), [#allocation17], 4294966768  ;;  %p751_p13 = scmp.lt.s32.totalorder %s4190_s21, 1  ;;  %v4211_v0 = vmov 0.0|0.0   ;;  %vm4212_vm0 = vmmov 0   ;;  %v4213_v1 = vmov 0.0  }
 0x116   : > { %3552 = vmatprep.subr.bf16.mxu0 %v4211_v0  ;;  %3394 = vmatprep.mubr.msk.f32.mxu0 %vm4212_vm0, %v4213_v1  ;;  %vm874_vm1 = vcmask 1043456   ;;  %s5027_s18 = sld [smem:[#allocation35_spill]]  ;;  %vm867_vm2 = vcmask 31744   ;;  %v859_v2 = vld [vmem:[#allocation7] sm:$0xf]  ;;  %s5028_s22 = sld [smem:[#allocation38_spill]] }
 0x117   : > { %s4596_s29 = scalar_select %p751_p13, %s4190_s21, 1  ;;  %3397 = vmatprep.subr.msk.mxu1 %vm874_vm1, %v859_v2  ;;  %v953_v10 = vld [vmem:[#allocation10] sm:$0xf]  ;;  %v773_v12 = vld [vmem:[#allocation4] sm:$0xff]  ;;  %vm785_vm3 = vcmask 261120   ;;  %vm1083_vm4 = vcmask 64512  }
 0x118   : > { %3398 = vmatpush3.msk.msra.mxu1 %vm874_vm1, %v859_v2  ;;  %v3238_v13 = vld [vmem:[#allocation9] ss:$0 sm:$0xff]  ;;  %vm4636_vm5 = vmpackc.low %vm1083_vm4, %vm1083_vm4  ;;  %s4214_s19 = smov 104   ;;  %s4215_s3 = smov 120   ;;  %v3236_v21 = vld [vmem:[%s4963_s4] ss:$0 sm:$0xff] }
 0x119   : > { %s3300_s25 = sshll.u32 %s4596_s29, 4  ;;  %3402 = vmatprep.subr.msk.mxu1 %vm874_vm1, %v953_v10  ;;  %v3242_v35 = vld [vmem:[#allocation12] ss:$0 sm:$0xff]  ;;  %vm1392_vm6 = vcmask 130048   ;;  %s4217_s28 = smov 8   ;;  %vm1747_vm7 = vcmask 195584  }
 0x11a   : > { %s4218_s5 = smov 16   ;;  %s4219_s0 = smov 24  }
 0x11b   : > { %s5032_s24 = sld [smem:[#allocation36_spill]]  ;;  %s5035_s2 = sld [smem:[#allocation32_spill]] }
 0x11c   : > { %s755_s27 = scalar_lea.vmem %s5027_s18, %s3300_s25  ;;  %s5029_s23 = smov %s5028_s22  ;;  %v774_v5 = vld [vmem:[%s5028_s22] sm:$0xff] }
 0x11d   : > { %v771_v3 = vld [vmem:[%s755_s27] sm:$0xff]  ;;  %v772_v4 = vld [vmem:[%s755_s27 + $0x8] sm:$0xff]  ;;  %v776_v8 = vld [vmem:[%s5029_s23 + $0x10] sm:$0xff]  ;;  %s4216_s18 = smov 112   ;;  %s5034_s22 = sld [smem:[#allocation42_spill]] }
 0x11e   : > { %3399 = vmatprep.mubr.msk.f32.mxu1 %vm867_vm2, %v771_v3  ;;  %v775_v6 = vld [vmem:[%s5029_s23 + $0x8] sm:$0xff]  ;;  %v777_v9 = vld [vmem:[%s5029_s23 + $0x18] sm:$0xff]  ;;  %s3302_s20 = sshll.u32 %s4190_s21, 8  ;;  %s5036_s30 = sld [smem:[#allocation43_spill]] }
 0x11f   : > { %v3553_v7 = vpack.c.bf16 %v775_v6, %v774_v5  ;;  %3400 = vmatmul.mubr.msk.f32.vlgmr.msra.gmra.mrb[0].mxu1 %vm867_vm2, %v772_v4  ;;  %v3556_v11 = vpack.c.bf16 %v777_v9, %v776_v8 }
 0x120   : > { %3403 = vmatpush3.msk.msra.mxu1 %vm874_vm1, %v953_v10  ;;  %3404 = vmatprep.mubr.msk.f32.mxu1 %vm867_vm2, %v771_v3 }
 0x121   : > { %3554 = vmatpush3.bf16.msra.mxu0 %v3553_v7  ;;  %3558 = vmatprep.subr.bf16.mxu1 %v4211_v0  ;;  %s764_s27 = scalar_lea.vmem %s5032_s24, %s3300_s25  ;;  %p5038_p4 = scmp.ne.s32.totalorder %s5035_s2, 0 }
 0x122   : > { %3555 = vmatprep.subr.bf16.mxu0 %v4211_v0 }
 0x123   : > { %3405 = vmatmul.mubr.msk.f32.vlgmr.msra.gmra.mrb[2].mxu1 %vm867_vm2, %v772_v4 }
 0x124   : > { %3411 = vmatprep.mubr.msk.f32.mxu1 %vm4212_vm0, %v4213_v1  ;;  %s5037_s29 = smov %s5036_s30  ;;  %s4906_s7 = scalar_lea.hbm %s5036_s30, %s3302_s20 }
 0x125   : > { %3557 = vmatpush3.bf16.msra.mxu0 %v3556_v11 }
 0x126   : > { %3562 = vmatprep.subr.bf16.mxu0 %v4211_v0 }
 0x128   : > { %3395 = vmatmul.mubr.msk.f32.vlgmr.msra.gmra.mrb[0].mxu0 %vm785_vm3, %v773_v12 }
 0x129   : > { %3418 = vmatprep.mubr.msk.f32.mxu0 %vm4212_vm0, %v4213_v1 }
 0x1f2   : > { %v3401_v14 = vpop.f32.mrb[0].mxu1 }
 0x1f3   : > { %v950_v15 = vadd.f32 %v3401_v14, %v3238_v13  ;;  %v944_v16 = vpop.f32.mrb[1].mxu1 }
 0x1f4   : > { %v945_v17 = vadd.f32 %v3238_v13, %v944_v16 }
 0x1f6   : > { %v3559_v18 = vpack.c.bf16 %v950_v15, %v945_v17  ;;  %v3780_v19 = vpack.i.bf16 %v950_v15, %v945_v17  ;;  %v3406_v25 = vpop.f32.mrb[2].mxu1 }
 0x1f7   : > { %v1030_v26 = vpop.f32.mrb[3].mxu1  ;;  %v1036_v39 = vadd.f32 %v3406_v25, %v3242_v35 }
 0x1f8   : > { %3781 = vrot.lane.b32.xlu1 %v3780_v19, %s4214_s19  ;;  %3771 = vrot.lane.b32.xlu0 %v3780_v19, %s4215_s3  ;;  %v1031_v40 = vadd.f32 %v3242_v35, %v1030_v26 }
 0x1f9   : > { %3561 = vmatpush3.bf16.xpose.msk.msra.mxu1 %vm4636_vm5, %v3559_v18 }
 0x1fa   : > { %3566 = vmatprep.subr.bf16.mxu1 %v4211_v0  ;;  %v3575_v43 = vpack.c.bf16 %v1036_v39, %v1031_v40  ;;  %v3785_v62 = vpack.i.bf16 %v1036_v39, %v1031_v40 }
 0x1fb   : > { %v855_v22 = vpop.f32.mrb[0].mxu0 }
 0x1fc   : > { %v4648_v23 = vadd.f32 %v3236_v21, %v855_v22  ;;  %v3396_v24 = vpop.f32.mrb[1].mxu0  ;;  %3776 = vrot.lane.b32.xlu0 %v3780_v19, %s4216_s18 }
 0x1fe   : > { %1040 = vrot.lane.b32.xlu1 %v4648_v23, %s4215_s3 }
 0x200   : > { %3412 = vmatmul.mubr.msk.f32.vlgmr.msra.gmra.mrb[4].mxu1 %vm1083_vm4, %v4648_v23  ;;  %1043 = vrot.lane.b32.xlu0 %v4648_v23, %s4216_s18 }
 0x201   : > { %3425 = vmatprep.mubr.msk.f32.mxu1 %vm4212_vm0, %v4213_v1 }
 0x202   : > { %1046 = vrot.lane.b32.xlu1 %v4648_v23, %s4214_s19 }
 0x26a   : > { %v3772_v27 = vpop.permute.xlu0 %3771  ;;  %v3782_v31 = vpop.permute.xlu1 %3781 }
 0x26b   : > { %v3774_v28 = vunpack.i.h.bf16 %v3772_v27  ;;  %v3773_v29 = vunpack.i.l.bf16 %v3772_v27  ;;  %v3784_v36 = vunpack.i.h.bf16 %v3782_v31  ;;  %v3783_v37 = vunpack.i.l.bf16 %v3782_v31 }
 0x26d   : > { %v3563_v30 = vpack.c.bf16 %v3774_v28, %v3773_v29  ;;  %v3571_v41 = vpack.c.bf16 %v3784_v36, %v3783_v37 }
 0x26e   : > { %v3777_v32 = vpop.permute.xlu0 %3776 }
 0x26f   : > { %v3779_v33 = vunpack.i.h.bf16 %v3777_v32  ;;  %v3778_v34 = vunpack.i.l.bf16 %v3777_v32  ;;  %3565 = vmatpush3.bf16.xpose.msk.msra.mxu0 %vm4636_vm5, %v3563_v30 }
 0x270   : > { %3570 = vmatprep.subr.bf16.mxu0 %v4211_v0  ;;  %v4667_v42 = vpop.permute.xlu1 %1040 }
 0x271   : > { %v3567_v38 = vpack.c.bf16 %v3779_v33, %v3778_v34 }
 0x272   : > { %v4676_v44 = vpop.permute.xlu0 %1043 }
 0x273   : > { %3569 = vmatpush3.bf16.xpose.msk.msra.mxu1 %vm4636_vm5, %v3567_v38 }
 0x274   : > { %3574 = vmatprep.subr.bf16.mxu1 %v4211_v0  ;;  %v4683_v45 = vpop.permute.xlu1 %1046 }
 0x276   : > { %3419 = vmatmul.mubr.msk.f32.vlgmr.msra.gmra.mrb[2].mxu0 %vm1083_vm4, %v4667_v42 }
 0x277   : > { %3573 = vmatpush3.bf16.xpose.msk.msra.mxu0 %vm4636_vm5, %v3571_v41  ;;  %3432 = vmatprep.mubr.msk.f32.mxu0 %vm4212_vm0, %v4213_v1 }
 0x278   : > { %3583 = vmatprep.subr.bf16.mxu0 %v4211_v0 }
 0x27a   : > { %3426 = vmatmul.mubr.msk.f32.vlgmr.msra.gmra.mrb[6].mxu1 %vm1083_vm4, %v4676_v44 }
 0x27b   : > { %3576 = vmatpush3.bf16.msra.mxu1 %v3575_v43  ;;  %3439 = vmatprep.mubr.msk.f32.mxu1 %vm4212_vm0, %v4213_v1 }
 0x27c   : > { %3577 = vmatprep.subr.bf16.mxu1 %v4211_v0 }
 0x27e   : > { %3433 = vmatmul.mubr.msk.f32.vlgmr.msra.gmra.mrb[4].mxu0 %vm1083_vm4, %v4683_v45 }
 0x27f   : > { %3460 = vmatprep.mubr.msk.f32.mxu0 %vm4212_vm0, %v4213_v1 }
 0x2d3   : > { %v1156_v46 = vpop.f32.mrb[4].mxu1 }
 0x2d4   : > { %v1388_v47 = vmul.f32 0.17677669, %v1156_v46  ;;  %v3413_v48 = vpop.f32.mrb[5].mxu1 }
 0x2d6   : > { %v1393_v49 = vsel %vm1392_vm6, %v1388_v47, -inf }
 0x2d7   : > { %1394 = vmax.xlane.f32.xlu0 %v1393_v49 }
 0x349   : > { %v1232_v50 = vpop.f32.mrb[2].mxu0 }
 0x34a   : > { %v1389_v51 = vmul.f32 0.17677669, %v1232_v50  ;;  %v3420_v52 = vpop.f32.mrb[3].mxu0 }
 0x34b   : > { %v1750_v52 = vld [vmem:[%s4968_s9 + $0x8] sm:$0xff] }
 0x34c   : > { %v1396_v53 = vsel %vm1392_vm6, %v1389_v51, -inf }
 0x34d   : > { %1397 = vmax.xlane.f32.xlu1 %v1396_v53  ;;  %v1308_v54 = vpop.f32.mrb[6].mxu1 }
 0x34e   : > { %v1390_v55 = vmul.f32 0.17677669, %v1308_v54  ;;  %v3427_v56 = vpop.f32.mrb[7].mxu1  ;;  %v1751_v54 = vld [vmem:[%s4968_s9 + $0x10] sm:$0xff] }
 0x350   : > { %v1399_v57 = vsel %vm1392_vm6, %v1390_v55, -inf }
 0x351   : > { %v1384_v58 = vpop.f32.mrb[4].mxu0  ;;  %1400 = vmax.xlane.f32.xlu0 %v1399_v57 }
 0x352   : > { %v1391_v59 = vmul.f32 0.17677669, %v1384_v58  ;;  %v3434_v60 = vpop.f32.mrb[5].mxu0 }
 0x354   : > { %v1402_v61 = vsel %vm1392_vm6, %v1391_v59, -inf }
 0x355   : > { %1403 = vmax.xlane.f32.xlu0 %v1402_v61 }
 0x35e   : > { %3786 = vrot.lane.b32.xlu1 %v3785_v62, %s4215_s3 }
 0x364   : > { %v1395_v63 = vpop.xlane.xlu0 %1394 }
 0x365   : > { %v1405_v2 = vsub.f32 %v1388_v47, %v1395_v63 }
 0x367   : > { %v1409_v3 = vmul.f32 1.442695, %v1405_v2 }
 0x369   : > { %3800 = vpow2.f32 %v1409_v3 }
 0x373   : > { %v3801_v4 = vpop.eup %3800 }
 0x374   : > { %v1417_v5 = vsel %vm1392_vm6, %v3801_v4, 0.0 }
 0x382   : > { %1418 = vadd.xlane.f32.xlu1 %v1417_v5 }
 0x3da   : > { %v1398_v6 = vpop.xlane.xlu1 %1397 }
 0x3db   : > { %v1406_v7 = vsub.f32 %v1389_v51, %v1398_v6  ;;  %v1749_v51 = vld [vmem:[%s4968_s9] sm:$0xff] }
 0x3dc   : > { %v3587_v53 = vpack.c.bf16 %v1750_v52, %v1749_v51 }
 0x3dd   : > { %v1411_v8 = vmul.f32 1.442695, %v1406_v7 }
 0x3de   : > { %v1401_v9 = vpop.xlane.xlu0 %1400  ;;  %v3787_v21 = vpop.permute.xlu1 %3786 }
 0x3df   : > { %3802 = vpow2.f32 %v1411_v8  ;;  %v1407_v10 = vsub.f32 %v1390_v55, %v1401_v9  ;;  %v3789_v24 = vunpack.i.h.bf16 %v3787_v21  ;;  %v3788_v25 = vunpack.i.l.bf16 %v3787_v21  ;;  %v1752_v55 = vld [vmem:[%s4968_s9 + $0x18] sm:$0xff]  ;;  %v1920_v9 = vld [vmem:[%s4974_s15] sm:$0xff] }
 0x3e0   : > { %v3590_v56 = vpack.c.bf16 %v1752_v55, %v1751_v54 }
 0x3e1   : > { %v1413_v11 = vmul.f32 1.442695, %v1407_v10  ;;  %v3578_v28 = vpack.c.bf16 %v3789_v24, %v3788_v25  ;;  %v2002_v25 = vld [vmem:[%s764_s27] sm:$0xff] }
 0x3e2   : > { %v1404_v12 = vpop.xlane.xlu0 %1403 }
 0x3e3   : > { %3804 = vpow2.f32 %v1413_v11  ;;  %v1408_v13 = vsub.f32 %v1391_v59, %v1404_v12  ;;  %v1921_v11 = vld [vmem:[%s4974_s15 + $0x8] sm:$0xff] }
 0x3e4   : > { %v3599_v12 = vpack.c.bf16 %v1921_v11, %v1920_v9 }
 0x3e5   : > { %v1415_v14 = vmul.f32 1.442695, %v1408_v13  ;;  %v1838_v13 = vld [vmem:[%s4972_s13 + $0x18] sm:$0xff] }
 0x3e7   : > { %3806 = vpow2.f32 %v1415_v14  ;;  %v1922_v14 = vld [vmem:[%s4974_s15 + $0x10] sm:$0xff] }
 0x3e9   : > { %v3803_v15 = vpop.eup %3802 }
 0x3ea   : > { %v1420_v16 = vsel %vm1392_vm6, %v3803_v15, 0.0 }
 0x3eb   : > { %1421 = vadd.xlane.f32.xlu0 %v1420_v16  ;;  %v1923_v16 = vld [vmem:[%s4974_s15 + $0x18] sm:$0xff] }
 0x3ed   : > { %v3805_v17 = vpop.eup %3804 }
 0x3ee   : > { %v1423_v18 = vsel %vm1392_vm6, %v3805_v17, 0.0 }
 0x3ef   : > { %1424 = vadd.xlane.f32.xlu1 %v1423_v18  ;;  %v2004_v18 = vld [vmem:[#allocation15] sm:$0xf] }
 0x3f1   : > { %v3807_v19 = vpop.eup %3806 }
 0x3f2   : > { %v1426_v20 = vsel %vm1392_vm6, %v3807_v19, 0.0 }
 0x3f3   : > { %1427 = vadd.xlane.f32.xlu0 %v1426_v20 }
 0x400   : > { %3796 = vrot.lane.b32.xlu1 %v3785_v62, %s4214_s19 }
 0x409   : > { %3791 = vrot.lane.b32.xlu0 %v3785_v62, %s4216_s18 }
 0x40f   : > { %v1419_v22 = vpop.xlane.xlu1 %1418 }
 0x410   : > { %3808 = vrcp.f32 %v1419_v22 }
 0x41a   : > { %v3809_v26 = vpop.eup %3808 }
 0x41b   : > { %v1433_v27 = vmul.f32 %v3809_v26, %v3801_v4  ;;  %v2003_v26 = vld [vmem:[%s764_s27 + $0x8] sm:$0xff] }
 0x41d   : > { %3440 = vmatmul.mubr.msk.f32.vlgmr.msra.gmra.mrb[8].mxu1 %vm1392_vm6, %v1433_v27  ;;  %v3264_v27 = vld [vmem:[%s4973_s14] ss:$0 sm:$0xff] }
 0x41e   : > { %3579 = vmatpush3.bf16.msra.mxu1 %v3578_v28  ;;  %3446 = vmatprep.mubr.msk.f32.mxu1 %vm4212_vm0, %v4213_v1  ;;  %v3266_v28 = vld [vmem:[%s4975_s16] ss:$0 sm:$0xff] }
 0x41f   : > { %3580 = vmatprep.subr.bf16.mxu1 %v4211_v0 }
 0x478   : > { %v1422_v29 = vpop.xlane.xlu0 %1421 }
 0x479   : > { %3810 = vrcp.f32 %v1422_v29 }
 0x47c   : > { %v1425_v30 = vpop.xlane.xlu1 %1424 }
 0x47d   : > { %3812 = vrcp.f32 %v1425_v30 }
 0x480   : > { %v3797_v31 = vpop.permute.xlu1 %3796  ;;  %v1428_v32 = vpop.xlane.xlu0 %1427 }
 0x481   : > { %v3799_v33 = vunpack.i.h.bf16 %v3797_v31  ;;  %v3798_v34 = vunpack.i.l.bf16 %v3797_v31  ;;  %3814 = vrcp.f32 %v1428_v32 }
 0x483   : > { %v3811_v35 = vpop.eup %3810  ;;  %v3584_v36 = vpack.c.bf16 %v3799_v33, %v3798_v34 }
 0x484   : > { %v1434_v37 = vmul.f32 %v3811_v35, %v3803_v15  ;;  %v3792_v38 = vpop.permute.xlu0 %3791  ;;  %v3268_v35 = vld [vmem:[#allocation16] ss:$0 sm:$0xff] }
 0x485   : > { %v3794_v39 = vunpack.i.h.bf16 %v3792_v38  ;;  %v3793_v40 = vunpack.i.l.bf16 %v3792_v38  ;;  %3585 = vmatpush3.bf16.msra.mxu0 %v3584_v36 }
 0x486   : > { %3447 = vmatmul.mubr.msk.f32.vlgmr.msra.gmra.mrb[10].mxu1 %vm1392_vm6, %v1434_v37  ;;  %3592 = vmatprep.subr.bf16.mxu0 %v4211_v0 }
 0x487   : > { %v3813_v41 = vpop.eup %3812  ;;  %v3581_v43 = vpack.c.bf16 %v3794_v39, %v3793_v40  ;;  %3453 = vmatprep.mubr.msk.f32.mxu1 %vm4212_vm0, %v4213_v1 }
 0x488   : > { %v1435_v46 = vmul.f32 %v3813_v41, %v3805_v17  ;;  %v3602_v17 = vpack.c.bf16 %v1923_v16, %v1922_v14 }
 0x489   : > { %3582 = vmatpush3.bf16.msra.mxu1 %v3581_v43 }
 0x48a   : > { %3586 = vmatprep.subr.bf16.mxu1 %v4211_v0 }
 0x48b   : > { %v3815_v47 = vpop.eup %3814 }
 0x48c   : > { %v1436_v48 = vmul.f32 %v3815_v47, %v3807_v19  ;;  %3454 = vmatmul.mubr.msk.f32.vlgmr.msra.gmra.mrb[12].mxu1 %vm1392_vm6, %v1435_v46  ;;  %v3262_v19 = vld [vmem:[#allocation13] ss:$0 sm:$0xff] }
 0x48d   : > { %3471 = vmatprep.mubr.msk.f32.mxu1 %vm4212_vm0, %v4213_v1  ;;  %3588 = vmatpush3.bf16.msra.mxu1 %v3587_v53 }
 0x48e   : > { %3461 = vmatmul.mubr.msk.f32.vlgmr.msra.gmra.mrb[6].mxu0 %vm1392_vm6, %v1436_v48  ;;  %3589 = vmatprep.subr.bf16.mxu1 %v4211_v0 }
 0x48f   : > { %3482 = vmatprep.mubr.msk.f32.mxu0 %vm4212_vm0, %v4213_v1 }
 0x491   : > { %3591 = vmatpush3.bf16.msra.mxu1 %v3590_v56 }
 0x492   : > { %3598 = vmatprep.subr.bf16.mxu1 %v4211_v0 }
 0x4f0   : > { %v1506_v49 = vpop.f32.mrb[8].mxu1 }
 0x4f1   : > { %v3441_v50 = vpop.f32.mrb[9].mxu1 }
 0x559   : > { %v1579_v57 = vpop.f32.mrb[10].mxu1 }
 0x55a   : > { %v1730_v58 = vadd.f32 %v1579_v57, %v4667_v42  ;;  %v3448_v59 = vpop.f32.mrb[11].mxu1  ;;  %v1729_v42 = vadd.f32 %v1506_v49, %v4648_v23  ;;  %v1836_v23 = vld [vmem:[%s4972_s13 + $0x8] sm:$0xff] }
 0x55c   : > { %1734 = vrot.lane.b32.xlu1 %v1730_v58, %s4217_s28 }
 0x55f   : > { %v1652_v60 = vpop.f32.mrb[12].mxu1 }
 0x560   : > { %v1731_v61 = vadd.f32 %v1652_v60, %v4676_v44  ;;  %v3455_v62 = vpop.f32.mrb[13].mxu1 }
 0x561   : > { %v1725_v63 = vpop.f32.mrb[6].mxu0 }
 0x562   : > { %v1732_v2 = vadd.f32 %v1725_v63, %v4683_v45  ;;  %v3462_v3 = vpop.f32.mrb[7].mxu0  ;;  %1738 = vrot.lane.b32.xlu0 %v1731_v61, %s4218_s5  ;;  %v1835_v45 = vld [vmem:[%s4972_s13] sm:$0xff] }
 0x563   : > { %v3593_v10 = vpack.c.bf16 %v1836_v23, %v1835_v45 }
 0x564   : > { %1742 = vrot.lane.b32.xlu1 %v1732_v2, %s4219_s0 }
 0x565   : > { %3594 = vmatpush3.bf16.msra.mxu0 %v3593_v10 }
 0x566   : > { %3595 = vmatprep.subr.bf16.mxu0 %v4211_v0 }
 0x5ce   : > { %v1735_v4 = vpop.permute.xlu1 %1734 }
 0x5cf   : > { %v1745_v5 = vsel %vm1083_vm4, %v1729_v42, %v1735_v4 }
 0x5d4   : > { %v1739_v6 = vpop.permute.xlu0 %1738 }
 0x5d5   : > { %v1746_v44 = vsel %vm1392_vm6, %v1745_v5, %v1739_v6 }
 0x5d6   : > { %v1743_v7 = vpop.permute.xlu1 %1742 }
 0x5d7   : > { %v1748_v8 = vsel %vm1747_vm7, %v1746_v44, %v1743_v7 }
 0x5d8   : > { %3472 = vmatmul.mubr.msk.f32.vlgmr.msra.gmra.mrb[14].mxu1 %vm785_vm3, %v1748_v8 }
 0x5d9   : > { %3493 = vmatprep.mubr.msk.f32.mxu1 %vm4212_vm0, %v4213_v1  ;;  %3600 = vmatpush3.bf16.msra.mxu1 %v3599_v12  ;;  %v1837_v1 = vld [vmem:[%s4972_s13 + $0x10] sm:$0xff] }
 0x5da   : > { %3601 = vmatprep.subr.bf16.mxu1 %v4211_v0  ;;  %v3596_v15 = vpack.c.bf16 %v1838_v13, %v1837_v1 }
 0x5dc   : > { %3597 = vmatpush3.bf16.msra.mxu0 %v3596_v15 }
 0x5dd   : > { %3603 = vmatpush3.bf16.msra.mxu1 %v3602_v17  ;;  %3496 = vmatprep.subr.msk.mxu0 %vm874_vm1, %v2004_v18 }
 0x6ab   : > { %v1829_v20 = vpop.f32.mrb[14].mxu1 }
 0x6ac   : > { %v1830_v21 = vadd.f32 %v3262_v19, %v1829_v20  ;;  %v3473_v22 = vpop.f32.mrb[15].mxu1 }
 0x6ae   : > { %v1833_v0 = vmax.f32 %v1830_v21, 0.0 }
 0x6b0   : > { %v1834_v24 = vadd.f32 %v1833_v0, %v1748_v8 }
 0x6b2   : > { %3483 = vmatmul.mubr.msk.f32.vlgmr.msra.gmra.mrb[8].mxu0 %vm785_vm3, %v1834_v24  ;;  %3494 = vmatmul.mubr.msk.f32.vlgmr.msra.gmra.mrb[16].mxu1 %vm785_vm3, %v1834_v24 }
 0x6b3   : > { %3497 = vmatpush3.msk.msra.mxu0 %vm874_vm1, %v2004_v18  ;;  %3498 = vmatprep.mubr.msk.f32.mxu0 %vm867_vm2, %v2002_v25 }
 0x6b6   : > { %3499 = vmatmul.mubr.msk.f32.vlgmr.msra.gmra.mrb[10].mxu0 %vm867_vm2, %v2003_v26 }
 0x785   : > { %v1915_v29 = vpop.f32.mrb[8].mxu0  ;;  %v1997_v30 = vpop.f32.mrb[16].mxu1 }
 0x786   : > { %v1916_v31 = vadd.f32 %v3264_v27, %v1915_v29  ;;  %v1998_v32 = vadd.f32 %v3266_v28, %v1997_v30  ;;  %v3484_v33 = vpop.f32.mrb[9].mxu0  ;;  %v3495_v34 = vpop.f32.mrb[17].mxu1 }
 0x788   : > { %1919 = vst.msk [vmem:[#allocation2] sm:$0xff] %vm785_vm3, %v1916_v31  ;;  %2001 = vst.msk [vmem:[#allocation3] sm:$0xff] %vm785_vm3, %v1998_v32 }
 0x789   : > { %v3500_v36 = vpop.f32.mrb[10].mxu0 }
 0x78a   : > { %v4787_v37 = vadd.f32 %v3500_v36, %v3268_v35  ;;  %v2089_v38 = vpop.f32.mrb[11].mxu0 }
 0x78b   : > { %v4789_v39 = vadd.f32 %v3268_v35, %v2089_v38 }
 0x78c   : > { %2108 = vrot.lane.b32.xlu0 %v4787_v37, %s4216_s18  ;;  %2102 = vrot.lane.b32.xlu1 %v4787_v37, %s4215_s3 }
 0x78d   : > { %3503 = vmatprep.mubr.msk.f32.mxu0 %vm1083_vm4, %v4789_v39 }
 0x78f   : > { %v2118_v40 = vld [vmem:[#allocation2] sm:$0xff]  ;;  %v4830_v50 = vld [vmem:[#allocation3] sm:$0xff] }
 0x790   : > { %3501 = vmatprep.subr.msk.mxu0 %vm1083_vm4, %v2118_v40  ;;  %2120 = vrot.lane.b32.xlu0 %v2118_v40, %s4215_s3 }
 0x791   : > { %2100 = vrot.lane.b32.xlu1 %v4789_v39, %s4215_s3  ;;  %3502 = vmatpush3.xpose.msk.msra.mxu0 %vm1083_vm4, %v2118_v40 }
 0x794   : > { %2122 = vrot.lane.b32.xlu0 %v2118_v40, %s4216_s18  ;;  %3504 = vmatmul.mubr.msk.f32.vlgmr.msra.gmra.mrb[12].mxu0 %vm1083_vm4, %v4787_v37 }
 0x795   : > { %2106 = vrot.lane.b32.xlu1 %v4789_v39, %s4216_s18 }
 0x798   : > { %2124 = vrot.lane.b32.xlu0 %v2118_v40, %s4214_s19 }
 0x799   : > { %2112 = vrot.lane.b32.xlu1 %v4789_v39, %s4214_s19 }
 0x79c   : > { %2114 = vrot.lane.b32.xlu0 %v4787_v37, %s4214_s19 }
 0x7fe   : > { %v4812_v41 = vpop.permute.xlu0 %2108  ;;  %v4814_v43 = vpop.permute.xlu1 %2102 }
 0x802   : > { %v2121_v46 = vpop.permute.xlu0 %2120 }
 0x803   : > { %v4816_v47 = vpop.permute.xlu1 %2100  ;;  %3506 = vmatprep.subr.msk.mxu1 %vm1083_vm4, %v2121_v46 }
 0x804   : > { %3508 = vmatprep.mubr.msk.f32.mxu1 %vm1083_vm4, %v4816_v47  ;;  %3507 = vmatpush3.xpose.msk.msra.mxu1 %vm1083_vm4, %v2121_v46 }
 0x806   : > { %v2123_v48 = vpop.permute.xlu0 %2122 }
 0x807   : > { %v4822_v49 = vpop.permute.xlu1 %2106  ;;  %3509 = vmatmul.mubr.msk.f32.vlgmr.msra.gmra.mrb[18].mxu1 %vm1083_vm4, %v4814_v43  ;;  %3511 = vmatprep.subr.msk.mxu0 %vm1083_vm4, %v2123_v48 }
 0x808   : > { %3513 = vmatprep.mubr.msk.f32.mxu0 %vm1083_vm4, %v4822_v49  ;;  %3512 = vmatpush3.xpose.msk.msra.mxu0 %vm1083_vm4, %v2123_v48 }
 0x809   : > { %3521 = vmatprep.subr.mxu0 %v4830_v50 }
 0x80a   : > { %v2125_v51 = vpop.permute.xlu0 %2124 }
 0x80b   : > { %v4833_v52 = vpop.permute.xlu1 %2112  ;;  %3514 = vmatmul.mubr.msk.f32.vlgmr.msra.gmra.mrb[14].mxu0 %vm1083_vm4, %v4812_v41  ;;  %3516 = vmatprep.subr.msk.mxu1 %vm1083_vm4, %v2125_v51 }
 0x80c   : > { %3518 = vmatprep.mubr.msk.f32.mxu1 %vm1083_vm4, %v4833_v52  ;;  %3517 = vmatpush3.xpose.msk.msra.mxu1 %vm1083_vm4, %v2125_v51 }
 0x80d   : > { %3522 = vmatpush3.msra.mxu0 %v4830_v50 }
 0x80e   : > { %v4842_v53 = vpop.permute.xlu0 %2114 }
 0x80f   : > { %3519 = vmatmul.mubr.msk.f32.vlgmr.msra.gmra.mrb[20].mxu1 %vm1083_vm4, %v4842_v53 }
 0x867   : > { %v3505_v54 = vpop.f32.mrb[12].mxu0 }
 0x868   : > { %v2463_v55 = vmul.f32 0.17677669, %v3505_v54  ;;  %v2210_v56 = vpop.f32.mrb[13].mxu0 }
 0x869   : > { %v2462_v57 = vmul.f32 0.17677669, %v2210_v56 }
 0x86a   : > { %v2473_v58 = vsel %vm1083_vm4, %v2463_v55, -inf }
 0x86b   : > { %2474 = vmax.xlane.f32.xlu0 %v2473_v58  ;;  %v2470_v59 = vsel %vm1083_vm4, %v2462_v57, -inf }
 0x86c   : > { %2471 = vmax.xlane.f32.xlu1 %v2470_v59 }
 0x8da   : > { %v3510_v60 = vpop.f32.mrb[18].mxu1 }
 0x8db   : > { %v2465_v61 = vmul.f32 0.17677669, %v3510_v60  ;;  %v2291_v62 = vpop.f32.mrb[19].mxu1 }
 0x8dc   : > { %v2464_v63 = vmul.f32 0.17677669, %v2291_v62 }
 0x8dd   : > { %v2479_v2 = vsel %vm1083_vm4, %v2465_v61, -inf }
 0x8de   : > { %v3515_v3 = vpop.f32.mrb[14].mxu0  ;;  %2480 = vmax.xlane.f32.xlu1 %v2479_v2  ;;  %v2476_v4 = vsel %vm1083_vm4, %v2464_v63, -inf }
 0x8df   : > { %v2467_v42 = vmul.f32 0.17677669, %v3515_v3  ;;  %v2372_v5 = vpop.f32.mrb[15].mxu0  ;;  %2477 = vmax.xlane.f32.xlu0 %v2476_v4 }
 0x8e0   : > { %v2466_v6 = vmul.f32 0.17677669, %v2372_v5 }
 0x8e1   : > { %v2485_v44 = vsel %vm1083_vm4, %v2467_v42, -inf }
 0x8e2   : > { %2486 = vmax.xlane.f32.xlu1 %v2485_v44  ;;  %v3520_v7 = vpop.f32.mrb[20].mxu1  ;;  %v2482_v8 = vsel %vm1083_vm4, %v2466_v6, -inf }
 0x8e3   : > { %v2469_v45 = vmul.f32 0.17677669, %v3520_v7  ;;  %2483 = vmax.xlane.f32.xlu0 %v2482_v8  ;;  %v2453_v23 = vpop.f32.mrb[21].mxu1 }
 0x8e4   : > { %v2468_v9 = vmul.f32 0.17677669, %v2453_v23 }
 0x8e5   : > { %v2491_v10 = vsel %vm1083_vm4, %v2469_v45, -inf }
 0x8e6   : > { %2492 = vmax.xlane.f32.xlu1 %v2491_v10  ;;  %v2488_v11 = vsel %vm1083_vm4, %v2468_v9, -inf }
 0x8e7   : > { %2489 = vmax.xlane.f32.xlu0 %v2488_v11 }
 0x8f8   : > { %v2475_v12 = vpop.xlane.xlu0 %2474 }
 0x8f9   : > { %v2495_v1 = vsub.f32 %v2463_v55, %v2475_v12  ;;  %v2472_v13 = vpop.xlane.xlu1 %2471 }
 0x8fa   : > { %v2494_v14 = vsub.f32 %v2462_v57, %v2472_v13 }
 0x8fb   : > { %v2504_v15 = vmul.f32 1.442695, %v2495_v1 }
 0x8fc   : > { %v2502_v16 = vmul.f32 1.442695, %v2494_v14 }
 0x8fd   : > { %3816 = vpow2.f32 %v2504_v15 }
 0x8fe   : > { %3818 = vpow2.f32 %v2502_v16 }
 0x907   : > { %v3817_v17 = vpop.eup %3816 }
 0x908   : > { %v3819_v18 = vpop.eup %3818  ;;  %v2521_v19 = vsel %vm1083_vm4, %v3817_v17, 0.0 }
 0x909   : > { %2522 = vadd.xlane.f32.xlu1 %v2521_v19  ;;  %v2518_v20 = vsel %vm1083_vm4, %v3819_v18, 0.0 }
 0x90a   : > { %2519 = vadd.xlane.f32.xlu0 %v2518_v20 }
 0x96b   : > { %v2481_v21 = vpop.xlane.xlu1 %2480 }
 0x96c   : > { %v2497_v22 = vsub.f32 %v2465_v61, %v2481_v21  ;;  %v2478_v0 = vpop.xlane.xlu0 %2477 }
 0x96d   : > { %v2496_v24 = vsub.f32 %v2464_v63, %v2478_v0 }
 0x96e   : > { %v2508_v25 = vmul.f32 1.442695, %v2497_v22 }
 0x96f   : > { %v2506_v26 = vmul.f32 1.442695, %v2496_v24  ;;  %v2487_v27 = vpop.xlane.xlu1 %2486  ;;  %v2914_v24 = vld [vmem:[#allocation18] sm:$0xff] }
 0x970   : > { %3820 = vpow2.f32 %v2508_v25  ;;  %v2499_v28 = vsub.f32 %v2467_v42, %v2487_v27  ;;  %v2484_v29 = vpop.xlane.xlu0 %2483  ;;  %v2915_v25 = vld [vmem:[#allocation18 + $0x8] sm:$0xff]  ;;  %v2916_v27 = vld [vmem:[#allocation18 + $0x10] sm:$0xff] }
 0x971   : > { %3822 = vpow2.f32 %v2506_v26  ;;  %v2498_v30 = vsub.f32 %v2466_v6, %v2484_v29  ;;  %v3604_v26 = vpack.c.bf16 %v2915_v25, %v2914_v24 }
 0x972   : > { %v2512_v31 = vmul.f32 1.442695, %v2499_v28  ;;  %v2917_v28 = vld [vmem:[#allocation18 + $0x18] sm:$0xff] }
 0x973   : > { %v2510_v32 = vmul.f32 1.442695, %v2498_v30  ;;  %v2493_v33 = vpop.xlane.xlu1 %2492  ;;  %v3608_v29 = vpack.c.bf16 %v2917_v28, %v2916_v27 }
 0x974   : > { %3824 = vpow2.f32 %v2512_v31  ;;  %v2501_v34 = vsub.f32 %v2469_v45, %v2493_v33  ;;  %v2490_v35 = vpop.xlane.xlu0 %2489 }
 0x975   : > { %3826 = vpow2.f32 %v2510_v32  ;;  %v2500_v36 = vsub.f32 %v2468_v9, %v2490_v35 }
 0x976   : > { %v2516_v38 = vmul.f32 1.442695, %v2501_v34 }
 0x977   : > { %v2514_v40 = vmul.f32 1.442695, %v2500_v36 }
 0x978   : > { %3828 = vpow2.f32 %v2516_v38 }
 0x979   : > { %3830 = vpow2.f32 %v2514_v40 }
 0x97a   : > { %v3821_v46 = vpop.eup %3820 }
 0x97b   : > { %v3823_v48 = vpop.eup %3822  ;;  %v2527_v51 = vsel %vm1083_vm4, %v3821_v46, 0.0 }
 0x97c   : > { %2528 = vadd.xlane.f32.xlu1 %v2527_v51  ;;  %v2524_v54 = vsel %vm1083_vm4, %v3823_v48, 0.0 }
 0x97d   : > { %2525 = vadd.xlane.f32.xlu0 %v2524_v54 }
 0x97e   : > { %v3825_v55 = vpop.eup %3824 }
 0x97f   : > { %v3827_v56 = vpop.eup %3826  ;;  %v2533_v57 = vsel %vm1083_vm4, %v3825_v55, 0.0 }
 0x980   : > { %2534 = vadd.xlane.f32.xlu1 %v2533_v57  ;;  %v2530_v58 = vsel %vm1083_vm4, %v3827_v56, 0.0 }
 0x981   : > { %2531 = vadd.xlane.f32.xlu0 %v2530_v58 }
 0x982   : > { %v3829_v59 = vpop.eup %3828 }
 0x983   : > { %v3831_v60 = vpop.eup %3830  ;;  %v2539_v61 = vsel %vm1083_vm4, %v3829_v59, 0.0 }
 0x984   : > { %2540 = vadd.xlane.f32.xlu1 %v2539_v61  ;;  %v2536_v62 = vsel %vm1083_vm4, %v3831_v60, 0.0 }
 0x985   : > { %2537 = vadd.xlane.f32.xlu0 %v2536_v62 }
 0x995   : > { %2131 = vrot.lane.b32.xlu1 %v4830_v50, %s4216_s18 }
 0x996   : > { %v2523_v63 = vpop.xlane.xlu1 %2522 }
 0x997   : > { %3832 = vrcp.f32 %v2523_v63  ;;  %v2520_v2 = vpop.xlane.xlu0 %2519 }
 0x998   : > { %3834 = vrcp.f32 %v2520_v2 }
 0x999   : > { %2134 = vrot.lane.b32.xlu1 %v4830_v50, %s4214_s19  ;;  %s5033_s19 = sld [smem:[#allocation27_spill]] }
 0x99b   : > { %2128 = vrot.lane.b32.xlu0 %v4830_v50, %s4215_s3 }
 0x99f   : > { %s748_s3 = sand.u32 1, %s5033_s19   ;;  %s4220_s19 = smov [#allocation19]  }
 0x9a0   : > { %s3231_s18 = sshll.u32 %s748_s3, 4  ;;  %s4912_s21 = scalar_lea.sflag [#allocation6], %s748_s3 }
 0x9a1   : > { %v3833_v3 = vpop.eup %3832  ;;  %s750_s1 = scalar_lea.vmem [#allocation19], %s3231_s18  ;;  %s4104_s18 = sshll.u32 %s4220_s19, 4  ;;  %s4105_s18 = int_to_ptr.vmem [resolvable:$false] %s4104_s18 }
 0x9a2   : > { %v3835_v4 = vpop.eup %3834  ;;  %v2551_v5 = vmul.f32 %v3833_v3, %v3817_v17  ;;  %s3029_s10 = sshll.u32 %s750_s1, 4  ;;  %s4908_s10 = int_to_ptr.vmem [resolvable:$true] %s3029_s10 }
 0x9a3   : > { %v2550_v42 = vmul.f32 %v3835_v4, %v3819_v18  ;;  %s4100_s25 = scalar_lea.vmem %s4908_s10, 256  ;;  %p4107_p11 = scmp.lt.s32.totalorder %s4908_s10, %s4105_s18 }
 0x9a4   : > { %p4101_p1 = scmp.ne.s32.totalorder %s4908_s10, %s4100_s25 }
 0x9a5   : > { %3523 = vmatprep.mubr.msk.f32.mxu0 %vm1083_vm4, %v2550_v42 }
 0x9a6   : > { %3524 = vmatmul.mubr.msk.f32.vlgmr.msra.gmra.mrb[16].mxu0 %vm1083_vm4, %v2551_v5  ;;  %p4102_p8 = pnand %p4101_p1, %p5038_p4 }
 0x9a8   : > { %p4103_p10 = pneg %p4102_p8 }
 0xa09   : > { %v2529_v6 = vpop.xlane.xlu1 %2528 }
 0xa0a   : > { %3836 = vrcp.f32 %v2529_v6  ;;  %v2526_v44 = vpop.xlane.xlu0 %2525 }
 0xa0b   : > { %3838 = vrcp.f32 %v2526_v44 }
 0xa0d   : > { %v2535_v7 = vpop.xlane.xlu1 %2534 }
 0xa0e   : > { %3840 = vrcp.f32 %v2535_v7  ;;  %v2532_v8 = vpop.xlane.xlu0 %2531 }
 0xa0f   : > { %3842 = vrcp.f32 %v2532_v8 }
 0xa11   : > { %v2541_v45 = vpop.xlane.xlu1 %2540 }
 0xa12   : > { %3844 = vrcp.f32 %v2541_v45  ;;  %v2538_v23 = vpop.xlane.xlu0 %2537 }
 0xa13   : > { %3846 = vrcp.f32 %v2538_v23 }
 0xa14   : > { %v3837_v50 = vpop.eup %3836 }
 0xa15   : > { %v3839_v9 = vpop.eup %3838  ;;  %v2132_v10 = vpop.permute.xlu1 %2131  ;;  %v2553_v1 = vmul.f32 %v3837_v50, %v3821_v46 }
 0xa16   : > { %3531 = vmatprep.subr.mxu0 %v2132_v10  ;;  %v2129_v11 = vpop.permute.xlu0 %2128  ;;  %v2552_v12 = vmul.f32 %v3839_v9, %v3823_v48 }
 0xa17   : > { %3526 = vmatprep.subr.mxu1 %v2129_v11  ;;  %3532 = vmatpush3.msra.mxu0 %v2132_v10 }
 0xa18   : > { %v3841_v13 = vpop.eup %3840  ;;  %3527 = vmatpush3.msra.mxu1 %v2129_v11  ;;  %3528 = vmatprep.mubr.msk.f32.mxu1 %vm1083_vm4, %v2552_v12 }
 0xa19   : > { %v3843_v14 = vpop.eup %3842  ;;  %v2135_v15 = vpop.permute.xlu1 %2134  ;;  %3529 = vmatmul.mubr.msk.f32.vlgmr.msra.gmra.mrb[22].mxu1 %vm1083_vm4, %v2553_v1  ;;  %v2555_v17 = vmul.f32 %v3841_v13, %v3825_v55  ;;  %3605 = vmatprep.subr.bf16.mxu0 %v3604_v26 }
 0xa1a   : > { %3536 = vmatprep.subr.mxu1 %v2135_v15  ;;  %v2554_v16 = vmul.f32 %v3843_v14, %v3827_v56 }
 0xa1b   : > { %3537 = vmatpush3.msra.mxu1 %v2135_v15 }
 0xa1c   : > { %v3845_v18 = vpop.eup %3844  ;;  %3533 = vmatprep.mubr.msk.f32.mxu0 %vm1083_vm4, %v2554_v16 }
 0xa1d   : > { %v3847_v19 = vpop.eup %3846  ;;  %3534 = vmatmul.mubr.msk.f32.vlgmr.msra.gmra.mrb[18].mxu0 %vm1083_vm4, %v2555_v17  ;;  %v2557_v21 = vmul.f32 %v3845_v18, %v3829_v59 }
 0xa1e   : > { %v2556_v20 = vmul.f32 %v3847_v19, %v3831_v60  ;;  %3607 = vmatpush3.bf16.msra.mxu0 %v3604_v26 }
 0xa1f   : > { %3609 = vmatprep.subr.bf16.mxu0 %v3608_v29 }
 0xa20   : > { %3538 = vmatprep.mubr.msk.f32.mxu1 %vm1083_vm4, %v2556_v20 }
 0xa21   : > { %3539 = vmatmul.mubr.msk.f32.vlgmr.msra.gmra.mrb[24].mxu1 %vm1083_vm4, %v2557_v21 }
 0xa22   : > { %3611 = vmatpush3.bf16.msra.mxu0 %v3608_v29 }
 0xa79   : > { %v3525_v22 = vpop.f32.mrb[16].mxu0 }
 0xa7a   : > { %v2630_v0 = vpop.f32.mrb[17].mxu0  ;;  %v2636_v55 = vadd.f32 %v3525_v22, %v4787_v37  ;;  %v3292_v37 = vld [vmem:[%s5034_s22] ss:$0 sm:$0xff] }
 0xaec   : > { %v3530_v30 = vpop.f32.mrb[22].mxu1 }
 0xaed   : > { %v2717_v31 = vadd.f32 %v3530_v30, %v4814_v43  ;;  %v2711_v32 = vpop.f32.mrb[23].mxu1 }
 0xaee   : > { %v2712_v33 = vadd.f32 %v2711_v32, %v4816_v47 }
 0xaef   : > { %2886 = vrot.lane.b32.xlu1 %v2717_v31, %s4217_s28 }
 0xaf0   : > { %v3535_v34 = vpop.f32.mrb[18].mxu0  ;;  %2884 = vrot.lane.b32.xlu0 %v2712_v33, %s4217_s28 }
 0xaf1   : > { %v2798_v35 = vadd.f32 %v3535_v34, %v4812_v41  ;;  %v2792_v36 = vpop.f32.mrb[19].mxu0 }
 0xaf2   : > { %v2793_v38 = vadd.f32 %v2792_v36, %v4822_v49  ;;  %v2631_v49 = vadd.f32 %v2630_v0, %v4789_v39 }
 0xaf3   : > { %2894 = vrot.lane.b32.xlu1 %v2798_v35, %s4218_s5 }
 0xaf4   : > { %v3540_v40 = vpop.f32.mrb[24].mxu1  ;;  %2892 = vrot.lane.b32.xlu0 %v2793_v38, %s4218_s5  ;;  %s4106_s5 = scalar_lea.vmem %s4105_s18, 512 }
 0xaf5   : > { %v2879_v43 = vadd.f32 %v3540_v40, %v4842_v53  ;;  %v2873_v46 = vpop.f32.mrb[25].mxu1  ;;  %p4108_p3 = scmp.lt.s32.totalorder %s4106_s5, %s4100_s25 }
 0xaf6   : > { %v2874_v47 = vadd.f32 %v2873_v46, %v4833_v52 }
 0xaf7   : > { %2902 = vrot.lane.b32.xlu1 %v2879_v43, %s4219_s0  ;;  %p4109_p5 = por %p4108_p3, %p4107_p11 }
 0xaf8   : > { %2900 = vrot.lane.b32.xlu0 %v2874_v47, %s4219_s0 }
 0xaf9   : > { %p4110_p6 = pnand %p4109_p5, %p4103_p10 }
 0xb61   : > { %v2887_v48 = vpop.permute.xlu1 %2886 }
 0xb62   : > { %v2885_v41 = vpop.permute.xlu0 %2884  ;;  %v2907_v53 = vsel %vm1083_vm4, %v2636_v55, %v2887_v48 }
 0xb63   : > { %v2906_v56 = vsel %vm1083_vm4, %v2631_v49, %v2885_v41 }
 0xb65   : > { %v2895_v51 = vpop.permute.xlu1 %2894 }
 0xb66   : > { %v2893_v54 = vpop.permute.xlu0 %2892  ;;  %v2910_v59 = vsel %vm1392_vm6, %v2907_v53, %v2895_v51 }
 0xb67   : > { %v2909_v52 = vsel %vm1392_vm6, %v2906_v56, %v2893_v54 }
 0xb69   : > { %v2903_v57 = vpop.permute.xlu1 %2902 }
 0xb6a   : > { %v2901_v58 = vpop.permute.xlu0 %2900  ;;  %v2913_v61 = vsel %vm1747_vm7, %v2910_v59, %v2903_v57 }
 0xb6b   : > { %v2912_v60 = vsel %vm1747_vm7, %v2909_v52, %v2901_v58 }
 0xb6c   : > { %3549 = vmatprep.mubr.msk.f32.mxu0 %vm785_vm3, %v2912_v60 }
 0xb6d   : > { %3550 = vmatmul.mubr.msk.f32.vlgmr.msra.gmra.mrb[20].mxu0 %vm785_vm3, %v2913_v61 }
 0xc40   : > { %v3551_v39 = vpop.f32.mrb[20].mxu0 }
 0xc41   : > { %v3004_v62 = vadd.f32 %v3551_v39, %v3292_v37  ;;  %v2998_v63 = vpop.f32.mrb[21].mxu0 }
 0xc42   : > { %v2999_v2 = vadd.f32 %v3292_v37, %v2998_v63 }
 0xc43   : > { %v3008_v3 = vmax.f32 %v3004_v62, 0.0 }
 0xc44   : > { %v3007_v4 = vmax.f32 %v2999_v2, 0.0 }
 0xc45   : > { %v3010_v42 = vadd.f32 %v3008_v3, %v2913_v61 }
 0xc46   : > { %v3009_v5 = vadd.f32 %v3007_v4, %v2912_v60 }
 0xc47   : > { %3012 = vst.msk [vmem:[%s750_s1 + $0x8] sm:$0xff] %vm785_vm3, %v3010_v42 }
 0xc48   : > { %3011 = vst.msk [vmem:[%s750_s1] sm:$0xff] %vm785_vm3, %v3009_v5 }
 0xc49   : > { %4113 = shalt.err (!%p4110_p6)
}
 0xc4a   : > { %s4114_s3 = scalar_lea.hbm %s4906_s7, 256  ;;  %s4118_s20 = scalar_lea.hbm %s5037_s29, 512 }
 0xc4b   : > { %p4115_p7 = scmp.ne.s32.totalorder %s4906_s7, %s4114_s3  ;;  %p4119_p0 = scmp.lt.u32.totalorder %s4906_s7, %s5037_s29 }
 0xc4c   : > { %p4120_p2 = scmp.lt.u32.totalorder %s4118_s20, %s4114_s3  ;;  %p4122_p1 = scmp.lt.u32.totalorder %s4114_s3, %s4906_s7 }
 0xc4d   : > { %p4116_p9 = pnand %p4115_p7, %p5038_p4 }
 0xc4e   : > { %p4121_p13 = por %p4120_p2, %p4119_p0 }
 0xc4f   : > { %p4117_p12 = pneg %p4116_p9 }
 0xc50   : > { %p4123_p8 = por %p4122_p1, %p4121_p13 }
 0xc52   : > { %p4124_p10 = pnand %p4123_p8, %p4117_p12 }
 0xc54   : > { %4127 = shalt.err (!%p4124_p10)
}
 0xc55   : > { %s4221_s27 = smov 128  }
 0xc56   : > { %3648 = dma.vmem_to_hbm [thread:$0]  (%p5038_p4), %s4908_s10, 256, %s4906_s7, %s4912_s21, %s4221_s27, %s4221_s27, %s4217_s28  }
 0xc57 PF: > { %s5039_s30 = sld [smem:[#allocation30_spill]]  ;;  %s5040_s25 = sld [smem:[#allocation26_spill]] }
 0xc58   : > { %s5041_s19 = sld [smem:[#allocation33_spill]] }
 0xc5d   : > { %p3700_p11 = scmp.ge.s32.totalorder %s5039_s30, 2  ;;  %s3044_s18 = sand.u32 1, %s5040_s25  }
 0xc5e   : > { %p5042_p3 = scmp.ne.s32.totalorder %s5041_s19, 0  ;;  %s3045_s5 = scalar_lea.sflag [#allocation6], %s3044_s18 }
 0xc60   : > { %p3679_p5 = pnand %p3700_p11, %p5042_p3 }
 0xc62   : > { %4173 = dma.done.wait (!%p3679_p5), %s3045_s5, 256  }
 0xc63   : > { %4175 = vsyncadd (!%p3679_p5), %s3045_s5, 4294967040  ;;  %s37_s22 = sadd.s32 1, %s5039_s30   ;;  %s5043_s0 = sld [smem:[#allocation27_spill]] }
 0xc64   : > { %p34_p6 = scmp.ge.s32.totalorder %s37_s22, 4   ;;  %s5044_s30 = sld [smem:[#allocation28_spill]] }
 0xc65   : > { %s5045_s20 = sld [smem:[#allocation34_spill]]  ;;  %s5046_s21 = sld [smem:[#allocation29_spill]] }
 0xc66   : > { %s5047_s1 = sld [smem:[#allocation31_spill]]  ;;  %36 = sbr.rel (!%p34_p6) target bundleno = 19 (0x13), region = 175 }
 0xc6d   :  { %3050 = vsyncpa [#allocation5], 1 }
 0xc6e   :  { %3052 = vsyncpa [#allocation5 + $0x1], 1 }
 0xc6f   :  { %3053 = vsyncpa [#allocation8], 1 }
 0xc70   :  { %3054 = vsyncpa [#allocation11], 1 }
 0xc71   :  { %3055 = vsyncpa [#allocation14], 1 }
 0xc72   :  { %3056 = vsyncpa [#allocation17], 1 }
 0xc73   :  { %3057 = vsyncpa [#allocation6], 1 }
 0xc74   :  { %3059 = vsyncpa [#allocation6 + $0x1], 1 }

// kernel: tpu_custom_call.1
= control target key start
LH: loop header
LB: loop body
LE: loop exit
PB: predicated region body
PF: predicated region fallthrough
CT: control target
= control target key end

     0   :  { %s4959_s0 = inlined_call_operand.vmem [shape: f32[2,16,4], index: 0, kind: input, shape index: {}]   ;;  %s4960_s1 = inlined_call_operand.vmem [shape: f32[2,16,4], index: 1, kind: input, shape index: {}]   ;;  %s4961_s2 = inlined_call_operand.hbm [shape: f32[1,8,32], index: 2, kind: input, shape index: {}]   ;;  %s4962_s3 = inlined_call_operand.vmem [shape: f32[32,32], index: 3, kind: input, shape index: {}]   ;;  %s4963_s4 = inlined_call_operand.vmem [shape: f32[1,32], index: 4, kind: input, shape index: {}]   ;;  %s4964_s5 = inlined_call_operand.hbm [shape: f32[4,32], index: 5, kind: input, shape index: {}]   ;;  %s4965_s6 = inlined_call_operand.hbm [shape: f32[1,32], index: 6, kind: input, shape index: {}]   ;;  %s4966_s7 = inlined_call_operand.hbm [shape: f32[4,32], index: 7, kind: input, shape index: {}]   ;;  %s4967_s8 = inlined_call_operand.hbm [shape: f32[1,32], index: 8, kind: input, shape index: {}]   ;;  %s4968_s9 = inlined_call_operand.vmem [shape: f32[32,32], index: 9, kind: input, shape index: {}]   ;;  %s4969_s10 = inlined_call_operand.hbm [shape: f32[1,32], index: 10, kind: input, shape index: {}]   ;;  %s4970_s11 = inlined_call_operand.hbm [shape: f32[4,32], index: 11, kind: input, shape index: {}]   ;;  %s4971_s12 = inlined_call_operand.hbm [shape: f32[1,32], index: 12, kind: input, shape index: {}]   ;;  %s4972_s13 = inlined_call_operand.vmem [shape: f32[32,32], index: 13, kind: input, shape index: {}]   ;;  %s4973_s14 = inlined_call_operand.vmem [shape: f32[1,32], index: 14, kind: input, shape index: {}]   ;;  %s4974_s15 = inlined_call_operand.vmem [shape: f32[32,32], index: 15, kind: input, shape index: {}]   ;;  %s4975_s16 = inlined_call_operand.vmem [shape: f32[1,32], index: 16, kind: input, shape index: {}]   ;;  %s4976_s17 = inlined_call_operand.hbm [shape: f32[32,32], index: 17, kind: input, shape index: {}]   ;;  %s4977_s18 = inlined_call_operand.vmem [shape: f32[1,32], index: 18, kind: input, shape index: {}]   ;;  %s4978_s19 = inlined_call_operand.hbm [shape: f32[2,16,32], index: 19, kind: output, shape index: {}]  }
   0x1   :  { %4996 = sst [smem:[#allocation35_spill]] %s4959_s0 }
   0x2   :  { %4997 = sst [smem:[#allocation36_spill]] %s4960_s1 }
   0x3   :  { %4998 = sst [smem:[#allocation37_spill]] %s4961_s2 }
   0x4   :  { %4999 = sst [smem:[#allocation38_spill]] %s4962_s3 }
   0x5   :  { %5000 = sst [smem:[#allocation39_spill]] %s4964_s5 }
   0x6   :  { %5001 = sst [smem:[#allocation40_spill]] %s4966_s7 }
   0x7   :  { %5002 = sst [smem:[#allocation41_spill]] %s4969_s10 }
   0x8   :  { %5003 = sst [smem:[#allocation42_spill]] %s4977_s18 }
   0x9   :  { %5004 = sst [smem:[#allocation43_spill]] %s4978_s19 }
   0xa   :  { %24 = vsyncpa [#allocation5], 0 }
   0xb   :  { %25 = vsyncpa [#allocation8], 0 }
   0xc   :  { %26 = vsyncpa [#allocation11], 0 }
   0xd   :  { %27 = vsyncpa [#allocation14], 0 }
   0xe   :  { %28 = vsyncpa [#allocation17], 0 }
   0xf   :  { %29 = vsyncpa [#allocation6], 0 }
  0x10   :  { %31 = vsyncpa [#allocation6 + $0x1], 0  ;;  %s4322_s0 = smov 0   ;;  %s4324_s30 = smov 0  }
  0x11   :  { %s4326_s20 = smov 0   ;;  %s4328_s21 = smov 0  }
  0x12   :  { %s4330_s1 = smov 0   ;;  %s4332_s22 = smov 0  }
  0x13 LB: > { %5005 = sst [smem:[#allocation26_spill]] %s4178_s0  ;;  %s3208_s2 = sadd.s32 4294967295, %s4198_s22   ;;  %s4198_s22 = sphi %s4332_s22, %s37_s22   ;;  %s4194_s1 = sphi %s4330_s1, %s5047_s1   ;;  %s4190_s21 = sphi %s4328_s21, %s5046_s21   ;;  %s4186_s20 = sphi %s4326_s20, %s5045_s20   ;;  %s4182_s30 = sphi %s4324_s30, %s5044_s30   ;;  %s4178_s0 = sphi %s4322_s0, %s5043_s0  }
  0x14   : > { %5006 = sst [smem:[#allocation27_spill]] %s4182_s30  ;;  %s3209_s23 = sadd.s32 4294967294, %s4198_s22  }
  0x15   : > { %5007 = sst [smem:[#allocation28_spill]] %s4186_s20  ;;  %s49_s24 = sadd.s32 1, %s4194_s1 }
  0x16   : > { %5008 = sst [smem:[#allocation29_spill]] %s4194_s1  ;;  %s469_s25 = sadd.s32 1, %s4186_s20 }
  0x17   : > { %5009 = sst [smem:[#allocation30_spill]] %s4198_s22  ;;  %p51_p0 = scmp.ge.s32.totalorder %s49_s24, 2 }
  0x18   : > { %p479_p1 = scmp.ne.s32.totalorder %s4186_s20, %s4182_s30  ;;  %p480_p2 = scmp.eq.s32.totalorder %s3208_s2, 1 }
  0x19   : > { %p485_p3 = scmp.ne.s32.totalorder %s4182_s30, %s4178_s0  ;;  %s5049_s24 = smov (%p51_p0, %s49_s24), 0 }
  0x1a   : > { %5010 = sst [smem:[#allocation31_spill]] %s5049_s24  ;;  %p4362_p4 = por %p480_p2, %p479_p1 }
  0x1b   : > { %p486_p5 = scmp.eq.s32.totalorder %s3209_s23, 1  ;;  %s464_s26 = ssub.s32 %s4194_s1, %s5049_s24 }
  0x1c   : > { %s5011_s3 = scalar_select %p4362_p4, 1, 0 }
  0x1d   : > { %p3210_p6 = scmp.ge.s32.totalorder %s4198_s22, 1  ;;  %p467_p7 = scmp.eq.s32.totalorder %s464_s26, 0 }
  0x1e   : > { %5012 = sst [smem:[#allocation32_spill]] %s5011_s3  ;;  %p4369_p8 = por %p486_p5, %p485_p3 }
  0x1f   : > { %p493_p9 = scmp.lt.s32.totalorder %s4198_s22, 3  ;;  %p4381_p11 = scmp.eq.s32.totalorder %s3208_s2, 0 }
  0x20   : > { %s5013_s27 = scalar_select %p4369_p8, 1, 0 }
  0x21   : > { %s4375_s28 = scalar_select %p467_p7, %s4186_s20, %s469_s25  }
  0x22   : > { %5014 = sst [smem:[#allocation33_spill]] %s5013_s27  ;;  %p4377_p10 = pnand %p3210_p6, %p493_p9 }
  0x23   : > { %5015 = sst [smem:[#allocation34_spill]] %s4375_s28  ;;  %s4200_s23 = smov [#allocation7]  }
  0x24   : > { %s5016_s29 = scalar_select %p4377_p10, 1, 0 }
  0x25   : > { %s5017_s0 = scalar_select %p4381_p11, 1, 0 }
  0x26   : > { %p3650_p12 = pneg %p4377_p10  ;;  %s523_s26 = sshll.u32 %s4200_s23, 4  ;;  %s524_s26 = int_to_ptr.vmem [resolvable:$true] %s523_s26 }
  0x27   : > { %s4201_s24 = smov [#allocation10]   ;;  %s4202_s2 = smov [#allocation13]  }
  0x28   : > { %s545_s1 = sshll.u32 %s4201_s24, 4  ;;  %p4389_p13 = pnand %p4381_p11, %p3650_p12  ;;  %s4393_s1 = int_to_ptr.vmem [resolvable:$true] %s545_s1 }
  0x29   : > { %s4395_s28 = sshll.u32 %s4202_s2, 4  ;;  %s5019_s5 = sld [smem:[#allocation39_spill]]  ;;  %s571_s28 = int_to_ptr.vmem [resolvable:$true] %s4395_s28 }
  0x2a   : > { %p4405_p1 = pneg %p4389_p13 }
  0x2f   : > { %s3848_s22 = scalar_lea.hbm %s5019_s5, 64 }
  0x30   : > { %p3849_p0 = scmp.ne.s32.totalorder %s5019_s5, %s3848_s22  ;;  %p3855_p5 = scmp.lt.u32.totalorder %s3848_s22, %s5019_s5 }
  0x32   : > { %p3851_p2 = pnand %p4405_p1, %p3849_p0 }
  0x34   : > { %p3852_p3 = pneg %p3851_p2 }
  0x36   : > { %p3857_p6 = pnand %p3855_p5, %p3852_p3 }
  0x38   : > { %3860 = shalt.err (!%p3857_p6)
}
  0x39   : > { %s3861_s20 = scalar_lea.vmem %s524_s26, 64  ;;  %p3869_p8 = scmp.lt.s32.totalorder %s524_s26, %s524_s26 }
  0x3a   : > { %p3862_p7 = scmp.ne.s32.totalorder %s524_s26, %s3861_s20  ;;  %p3870_p4 = scmp.lt.s32.totalorder %s3861_s20, %s3861_s20 }
  0x3c   : > { %p3864_p9 = pnand %p3862_p7, %p4405_p1  ;;  %p3871_p11 = por %p3870_p4, %p3869_p8 }
  0x3e   : > { %p3865_p12 = pneg %p3864_p9 }
  0x40   : > { %p3872_p10 = pnand %p3871_p11, %p3865_p12 }
  0x42   : > { %3875 = shalt.err (!%p3872_p10)
}
  0x43   : > { %3656 = dma.hbm_to_vmem [thread:$0]  (!%p4389_p13), %s5019_s5, 64, %s524_s26, [#allocation8]  }
  0x44   : > { %s5021_s7 = sld [smem:[#allocation40_spill]] }
  0x4a   : > { %s3876_s23 = scalar_lea.hbm %s5021_s7, 64 }
  0x4b   : > { %p3877_p0 = scmp.ne.s32.totalorder %s5021_s7, %s3876_s23  ;;  %p3883_p8 = scmp.lt.u32.totalorder %s3876_s23, %s5021_s7 }
  0x4d   : > { %p3879_p2 = pnand %p3877_p0, %p4405_p1 }
  0x4f   : > { %p3880_p4 = pneg %p3879_p2 }
  0x51   : > { %p3885_p10 = pnand %p3883_p8, %p3880_p4 }
  0x53   : > { %3888 = shalt.err (!%p3885_p10)
}
  0x54   : > { %s3889_s26 = scalar_lea.vmem %s4393_s1, 64  ;;  %p3897_p6 = scmp.lt.s32.totalorder %s4393_s1, %s4393_s1 }
  0x55   : > { %p3890_p11 = scmp.ne.s32.totalorder %s4393_s1, %s3889_s26  ;;  %p3898_p7 = scmp.lt.s32.totalorder %s3889_s26, %s3889_s26 }
  0x57   : > { %p3892_p3 = pnand %p3890_p11, %p4405_p1  ;;  %p3899_p9 = por %p3898_p7, %p3897_p6 }
  0x59   : > { %p3893_p5 = pneg %p3892_p3 }
  0x5b   : > { %p3900_p12 = pnand %p3899_p9, %p3893_p5 }
  0x5d   : > { %3903 = shalt.err (!%p3900_p12)
}
  0x5e   : > { %3662 = dma.hbm_to_vmem [thread:$0]  (!%p4389_p13), %s5021_s7, 64, %s4393_s1, [#allocation11]  }
  0x5f   : > { %s4203_s19 = smov [#allocation16]   ;;  %s5022_s10 = sld [smem:[#allocation41_spill]] }
  0x60   : > { %s592_s27 = sshll.u32 %s4203_s19, 4  ;;  %s593_s27 = int_to_ptr.vmem [resolvable:$true] %s592_s27 }
  0x65   : > { %s3904_s23 = scalar_lea.hbm %s5022_s10, 16 }
  0x66   : > { %p3905_p0 = scmp.ne.s32.totalorder %s5022_s10, %s3904_s23  ;;  %p3911_p8 = scmp.lt.u32.totalorder %s3904_s23, %s5022_s10 }
  0x68   : > { %p3907_p2 = pnand %p3905_p0, %p4405_p1 }
  0x6a   : > { %p3908_p4 = pneg %p3907_p2 }
  0x6c   : > { %p3913_p10 = pnand %p3911_p8, %p3908_p4 }
  0x6e   : > { %3916 = shalt.err (!%p3913_p10)
}
  0x6f   : > { %s3917_s1 = scalar_lea.vmem %s571_s28, 16  ;;  %s3924_s18 = scalar_lea.vmem %s571_s28, 32 }
  0x70   : > { %p3918_p11 = scmp.ne.s32.totalorder %s571_s28, %s3917_s1  ;;  %p3925_p6 = scmp.lt.s32.totalorder %s571_s28, %s571_s28 }
  0x71   : > { %p3926_p7 = scmp.lt.s32.totalorder %s3924_s18, %s3917_s1 }
  0x72   : > { %p3920_p3 = pnand %p3918_p11, %p4405_p1 }
  0x73   : > { %p3927_p9 = por %p3926_p7, %p3925_p6 }
  0x74   : > { %p3921_p5 = pneg %p3920_p3 }
  0x76   : > { %p3928_p12 = pnand %p3927_p9, %p3921_p5 }
  0x78   : > { %3931 = shalt.err (!%p3928_p12)
}
  0x79   : > { %3668 = dma.hbm_to_vmem [thread:$0]  (!%p4389_p13), %s5022_s10, 16, %s571_s28, [#allocation14]  }
  0x7a   : > { %s3932_s3 = scalar_lea.hbm %s4971_s12, 16 }
  0x7b   : > { %p3933_p0 = scmp.ne.s32.totalorder %s4971_s12, %s3932_s3  ;;  %p3939_p8 = scmp.lt.u32.totalorder %s3932_s3, %s4971_s12 }
  0x7d   : > { %p3935_p2 = pnand %p3933_p0, %p4405_p1 }
  0x7f   : > { %p3936_p4 = pneg %p3935_p2 }
  0x81   : > { %p3941_p10 = pnand %p3939_p8, %p3936_p4 }
  0x83   : > { %3944 = shalt.err (!%p3941_p10)
}
  0x84   : > { %s3945_s1 = scalar_lea.vmem %s593_s27, 16  ;;  %s3952_s28 = scalar_lea.vmem %s593_s27, 32 }
  0x85   : > { %p3946_p11 = scmp.ne.s32.totalorder %s593_s27, %s3945_s1  ;;  %p3953_p6 = scmp.lt.s32.totalorder %s593_s27, %s593_s27 }
  0x86   : > { %p3954_p7 = scmp.lt.s32.totalorder %s3952_s28, %s3945_s1 }
  0x87   : > { %p3948_p3 = pnand %p3946_p11, %p4405_p1 }
  0x88   : > { %p3955_p9 = por %p3954_p7, %p3953_p6 }
  0x89   : > { %p3949_p5 = pneg %p3948_p3 }
  0x8b   : > { %p3956_p12 = pnand %p3955_p9, %p3949_p5 }
  0x8d   : > { %3959 = shalt.err (!%p3956_p12)
}
  0x8e   : > { %3674 = dma.hbm_to_vmem [thread:$0]  (!%p4389_p13), %s4971_s12, 16, %s593_s27, [#allocation17]  }
  0x8f   : > { %s4204_s19 = smov [#allocation4]   ;;  %s4205_s22 = smov [#allocation9]  }
  0x90   : > { %s506_s5 = sshll.u32 %s4204_s19, 4  ;;  %s534_s3 = sshll.u32 %s4205_s22, 4  ;;  %s507_s5 = int_to_ptr.vmem [resolvable:$true] %s506_s5  ;;  %s535_s3 = int_to_ptr.vmem [resolvable:$true] %s534_s3 }
  0x91   : > { %s5023_s20 = sld [smem:[#allocation37_spill]] }
  0x97   : > { %s5024_s26 = smov %s5023_s20  ;;  %s3960_s7 = scalar_lea.hbm %s5023_s20, 128 }
  0x98   : > { %p3961_p0 = scmp.ne.s32.totalorder %s5024_s26, %s3960_s7  ;;  %p3967_p8 = scmp.lt.u32.totalorder %s3960_s7, %s5024_s26 }
  0x9a   : > { %p3963_p2 = pnand %p3961_p0, %p4405_p1 }
  0x9c   : > { %p3964_p4 = pneg %p3963_p2 }
  0x9e   : > { %p3969_p10 = pnand %p3967_p8, %p3964_p4 }
  0xa0   : > { %3972 = shalt.err (!%p3969_p10)
}
  0xa1   : > { %s3973_s27 = scalar_lea.vmem %s507_s5, 128  ;;  %p3981_p6 = scmp.lt.s32.totalorder %s507_s5, %s507_s5 }
  0xa2   : > { %p3974_p11 = scmp.ne.s32.totalorder %s507_s5, %s3973_s27  ;;  %p3982_p7 = scmp.lt.s32.totalorder %s3973_s27, %s3973_s27 }
  0xa4   : > { %p3976_p3 = pnand %p3974_p11, %p4405_p1  ;;  %p3983_p9 = por %p3982_p7, %p3981_p6 }
  0xa6   : > { %p3977_p5 = pneg %p3976_p3 }
  0xa8   : > { %p3984_p12 = pnand %p3983_p9, %p3977_p5 }
  0xaa   : > { %3987 = shalt.err (!%p3984_p12)
}
  0xab   : > { %3653 = dma.hbm_to_vmem [thread:$0]  (!%p4389_p13), %s5024_s26, 128, %s507_s5, [#allocation5]  }
  0xac   : > { %s3988_s22 = scalar_lea.hbm %s4965_s6, 16 }
  0xad   : > { %p3989_p0 = scmp.ne.s32.totalorder %s4965_s6, %s3988_s22  ;;  %p3995_p8 = scmp.lt.u32.totalorder %s3988_s22, %s4965_s6 }
  0xaf   : > { %p3991_p2 = pnand %p3989_p0, %p4405_p1 }
  0xb1   : > { %p3992_p4 = pneg %p3991_p2 }
  0xb3   : > { %p3997_p10 = pnand %p3995_p8, %p3992_p4 }
  0xb5   : > { %4000 = shalt.err (!%p3997_p10)
}
  0xb6   : > { %s4001_s28 = scalar_lea.vmem %s535_s3, 16  ;;  %s4008_s5 = scalar_lea.vmem %s535_s3, 32 }
  0xb7   : > { %p4002_p11 = scmp.ne.s32.totalorder %s535_s3, %s4001_s28  ;;  %p4009_p6 = scmp.lt.s32.totalorder %s535_s3, %s535_s3 }
  0xb8   : > { %p4010_p7 = scmp.lt.s32.totalorder %s4008_s5, %s4001_s28 }
  0xb9   : > { %p4004_p3 = pnand %p4002_p11, %p4405_p1 }
  0xba   : > { %p4011_p9 = por %p4010_p7, %p4009_p6 }
  0xbb   : > { %p4005_p5 = pneg %p4004_p3 }
  0xbd   : > { %p4012_p12 = pnand %p4011_p9, %p4005_p5 }
  0xbf   : > { %4015 = shalt.err (!%p4012_p12)
}
  0xc0   : > { %3659 = dma.hbm_to_vmem [thread:$0]  (!%p4389_p13), %s4965_s6, 16, %s535_s3, [#allocation8]  }
  0xc1   : > { %s4206_s30 = smov [#allocation12]   ;;  %s4207_s7 = smov [#allocation15]  }
  0xc2   : > { %s556_s19 = sshll.u32 %s4206_s30, 4  ;;  %s581_s10 = sshll.u32 %s4207_s7, 4  ;;  %s557_s19 = int_to_ptr.vmem [resolvable:$true] %s556_s19  ;;  %s582_s10 = int_to_ptr.vmem [resolvable:$true] %s581_s10 }
  0xc3   : > { %s4016_s2 = scalar_lea.hbm %s4967_s8, 16 }
  0xc4   : > { %p4017_p0 = scmp.ne.s32.totalorder %s4967_s8, %s4016_s2  ;;  %p4023_p8 = scmp.lt.u32.totalorder %s4016_s2, %s4967_s8 }
  0xc6   : > { %p4019_p2 = pnand %p4017_p0, %p4405_p1 }
  0xc8   : > { %p4020_p4 = pneg %p4019_p2 }
  0xca   : > { %p4025_p10 = pnand %p4023_p8, %p4020_p4 }
  0xcc   : > { %4028 = shalt.err (!%p4025_p10)
}
  0xcd   : > { %s4029_s3 = scalar_lea.vmem %s557_s19, 16  ;;  %s4036_s18 = scalar_lea.vmem %s557_s19, 32 }
  0xce   : > { %p4030_p11 = scmp.ne.s32.totalorder %s557_s19, %s4029_s3  ;;  %p4037_p6 = scmp.lt.s32.totalorder %s557_s19, %s557_s19 }
  0xcf   : > { %p4038_p7 = scmp.lt.s32.totalorder %s4036_s18, %s4029_s3 }
  0xd0   : > { %p4032_p3 = pnand %p4030_p11, %p4405_p1 }
  0xd1   : > { %p4039_p9 = por %p4038_p7, %p4037_p6 }
  0xd2   : > { %p4033_p5 = pneg %p4032_p3 }
  0xd4   : > { %p4040_p12 = pnand %p4039_p9, %p4033_p5 }
  0xd6   : > { %4043 = shalt.err (!%p4040_p12)
}
  0xd7   : > { %3665 = dma.hbm_to_vmem [thread:$0]  (!%p4389_p13), %s4967_s8, 16, %s557_s19, [#allocation11]  }
  0xd8   : > { %s4044_s23 = scalar_lea.hbm %s4970_s11, 64 }
  0xd9   : > { %p4045_p0 = scmp.ne.s32.totalorder %s4970_s11, %s4044_s23  ;;  %p4051_p8 = scmp.lt.u32.totalorder %s4044_s23, %s4970_s11 }
  0xdb   : > { %p4047_p2 = pnand %p4045_p0, %p4405_p1 }
  0xdd   : > { %p4048_p4 = pneg %p4047_p2 }
  0xdf   : > { %p4053_p10 = pnand %p4051_p8, %p4048_p4 }
  0xe1   : > { %4056 = shalt.err (!%p4053_p10)
}
  0xe2   : > { %s4057_s5 = scalar_lea.vmem %s582_s10, 64  ;;  %p4065_p6 = scmp.lt.s32.totalorder %s582_s10, %s582_s10 }
  0xe3   : > { %p4058_p11 = scmp.ne.s32.totalorder %s582_s10, %s4057_s5  ;;  %p4066_p7 = scmp.lt.s32.totalorder %s4057_s5, %s4057_s5 }
  0xe5   : > { %p4060_p3 = pnand %p4058_p11, %p4405_p1  ;;  %p4067_p9 = por %p4066_p7, %p4065_p6 }
  0xe7   : > { %p4061_p5 = pneg %p4060_p3 }
  0xe9   : > { %p4068_p12 = pnand %p4067_p9, %p4061_p5 }
  0xeb   : > { %4071 = shalt.err (!%p4068_p12)
}
  0xec   : > { %3671 = dma.hbm_to_vmem [thread:$0]  (!%p4389_p13), %s4970_s11, 64, %s582_s10, [#allocation14]  }
  0xed   : > { %s4208_s18 = smov [#allocation18]   ;;  %s4072_s22 = scalar_lea.hbm %s4976_s17, 512 }
  0xee   : > { %s614_s27 = sshll.u32 %s4208_s18, 4  ;;  %p4073_p0 = scmp.ne.s32.totalorder %s4976_s17, %s4072_s22  ;;  %s615_s27 = int_to_ptr.vmem [resolvable:$true] %s614_s27 }
  0xef   : > { %p4079_p8 = scmp.lt.u32.totalorder %s4072_s22, %s4976_s17 }
  0xf0   : > { %p4075_p2 = pnand %p4073_p0, %p4405_p1 }
  0xf2   : > { %p4076_p4 = pneg %p4075_p2 }
  0xf4   : > { %p4081_p10 = pnand %p4079_p8, %p4076_p4 }
  0xf6   : > { %4084 = shalt.err (!%p4081_p10)
}
  0xf7   : > { %s4085_s10 = scalar_lea.vmem %s615_s27, 512  ;;  %p4093_p6 = scmp.lt.s32.totalorder %s615_s27, %s615_s27 }
  0xf8   : > { %p4086_p11 = scmp.ne.s32.totalorder %s615_s27, %s4085_s10  ;;  %p4094_p7 = scmp.lt.s32.totalorder %s4085_s10, %s4085_s10 }
  0xfa   : > { %p4088_p3 = pnand %p4086_p11, %p4405_p1  ;;  %p4095_p9 = por %p4094_p7, %p4093_p6 }
  0xfc   : > { %p4089_p5 = pneg %p4088_p3 }
  0xfe   : > { %p4096_p12 = pnand %p4095_p9, %p4089_p5 }
 0x100   : > { %4099 = shalt.err (!%p4096_p12)
}
 0x101   : > { %s4209_s28 = smov 128   ;;  %s4210_s5 = smov 8  }
 0x102   : > { %3677 = dma.hbm_to_vmem [thread:$0]  (!%p4389_p13), %s4976_s17, 512, %s615_s27, [#allocation17], %s4209_s28, %s4209_s28, %s4210_s5  }
 0x103   : > { %p5025_p0 = scmp.ne.s32.totalorder %s5016_s29, 0 }
 0x104   : > { %p5026_p2 = scmp.ne.s32.totalorder (!%p5025_p0), %s5017_s0, 0 }
 0x105   : > { %654 = sbr.rel (%p5025_p0) target bundleno = 3159 (0xc57), region = 96 }
 0x10c   : > { %4153 = dma.done.wait (%p5026_p2), [#allocation5], 128  }
 0x10d   : > { %4155 = vsyncadd (%p5026_p2), [#allocation5], 4294967168 }
 0x10e   : > { %4157 = dma.done.wait (%p5026_p2), [#allocation8], 80  }
 0x10f   : > { %4159 = vsyncadd (%p5026_p2), [#allocation8], 4294967216 }
 0x110   : > { %4161 = dma.done.wait (%p5026_p2), [#allocation11], 80  }
 0x111   : > { %4163 = vsyncadd (%p5026_p2), [#allocation11], 4294967216 }
 0x112   : > { %4165 = dma.done.wait (%p5026_p2), [#allocation14], 80  }
 0x113   : > { %4167 = vsyncadd (%p5026_p2), [#allocation14], 4294967216 }
 0x114   : > { %4169 = dma.done.wait (%p5026_p2), [#allocation17], 528  }
 0x115   : > { %4171 = vsyncadd (%p5026_p2), [#allocation17], 4294966768  ;;  %p751_p13 = scmp.lt.s32.totalorder %s4190_s21, 1  ;;  %v4211_v0 = vmov 0.0|0.0   ;;  %vm4212_vm0 = vmmov 0   ;;  %v4213_v1 = vmov 0.0  }
 0x116   : > { %3552 = vmatprep.subr.bf16.mxu0 %v4211_v0  ;;  %3394 = vmatprep.mubr.msk.f32.mxu0 %vm4212_vm0, %v4213_v1  ;;  %vm874_vm1 = vcmask 1043456   ;;  %s5027_s18 = sld [smem:[#allocation35_spill]]  ;;  %vm867_vm2 = vcmask 31744   ;;  %v859_v2 = vld [vmem:[#allocation7] sm:$0xf]  ;;  %s5028_s22 = sld [smem:[#allocation38_spill]] }
 0x117   : > { %s4596_s29 = scalar_select %p751_p13, %s4190_s21, 1  ;;  %3397 = vmatprep.subr.msk.mxu1 %vm874_vm1, %v859_v2  ;;  %v953_v10 = vld [vmem:[#allocation10] sm:$0xf]  ;;  %v773_v12 = vld [vmem:[#allocation4] sm:$0xff]  ;;  %vm785_vm3 = vcmask 261120   ;;  %vm1083_vm4 = vcmask 64512  }
 0x118   : > { %3398 = vmatpush3.msk.msra.mxu1 %vm874_vm1, %v859_v2  ;;  %v3238_v13 = vld [vmem:[#allocation9] ss:$0 sm:$0xff]  ;;  %vm4636_vm5 = vmpackc.low %vm1083_vm4, %vm1083_vm4  ;;  %s4214_s19 = smov 104   ;;  %s4215_s3 = smov 120   ;;  %v3236_v21 = vld [vmem:[%s4963_s4] ss:$0 sm:$0xff] }
 0x119   : > { %s3300_s25 = sshll.u32 %s4596_s29, 4  ;;  %3402 = vmatprep.subr.msk.mxu1 %vm874_vm1, %v953_v10  ;;  %v3242_v35 = vld [vmem:[#allocation12] ss:$0 sm:$0xff]  ;;  %vm1392_vm6 = vcmask 130048   ;;  %s4217_s28 = smov 8   ;;  %vm1747_vm7 = vcmask 195584  }
 0x11a   : > { %s4218_s5 = smov 16   ;;  %s4219_s0 = smov 24  }
 0x11b   : > { %s5032_s24 = sld [smem:[#allocation36_spill]]  ;;  %s5035_s2 = sld [smem:[#allocation32_spill]] }
 0x11c   : > { %s755_s27 = scalar_lea.vmem %s5027_s18, %s3300_s25  ;;  %s5029_s23 = smov %s5028_s22  ;;  %v774_v5 = vld [vmem:[%s5028_s22] sm:$0xff] }
 0x11d   : > { %v771_v3 = vld [vmem:[%s755_s27] sm:$0xff]  ;;  %v772_v4 = vld [vmem:[%s755_s27 + $0x8] sm:$0xff]  ;;  %v776_v8 = vld [vmem:[%s5029_s23 + $0x10] sm:$0xff]  ;;  %s4216_s18 = smov 112   ;;  %s5034_s22 = sld [smem:[#allocation42_spill]] }
 0x11e   : > { %3399 = vmatprep.mubr.msk.f32.mxu1 %vm867_vm2, %v771_v3  ;;  %v775_v6 = vld [vmem:[%s5029_s23 + $0x8] sm:$0xff]  ;;  %v777_v9 = vld [vmem:[%s5029_s23 + $0x18] sm:$0xff]  ;;  %s3302_s20 = sshll.u32 %s4190_s21, 8  ;;  %s5036_s30 = sld [smem:[#allocation43_spill]] }
 0x11f   : > { %v3553_v7 = vpack.c.bf16 %v775_v6, %v774_v5  ;;  %3400 = vmatmul.mubr.msk.f32.vlgmr.msra.gmra.mrb[0].mxu1 %vm867_vm2, %v772_v4  ;;  %v3556_v11 = vpack.c.bf16 %v777_v9, %v776_v8 }
 0x120   : > { %3403 = vmatpush3.msk.msra.mxu1 %vm874_vm1, %v953_v10  ;;  %3404 = vmatprep.mubr.msk.f32.mxu1 %vm867_vm2, %v771_v3 }
 0x121   : > { %3554 = vmatpush3.bf16.msra.mxu0 %v3553_v7  ;;  %3558 = vmatprep.subr.bf16.mxu1 %v4211_v0  ;;  %s764_s27 = scalar_lea.vmem %s5032_s24, %s3300_s25  ;;  %p5038_p4 = scmp.ne.s32.totalorder %s5035_s2, 0 }
 0x122   : > { %3555 = vmatprep.subr.bf16.mxu0 %v4211_v0 }
 0x123   : > { %3405 = vmatmul.mubr.msk.f32.vlgmr.msra.gmra.mrb[2].mxu1 %vm867_vm2, %v772_v4 }
 0x124   : > { %3411 = vmatprep.mubr.msk.f32.mxu1 %vm4212_vm0, %v4213_v1  ;;  %s5037_s29 = smov %s5036_s30  ;;  %s4906_s7 = scalar_lea.hbm %s5036_s30, %s3302_s20 }
 0x125   : > { %3557 = vmatpush3.bf16.msra.mxu0 %v3556_v11 }
 0x126   : > { %3562 = vmatprep.subr.bf16.mxu0 %v4211_v0 }
 0x128   : > { %3395 = vmatmul.mubr.msk.f32.vlgmr.msra.gmra.mrb[0].mxu0 %vm785_vm3, %v773_v12 }
 0x129   : > { %3418 = vmatprep.mubr.msk.f32.mxu0 %vm4212_vm0, %v4213_v1 }
 0x1f2   : > { %v3401_v14 = vpop.f32.mrb[0].mxu1 }
 0x1f3   : > { %v950_v15 = vadd.f32 %v3401_v14, %v3238_v13  ;;  %v944_v16 = vpop.f32.mrb[1].mxu1 }
 0x1f4   : > { %v945_v17 = vadd.f32 %v3238_v13, %v944_v16 }
 0x1f6   : > { %v3559_v18 = vpack.c.bf16 %v950_v15, %v945_v17  ;;  %v3780_v19 = vpack.i.bf16 %v950_v15, %v945_v17  ;;  %v3406_v25 = vpop.f32.mrb[2].mxu1 }
 0x1f7   : > { %v1030_v26 = vpop.f32.mrb[3].mxu1  ;;  %v1036_v39 = vadd.f32 %v3406_v25, %v3242_v35 }
 0x1f8   : > { %3781 = vrot.lane.b32.xlu1 %v3780_v19, %s4214_s19  ;;  %3771 = vrot.lane.b32.xlu0 %v3780_v19, %s4215_s3  ;;  %v1031_v40 = vadd.f32 %v3242_v35, %v1030_v26 }
 0x1f9   : > { %3561 = vmatpush3.bf16.xpose.msk.msra.mxu1 %vm4636_vm5, %v3559_v18 }
 0x1fa   : > { %3566 = vmatprep.subr.bf16.mxu1 %v4211_v0  ;;  %v3575_v43 = vpack.c.bf16 %v1036_v39, %v1031_v40  ;;  %v3785_v62 = vpack.i.bf16 %v1036_v39, %v1031_v40 }
 0x1fb   : > { %v855_v22 = vpop.f32.mrb[0].mxu0 }
 0x1fc   : > { %v4648_v23 = vadd.f32 %v3236_v21, %v855_v22  ;;  %v3396_v24 = vpop.f32.mrb[1].mxu0  ;;  %3776 = vrot.lane.b32.xlu0 %v3780_v19, %s4216_s18 }
 0x1fe   : > { %1040 = vrot.lane.b32.xlu1 %v4648_v23, %s4215_s3 }
 0x200   : > { %3412 = vmatmul.mubr.msk.f32.vlgmr.msra.gmra.mrb[4].mxu1 %vm1083_vm4, %v4648_v23  ;;  %1043 = vrot.lane.b32.xlu0 %v4648_v23, %s4216_s18 }
 0x201   : > { %3425 = vmatprep.mubr.msk.f32.mxu1 %vm4212_vm0, %v4213_v1 }
 0x202   : > { %1046 = vrot.lane.b32.xlu1 %v4648_v23, %s4214_s19 }
 0x26a   : > { %v3772_v27 = vpop.permute.xlu0 %3771  ;;  %v3782_v31 = vpop.permute.xlu1 %3781 }
 0x26b   : > { %v3774_v28 = vunpack.i.h.bf16 %v3772_v27  ;;  %v3773_v29 = vunpack.i.l.bf16 %v3772_v27  ;;  %v3784_v36 = vunpack.i.h.bf16 %v3782_v31  ;;  %v3783_v37 = vunpack.i.l.bf16 %v3782_v31 }
 0x26d   : > { %v3563_v30 = vpack.c.bf16 %v3774_v28, %v3773_v29  ;;  %v3571_v41 = vpack.c.bf16 %v3784_v36, %v3783_v37 }
 0x26e   : > { %v3777_v32 = vpop.permute.xlu0 %3776 }
 0x26f   : > { %v3779_v33 = vunpack.i.h.bf16 %v3777_v32  ;;  %v3778_v34 = vunpack.i.l.bf16 %v3777_v32  ;;  %3565 = vmatpush3.bf16.xpose.msk.msra.mxu0 %vm4636_vm5, %v3563_v30 }
 0x270   : > { %3570 = vmatprep.subr.bf16.mxu0 %v4211_v0  ;;  %v4667_v42 = vpop.permute.xlu1 %1040 }
 0x271   : > { %v3567_v38 = vpack.c.bf16 %v3779_v33, %v3778_v34 }
 0x272   : > { %v4676_v44 = vpop.permute.xlu0 %1043 }
 0x273   : > { %3569 = vmatpush3.bf16.xpose.msk.msra.mxu1 %vm4636_vm5, %v3567_v38 }
 0x274   : > { %3574 = vmatprep.subr.bf16.mxu1 %v4211_v0  ;;  %v4683_v45 = vpop.permute.xlu1 %1046 }
 0x276   : > { %3419 = vmatmul.mubr.msk.f32.vlgmr.msra.gmra.mrb[2].mxu0 %vm1083_vm4, %v4667_v42 }
 0x277   : > { %3573 = vmatpush3.bf16.xpose.msk.msra.mxu0 %vm4636_vm5, %v3571_v41  ;;  %3432 = vmatprep.mubr.msk.f32.mxu0 %vm4212_vm0, %v4213_v1 }
 0x278   : > { %3583 = vmatprep.subr.bf16.mxu0 %v4211_v0 }
 0x27a   : > { %3426 = vmatmul.mubr.msk.f32.vlgmr.msra.gmra.mrb[6].mxu1 %vm1083_vm4, %v4676_v44 }
 0x27b   : > { %3576 = vmatpush3.bf16.msra.mxu1 %v3575_v43  ;;  %3439 = vmatprep.mubr.msk.f32.mxu1 %vm4212_vm0, %v4213_v1 }
 0x27c   : > { %3577 = vmatprep.subr.bf16.mxu1 %v4211_v0 }
 0x27e   : > { %3433 = vmatmul.mubr.msk.f32.vlgmr.msra.gmra.mrb[4].mxu0 %vm1083_vm4, %v4683_v45 }
 0x27f   : > { %3460 = vmatprep.mubr.msk.f32.mxu0 %vm4212_vm0, %v4213_v1 }
 0x2d3   : > { %v1156_v46 = vpop.f32.mrb[4].mxu1 }
 0x2d4   : > { %v1388_v47 = vmul.f32 0.17677669, %v1156_v46  ;;  %v3413_v48 = vpop.f32.mrb[5].mxu1 }
 0x2d6   : > { %v1393_v49 = vsel %vm1392_vm6, %v1388_v47, -inf }
 0x2d7   : > { %1394 = vmax.xlane.f32.xlu0 %v1393_v49 }
 0x349   : > { %v1232_v50 = vpop.f32.mrb[2].mxu0 }
 0x34a   : > { %v1389_v51 = vmul.f32 0.17677669, %v1232_v50  ;;  %v3420_v52 = vpop.f32.mrb[3].mxu0 }
 0x34b   : > { %v1750_v52 = vld [vmem:[%s4968_s9 + $0x8] sm:$0xff] }
 0x34c   : > { %v1396_v53 = vsel %vm1392_vm6, %v1389_v51, -inf }
 0x34d   : > { %1397 = vmax.xlane.f32.xlu1 %v1396_v53  ;;  %v1308_v54 = vpop.f32.mrb[6].mxu1 }
 0x34e   : > { %v1390_v55 = vmul.f32 0.17677669, %v1308_v54  ;;  %v3427_v56 = vpop.f32.mrb[7].mxu1  ;;  %v1751_v54 = vld [vmem:[%s4968_s9 + $0x10] sm:$0xff] }
 0x350   : > { %v1399_v57 = vsel %vm1392_vm6, %v1390_v55, -inf }
 0x351   : > { %v1384_v58 = vpop.f32.mrb[4].mxu0  ;;  %1400 = vmax.xlane.f32.xlu0 %v1399_v57 }
 0x352   : > { %v1391_v59 = vmul.f32 0.17677669, %v1384_v58  ;;  %v3434_v60 = vpop.f32.mrb[5].mxu0 }
 0x354   : > { %v1402_v61 = vsel %vm1392_vm6, %v1391_v59, -inf }
 0x355   : > { %1403 = vmax.xlane.f32.xlu0 %v1402_v61 }
 0x35e   : > { %3786 = vrot.lane.b32.xlu1 %v3785_v62, %s4215_s3 }
 0x364   : > { %v1395_v63 = vpop.xlane.xlu0 %1394 }
 0x365   : > { %v1405_v2 = vsub.f32 %v1388_v47, %v1395_v63 }
 0x367   : > { %v1409_v3 = vmul.f32 1.442695, %v1405_v2 }
 0x369   : > { %3800 = vpow2.f32 %v1409_v3 }
 0x373   : > { %v3801_v4 = vpop.eup %3800 }
 0x374   : > { %v1417_v5 = vsel %vm1392_vm6, %v3801_v4, 0.0 }
 0x382   : > { %1418 = vadd.xlane.f32.xlu1 %v1417_v5 }
 0x3da   : > { %v1398_v6 = vpop.xlane.xlu1 %1397 }
 0x3db   : > { %v1406_v7 = vsub.f32 %v1389_v51, %v1398_v6  ;;  %v1749_v51 = vld [vmem:[%s4968_s9] sm:$0xff] }
 0x3dc   : > { %v3587_v53 = vpack.c.bf16 %v1750_v52, %v1749_v51 }
 0x3dd   : > { %v1411_v8 = vmul.f32 1.442695, %v1406_v7 }
 0x3de   : > { %v1401_v9 = vpop.xlane.xlu0 %1400  ;;  %v3787_v21 = vpop.permute.xlu1 %3786 }
 0x3df   : > { %3802 = vpow2.f32 %v1411_v8  ;;  %v1407_v10 = vsub.f32 %v1390_v55, %v1401_v9  ;;  %v3789_v24 = vunpack.i.h.bf16 %v3787_v21  ;;  %v3788_v25 = vunpack.i.l.bf16 %v3787_v21  ;;  %v1752_v55 = vld [vmem:[%s4968_s9 + $0x18] sm:$0xff]  ;;  %v1920_v9 = vld [vmem:[%s4974_s15] sm:$0xff] }
 0x3e0   : > { %v3590_v56 = vpack.c.bf16 %v1752_v55, %v1751_v54 }
 0x3e1   : > { %v1413_v11 = vmul.f32 1.442695, %v1407_v10  ;;  %v3578_v28 = vpack.c.bf16 %v3789_v24, %v3788_v25  ;;  %v2002_v25 = vld [vmem:[%s764_s27] sm:$0xff] }
 0x3e2   : > { %v1404_v12 = vpop.xlane.xlu0 %1403 }
 0x3e3   : > { %3804 = vpow2.f32 %v1413_v11  ;;  %v1408_v13 = vsub.f32 %v1391_v59, %v1404_v12  ;;  %v1921_v11 = vld [vmem:[%s4974_s15 + $0x8] sm:$0xff] }
 0x3e4   : > { %v3599_v12 = vpack.c.bf16 %v1921_v11, %v1920_v9 }
 0x3e5   : > { %v1415_v14 = vmul.f32 1.442695, %v1408_v13  ;;  %v1838_v13 = vld [vmem:[%s4972_s13 + $0x18] sm:$0xff] }
 0x3e7   : > { %3806 = vpow2.f32 %v1415_v14  ;;  %v1922_v14 = vld [vmem:[%s4974_s15 + $0x10] sm:$0xff] }
 0x3e9   : > { %v3803_v15 = vpop.eup %3802 }
 0x3ea   : > { %v1420_v16 = vsel %vm1392_vm6, %v3803_v15, 0.0 }
 0x3eb   : > { %1421 = vadd.xlane.f32.xlu0 %v1420_v16  ;;  %v1923_v16 = vld [vmem:[%s4974_s15 + $0x18] sm:$0xff] }
 0x3ed   : > { %v3805_v17 = vpop.eup %3804 }
 0x3ee   : > { %v1423_v18 = vsel %vm1392_vm6, %v3805_v17, 0.0 }
 0x3ef   : > { %1424 = vadd.xlane.f32.xlu1 %v1423_v18  ;;  %v2004_v18 = vld [vmem:[#allocation15] sm:$0xf] }
 0x3f1   : > { %v3807_v19 = vpop.eup %3806 }
 0x3f2   : > { %v1426_v20 = vsel %vm1392_vm6, %v3807_v19, 0.0 }
 0x3f3   : > { %1427 = vadd.xlane.f32.xlu0 %v1426_v20 }
 0x400   : > { %3796 = vrot.lane.b32.xlu1 %v3785_v62, %s4214_s19 }
 0x409   : > { %3791 = vrot.lane.b32.xlu0 %v3785_v62, %s4216_s18 }
 0x40f   : > { %v1419_v22 = vpop.xlane.xlu1 %1418 }
 0x410   : > { %3808 = vrcp.f32 %v1419_v22 }
 0x41a   : > { %v3809_v26 = vpop.eup %3808 }
 0x41b   : > { %v1433_v27 = vmul.f32 %v3809_v26, %v3801_v4  ;;  %v2003_v26 = vld [vmem:[%s764_s27 + $0x8] sm:$0xff] }
 0x41d   : > { %3440 = vmatmul.mubr.msk.f32.vlgmr.msra.gmra.mrb[8].mxu1 %vm1392_vm6, %v1433_v27  ;;  %v3264_v27 = vld [vmem:[%s4973_s14] ss:$0 sm:$0xff] }
 0x41e   : > { %3579 = vmatpush3.bf16.msra.mxu1 %v3578_v28  ;;  %3446 = vmatprep.mubr.msk.f32.mxu1 %vm4212_vm0, %v4213_v1  ;;  %v3266_v28 = vld [vmem:[%s4975_s16] ss:$0 sm:$0xff] }
 0x41f   : > { %3580 = vmatprep.subr.bf16.mxu1 %v4211_v0 }
 0x478   : > { %v1422_v29 = vpop.xlane.xlu0 %1421 }
 0x479   : > { %3810 = vrcp.f32 %v1422_v29 }
 0x47c   : > { %v1425_v30 = vpop.xlane.xlu1 %1424 }
 0x47d   : > { %3812 = vrcp.f32 %v1425_v30 }
 0x480   : > { %v3797_v31 = vpop.permute.xlu1 %3796  ;;  %v1428_v32 = vpop.xlane.xlu0 %1427 }
 0x481   : > { %v3799_v33 = vunpack.i.h.bf16 %v3797_v31  ;;  %v3798_v34 = vunpack.i.l.bf16 %v3797_v31  ;;  %3814 = vrcp.f32 %v1428_v32 }
 0x483   : > { %v3811_v35 = vpop.eup %3810  ;;  %v3584_v36 = vpack.c.bf16 %v3799_v33, %v3798_v34 }
 0x484   : > { %v1434_v37 = vmul.f32 %v3811_v35, %v3803_v15  ;;  %v3792_v38 = vpop.permute.xlu0 %3791  ;;  %v3268_v35 = vld [vmem:[#allocation16] ss:$0 sm:$0xff] }
 0x485   : > { %v3794_v39 = vunpack.i.h.bf16 %v3792_v38  ;;  %v3793_v40 = vunpack.i.l.bf16 %v3792_v38  ;;  %3585 = vmatpush3.bf16.msra.mxu0 %v3584_v36 }
 0x486   : > { %3447 = vmatmul.mubr.msk.f32.vlgmr.msra.gmra.mrb[10].mxu1 %vm1392_vm6, %v1434_v37  ;;  %3592 = vmatprep.subr.bf16.mxu0 %v4211_v0 }
 0x487   : > { %v3813_v41 = vpop.eup %3812  ;;  %v3581_v43 = vpack.c.bf16 %v3794_v39, %v3793_v40  ;;  %3453 = vmatprep.mubr.msk.f32.mxu1 %vm4212_vm0, %v4213_v1 }
 0x488   : > { %v1435_v46 = vmul.f32 %v3813_v41, %v3805_v17  ;;  %v3602_v17 = vpack.c.bf16 %v1923_v16, %v1922_v14 }
 0x489   : > { %3582 = vmatpush3.bf16.msra.mxu1 %v3581_v43 }
 0x48a   : > { %3586 = vmatprep.subr.bf16.mxu1 %v4211_v0 }
 0x48b   : > { %v3815_v47 = vpop.eup %3814 }
 0x48c   : > { %v1436_v48 = vmul.f32 %v3815_v47, %v3807_v19  ;;  %3454 = vmatmul.mubr.msk.f32.vlgmr.msra.gmra.mrb[12].mxu1 %vm1392_vm6, %v1435_v46  ;;  %v3262_v19 = vld [vmem:[#allocation13] ss:$0 sm:$0xff] }
 0x48d   : > { %3471 = vmatprep.mubr.msk.f32.mxu1 %vm4212_vm0, %v4213_v1  ;;  %3588 = vmatpush3.bf16.msra.mxu1 %v3587_v53 }
 0x48e   : > { %3461 = vmatmul.mubr.msk.f32.vlgmr.msra.gmra.mrb[6].mxu0 %vm1392_vm6, %v1436_v48  ;;  %3589 = vmatprep.subr.bf16.mxu1 %v4211_v0 }
 0x48f   : > { %3482 = vmatprep.mubr.msk.f32.mxu0 %vm4212_vm0, %v4213_v1 }
 0x491   : > { %3591 = vmatpush3.bf16.msra.mxu1 %v3590_v56 }
 0x492   : > { %3598 = vmatprep.subr.bf16.mxu1 %v4211_v0 }
 0x4f0   : > { %v1506_v49 = vpop.f32.mrb[8].mxu1 }
 0x4f1   : > { %v3441_v50 = vpop.f32.mrb[9].mxu1 }
 0x559   : > { %v1579_v57 = vpop.f32.mrb[10].mxu1 }
 0x55a   : > { %v1730_v58 = vadd.f32 %v1579_v57, %v4667_v42  ;;  %v3448_v59 = vpop.f32.mrb[11].mxu1  ;;  %v1729_v42 = vadd.f32 %v1506_v49, %v4648_v23  ;;  %v1836_v23 = vld [vmem:[%s4972_s13 + $0x8] sm:$0xff] }
 0x55c   : > { %1734 = vrot.lane.b32.xlu1 %v1730_v58, %s4217_s28 }
 0x55f   : > { %v1652_v60 = vpop.f32.mrb[12].mxu1 }
 0x560   : > { %v1731_v61 = vadd.f32 %v1652_v60, %v4676_v44  ;;  %v3455_v62 = vpop.f32.mrb[13].mxu1 }
 0x561   : > { %v1725_v63 = vpop.f32.mrb[6].mxu0 }
 0x562   : > { %v1732_v2 = vadd.f32 %v1725_v63, %v4683_v45  ;;  %v3462_v3 = vpop.f32.mrb[7].mxu0  ;;  %1738 = vrot.lane.b32.xlu0 %v1731_v61, %s4218_s5  ;;  %v1835_v45 = vld [vmem:[%s4972_s13] sm:$0xff] }
 0x563   : > { %v3593_v10 = vpack.c.bf16 %v1836_v23, %v1835_v45 }
 0x564   : > { %1742 = vrot.lane.b32.xlu1 %v1732_v2, %s4219_s0 }
 0x565   : > { %3594 = vmatpush3.bf16.msra.mxu0 %v3593_v10 }
 0x566   : > { %3595 = vmatprep.subr.bf16.mxu0 %v4211_v0 }
 0x5ce   : > { %v1735_v4 = vpop.permute.xlu1 %1734 }
 0x5cf   : > { %v1745_v5 = vsel %vm1083_vm4, %v1729_v42, %v1735_v4 }
 0x5d4   : > { %v1739_v6 = vpop.permute.xlu0 %1738 }
 0x5d5   : > { %v1746_v44 = vsel %vm1392_vm6, %v1745_v5, %v1739_v6 }
 0x5d6   : > { %v1743_v7 = vpop.permute.xlu1 %1742 }
 0x5d7   : > { %v1748_v8 = vsel %vm1747_vm7, %v1746_v44, %v1743_v7 }
 0x5d8   : > { %3472 = vmatmul.mubr.msk.f32.vlgmr.msra.gmra.mrb[14].mxu1 %vm785_vm3, %v1748_v8 }
 0x5d9   : > { %3493 = vmatprep.mubr.msk.f32.mxu1 %vm4212_vm0, %v4213_v1  ;;  %3600 = vmatpush3.bf16.msra.mxu1 %v3599_v12  ;;  %v1837_v1 = vld [vmem:[%s4972_s13 + $0x10] sm:$0xff] }
 0x5da   : > { %3601 = vmatprep.subr.bf16.mxu1 %v4211_v0  ;;  %v3596_v15 = vpack.c.bf16 %v1838_v13, %v1837_v1 }
 0x5dc   : > { %3597 = vmatpush3.bf16.msra.mxu0 %v3596_v15 }
 0x5dd   : > { %3603 = vmatpush3.bf16.msra.mxu1 %v3602_v17  ;;  %3496 = vmatprep.subr.msk.mxu0 %vm874_vm1, %v2004_v18 }
 0x6ab   : > { %v1829_v20 = vpop.f32.mrb[14].mxu1 }
 0x6ac   : > { %v1830_v21 = vadd.f32 %v3262_v19, %v1829_v20  ;;  %v3473_v22 = vpop.f32.mrb[15].mxu1 }
 0x6ae   : > { %v1833_v0 = vmax.f32 %v1830_v21, 0.0 }
 0x6b0   : > { %v1834_v24 = vadd.f32 %v1833_v0, %v1748_v8 }
 0x6b2   : > { %3483 = vmatmul.mubr.msk.f32.vlgmr.msra.gmra.mrb[8].mxu0 %vm785_vm3, %v1834_v24  ;;  %3494 = vmatmul.mubr.msk.f32.vlgmr.msra.gmra.mrb[16].mxu1 %vm785_vm3, %v1834_v24 }
 0x6b3   : > { %3497 = vmatpush3.msk.msra.mxu0 %vm874_vm1, %v2004_v18  ;;  %3498 = vmatprep.mubr.msk.f32.mxu0 %vm867_vm2, %v2002_v25 }
 0x6b6   : > { %3499 = vmatmul.mubr.msk.f32.vlgmr.msra.gmra.mrb[10].mxu0 %vm867_vm2, %v2003_v26 }
 0x785   : > { %v1915_v29 = vpop.f32.mrb[8].mxu0  ;;  %v1997_v30 = vpop.f32.mrb[16].mxu1 }
 0x786   : > { %v1916_v31 = vadd.f32 %v3264_v27, %v1915_v29  ;;  %v1998_v32 = vadd.f32 %v3266_v28, %v1997_v30  ;;  %v3484_v33 = vpop.f32.mrb[9].mxu0  ;;  %v3495_v34 = vpop.f32.mrb[17].mxu1 }
 0x788   : > { %1919 = vst.msk [vmem:[#allocation2] sm:$0xff] %vm785_vm3, %v1916_v31  ;;  %2001 = vst.msk [vmem:[#allocation3] sm:$0xff] %vm785_vm3, %v1998_v32 }
 0x789   : > { %v3500_v36 = vpop.f32.mrb[10].mxu0 }
 0x78a   : > { %v4787_v37 = vadd.f32 %v3500_v36, %v3268_v35  ;;  %v2089_v38 = vpop.f32.mrb[11].mxu0 }
 0x78b   : > { %v4789_v39 = vadd.f32 %v3268_v35, %v2089_v38 }
 0x78c   : > { %2108 = vrot.lane.b32.xlu0 %v4787_v37, %s4216_s18  ;;  %2102 = vrot.lane.b32.xlu1 %v4787_v37, %s4215_s3 }
 0x78d   : > { %3503 = vmatprep.mubr.msk.f32.mxu0 %vm1083_vm4, %v4789_v39 }
 0x78f   : > { %v2118_v40 = vld [vmem:[#allocation2] sm:$0xff]  ;;  %v4830_v50 = vld [vmem:[#allocation3] sm:$0xff] }
 0x790   : > { %3501 = vmatprep.subr.msk.mxu0 %vm1083_vm4, %v2118_v40  ;;  %2120 = vrot.lane.b32.xlu0 %v2118_v40, %s4215_s3 }
 0x791   : > { %2100 = vrot.lane.b32.xlu1 %v4789_v39, %s4215_s3  ;;  %3502 = vmatpush3.xpose.msk.msra.mxu0 %vm1083_vm4, %v2118_v40 }
 0x794   : > { %2122 = vrot.lane.b32.xlu0 %v2118_v40, %s4216_s18  ;;  %3504 = vmatmul.mubr.msk.f32.vlgmr.msra.gmra.mrb[12].mxu0 %vm1083_vm4, %v4787_v37 }
 0x795   : > { %2106 = vrot.lane.b32.xlu1 %v4789_v39, %s4216_s18 }
 0x798   : > { %2124 = vrot.lane.b32.xlu0 %v2118_v40, %s4214_s19 }
 0x799   : > { %2112 = vrot.lane.b32.xlu1 %v4789_v39, %s4214_s19 }
 0x79c   : > { %2114 = vrot.lane.b32.xlu0 %v4787_v37, %s4214_s19 }
 0x7fe   : > { %v4812_v41 = vpop.permute.xlu0 %2108  ;;  %v4814_v43 = vpop.permute.xlu1 %2102 }
 0x802   : > { %v2121_v46 = vpop.permute.xlu0 %2120 }
 0x803   : > { %v4816_v47 = vpop.permute.xlu1 %2100  ;;  %3506 = vmatprep.subr.msk.mxu1 %vm1083_vm4, %v2121_v46 }
 0x804   : > { %3508 = vmatprep.mubr.msk.f32.mxu1 %vm1083_vm4, %v4816_v47  ;;  %3507 = vmatpush3.xpose.msk.msra.mxu1 %vm1083_vm4, %v2121_v46 }
 0x806   : > { %v2123_v48 = vpop.permute.xlu0 %2122 }
 0x807   : > { %v4822_v49 = vpop.permute.xlu1 %2106  ;;  %3509 = vmatmul.mubr.msk.f32.vlgmr.msra.gmra.mrb[18].mxu1 %vm1083_vm4, %v4814_v43  ;;  %3511 = vmatprep.subr.msk.mxu0 %vm1083_vm4, %v2123_v48 }
 0x808   : > { %3513 = vmatprep.mubr.msk.f32.mxu0 %vm1083_vm4, %v4822_v49  ;;  %3512 = vmatpush3.xpose.msk.msra.mxu0 %vm1083_vm4, %v2123_v48 }
 0x809   : > { %3521 = vmatprep.subr.mxu0 %v4830_v50 }
 0x80a   : > { %v2125_v51 = vpop.permute.xlu0 %2124 }
 0x80b   : > { %v4833_v52 = vpop.permute.xlu1 %2112  ;;  %3514 = vmatmul.mubr.msk.f32.vlgmr.msra.gmra.mrb[14].mxu0 %vm1083_vm4, %v4812_v41  ;;  %3516 = vmatprep.subr.msk.mxu1 %vm1083_vm4, %v2125_v51 }
 0x80c   : > { %3518 = vmatprep.mubr.msk.f32.mxu1 %vm1083_vm4, %v4833_v52  ;;  %3517 = vmatpush3.xpose.msk.msra.mxu1 %vm1083_vm4, %v2125_v51 }
 0x80d   : > { %3522 = vmatpush3.msra.mxu0 %v4830_v50 }
 0x80e   : > { %v4842_v53 = vpop.permute.xlu0 %2114 }
 0x80f   : > { %3519 = vmatmul.mubr.msk.f32.vlgmr.msra.gmra.mrb[20].mxu1 %vm1083_vm4, %v4842_v53 }
 0x867   : > { %v3505_v54 = vpop.f32.mrb[12].mxu0 }
 0x868   : > { %v2463_v55 = vmul.f32 0.17677669, %v3505_v54  ;;  %v2210_v56 = vpop.f32.mrb[13].mxu0 }
 0x869   : > { %v2462_v57 = vmul.f32 0.17677669, %v2210_v56 }
 0x86a   : > { %v2473_v58 = vsel %vm1083_vm4, %v2463_v55, -inf }
 0x86b   : > { %2474 = vmax.xlane.f32.xlu0 %v2473_v58  ;;  %v2470_v59 = vsel %vm1083_vm4, %v2462_v57, -inf }
 0x86c   : > { %2471 = vmax.xlane.f32.xlu1 %v2470_v59 }
 0x8da   : > { %v3510_v60 = vpop.f32.mrb[18].mxu1 }
 0x8db   : > { %v2465_v61 = vmul.f32 0.17677669, %v3510_v60  ;;  %v2291_v62 = vpop.f32.mrb[19].mxu1 }
 0x8dc   : > { %v2464_v63 = vmul.f32 0.17677669, %v2291_v62 }
 0x8dd   : > { %v2479_v2 = vsel %vm1083_vm4, %v2465_v61, -inf }
 0x8de   : > { %v3515_v3 = vpop.f32.mrb[14].mxu0  ;;  %2480 = vmax.xlane.f32.xlu1 %v2479_v2  ;;  %v2476_v4 = vsel %vm1083_vm4, %v2464_v63, -inf }
 0x8df   : > { %v2467_v42 = vmul.f32 0.17677669, %v3515_v3  ;;  %v2372_v5 = vpop.f32.mrb[15].mxu0  ;;  %2477 = vmax.xlane.f32.xlu0 %v2476_v4 }
 0x8e0   : > { %v2466_v6 = vmul.f32 0.17677669, %v2372_v5 }
 0x8e1   : > { %v2485_v44 = vsel %vm1083_vm4, %v2467_v42, -inf }
 0x8e2   : > { %2486 = vmax.xlane.f32.xlu1 %v2485_v44  ;;  %v3520_v7 = vpop.f32.mrb[20].mxu1  ;;  %v2482_v8 = vsel %vm1083_vm4, %v2466_v6, -inf }
 0x8e3   : > { %v2469_v45 = vmul.f32 0.17677669, %v3520_v7  ;;  %2483 = vmax.xlane.f32.xlu0 %v2482_v8  ;;  %v2453_v23 = vpop.f32.mrb[21].mxu1 }
 0x8e4   : > { %v2468_v9 = vmul.f32 0.17677669, %v2453_v23 }
 0x8e5   : > { %v2491_v10 = vsel %vm1083_vm4, %v2469_v45, -inf }
 0x8e6   : > { %2492 = vmax.xlane.f32.xlu1 %v2491_v10  ;;  %v2488_v11 = vsel %vm1083_vm4, %v2468_v9, -inf }
 0x8e7   : > { %2489 = vmax.xlane.f32.xlu0 %v2488_v11 }
 0x8f8   : > { %v2475_v12 = vpop.xlane.xlu0 %2474 }
 0x8f9   : > { %v2495_v1 = vsub.f32 %v2463_v55, %v2475_v12  ;;  %v2472_v13 = vpop.xlane.xlu1 %2471 }
 0x8fa   : > { %v2494_v14 = vsub.f32 %v2462_v57, %v2472_v13 }
 0x8fb   : > { %v2504_v15 = vmul.f32 1.442695, %v2495_v1 }
 0x8fc   : > { %v2502_v16 = vmul.f32 1.442695, %v2494_v14 }
 0x8fd   : > { %3816 = vpow2.f32 %v2504_v15 }
 0x8fe   : > { %3818 = vpow2.f32 %v2502_v16 }
 0x907   : > { %v3817_v17 = vpop.eup %3816 }
 0x908   : > { %v3819_v18 = vpop.eup %3818  ;;  %v2521_v19 = vsel %vm1083_vm4, %v3817_v17, 0.0 }
 0x909   : > { %2522 = vadd.xlane.f32.xlu1 %v2521_v19  ;;  %v2518_v20 = vsel %vm1083_vm4, %v3819_v18, 0.0 }
 0x90a   : > { %2519 = vadd.xlane.f32.xlu0 %v2518_v20 }
 0x96b   : > { %v2481_v21 = vpop.xlane.xlu1 %2480 }
 0x96c   : > { %v2497_v22 = vsub.f32 %v2465_v61, %v2481_v21  ;;  %v2478_v0 = vpop.xlane.xlu0 %2477 }
 0x96d   : > { %v2496_v24 = vsub.f32 %v2464_v63, %v2478_v0 }
 0x96e   : > { %v2508_v25 = vmul.f32 1.442695, %v2497_v22 }
 0x96f   : > { %v2506_v26 = vmul.f32 1.442695, %v2496_v24  ;;  %v2487_v27 = vpop.xlane.xlu1 %2486  ;;  %v2914_v24 = vld [vmem:[#allocation18] sm:$0xff] }
 0x970   : > { %3820 = vpow2.f32 %v2508_v25  ;;  %v2499_v28 = vsub.f32 %v2467_v42, %v2487_v27  ;;  %v2484_v29 = vpop.xlane.xlu0 %2483  ;;  %v2915_v25 = vld [vmem:[#allocation18 + $0x8] sm:$0xff]  ;;  %v2916_v27 = vld [vmem:[#allocation18 + $0x10] sm:$0xff] }
 0x971   : > { %3822 = vpow2.f32 %v2506_v26  ;;  %v2498_v30 = vsub.f32 %v2466_v6, %v2484_v29  ;;  %v3604_v26 = vpack.c.bf16 %v2915_v25, %v2914_v24 }
 0x972   : > { %v2512_v31 = vmul.f32 1.442695, %v2499_v28  ;;  %v2917_v28 = vld [vmem:[#allocation18 + $0x18] sm:$0xff] }
 0x973   : > { %v2510_v32 = vmul.f32 1.442695, %v2498_v30  ;;  %v2493_v33 = vpop.xlane.xlu1 %2492  ;;  %v3608_v29 = vpack.c.bf16 %v2917_v28, %v2916_v27 }
 0x974   : > { %3824 = vpow2.f32 %v2512_v31  ;;  %v2501_v34 = vsub.f32 %v2469_v45, %v2493_v33  ;;  %v2490_v35 = vpop.xlane.xlu0 %2489 }
 0x975   : > { %3826 = vpow2.f32 %v2510_v32  ;;  %v2500_v36 = vsub.f32 %v2468_v9, %v2490_v35 }
 0x976   : > { %v2516_v38 = vmul.f32 1.442695, %v2501_v34 }
 0x977   : > { %v2514_v40 = vmul.f32 1.442695, %v2500_v36 }
 0x978   : > { %3828 = vpow2.f32 %v2516_v38 }
 0x979   : > { %3830 = vpow2.f32 %v2514_v40 }
 0x97a   : > { %v3821_v46 = vpop.eup %3820 }
 0x97b   : > { %v3823_v48 = vpop.eup %3822  ;;  %v2527_v51 = vsel %vm1083_vm4, %v3821_v46, 0.0 }
 0x97c   : > { %2528 = vadd.xlane.f32.xlu1 %v2527_v51  ;;  %v2524_v54 = vsel %vm1083_vm4, %v3823_v48, 0.0 }
 0x97d   : > { %2525 = vadd.xlane.f32.xlu0 %v2524_v54 }
 0x97e   : > { %v3825_v55 = vpop.eup %3824 }
 0x97f   : > { %v3827_v56 = vpop.eup %3826  ;;  %v2533_v57 = vsel %vm1083_vm4, %v3825_v55, 0.0 }
 0x980   : > { %2534 = vadd.xlane.f32.xlu1 %v2533_v57  ;;  %v2530_v58 = vsel %vm1083_vm4, %v3827_v56, 0.0 }
 0x981   : > { %2531 = vadd.xlane.f32.xlu0 %v2530_v58 }
 0x982   : > { %v3829_v59 = vpop.eup %3828 }
 0x983   : > { %v3831_v60 = vpop.eup %3830  ;;  %v2539_v61 = vsel %vm1083_vm4, %v3829_v59, 0.0 }
 0x984   : > { %2540 = vadd.xlane.f32.xlu1 %v2539_v61  ;;  %v2536_v62 = vsel %vm1083_vm4, %v3831_v60, 0.0 }
 0x985   : > { %2537 = vadd.xlane.f32.xlu0 %v2536_v62 }
 0x995   : > { %2131 = vrot.lane.b32.xlu1 %v4830_v50, %s4216_s18 }
 0x996   : > { %v2523_v63 = vpop.xlane.xlu1 %2522 }
 0x997   : > { %3832 = vrcp.f32 %v2523_v63  ;;  %v2520_v2 = vpop.xlane.xlu0 %2519 }
 0x998   : > { %3834 = vrcp.f32 %v2520_v2 }
 0x999   : > { %2134 = vrot.lane.b32.xlu1 %v4830_v50, %s4214_s19  ;;  %s5033_s19 = sld [smem:[#allocation27_spill]] }
 0x99b   : > { %2128 = vrot.lane.b32.xlu0 %v4830_v50, %s4215_s3 }
 0x99f   : > { %s748_s3 = sand.u32 1, %s5033_s19   ;;  %s4220_s19 = smov [#allocation19]  }
 0x9a0   : > { %s3231_s18 = sshll.u32 %s748_s3, 4  ;;  %s4912_s21 = scalar_lea.sflag [#allocation6], %s748_s3 }
 0x9a1   : > { %v3833_v3 = vpop.eup %3832  ;;  %s750_s1 = scalar_lea.vmem [#allocation19], %s3231_s18  ;;  %s4104_s18 = sshll.u32 %s4220_s19, 4  ;;  %s4105_s18 = int_to_ptr.vmem [resolvable:$false] %s4104_s18 }
 0x9a2   : > { %v3835_v4 = vpop.eup %3834  ;;  %v2551_v5 = vmul.f32 %v3833_v3, %v3817_v17  ;;  %s3029_s10 = sshll.u32 %s750_s1, 4  ;;  %s4908_s10 = int_to_ptr.vmem [resolvable:$true] %s3029_s10 }
 0x9a3   : > { %v2550_v42 = vmul.f32 %v3835_v4, %v3819_v18  ;;  %s4100_s25 = scalar_lea.vmem %s4908_s10, 256  ;;  %p4107_p11 = scmp.lt.s32.totalorder %s4908_s10, %s4105_s18 }
 0x9a4   : > { %p4101_p1 = scmp.ne.s32.totalorder %s4908_s10, %s4100_s25 }
 0x9a5   : > { %3523 = vmatprep.mubr.msk.f32.mxu0 %vm1083_vm4, %v2550_v42 }
 0x9a6   : > { %3524 = vmatmul.mubr.msk.f32.vlgmr.msra.gmra.mrb[16].mxu0 %vm1083_vm4, %v2551_v5  ;;  %p4102_p8 = pnand %p4101_p1, %p5038_p4 }
 0x9a8   : > { %p4103_p10 = pneg %p4102_p8 }
 0xa09   : > { %v2529_v6 = vpop.xlane.xlu1 %2528 }
 0xa0a   : > { %3836 = vrcp.f32 %v2529_v6  ;;  %v2526_v44 = vpop.xlane.xlu0 %2525 }
 0xa0b   : > { %3838 = vrcp.f32 %v2526_v44 }
 0xa0d   : > { %v2535_v7 = vpop.xlane.xlu1 %2534 }
 0xa0e   : > { %3840 = vrcp.f32 %v2535_v7  ;;  %v2532_v8 = vpop.xlane.xlu0 %2531 }
 0xa0f   : > { %3842 = vrcp.f32 %v2532_v8 }
 0xa11   : > { %v2541_v45 = vpop.xlane.xlu1 %2540 }
 0xa12   : > { %3844 = vrcp.f32 %v2541_v45  ;;  %v2538_v23 = vpop.xlane.xlu0 %2537 }
 0xa13   : > { %3846 = vrcp.f32 %v2538_v23 }
 0xa14   : > { %v3837_v50 = vpop.eup %3836 }
 0xa15   : > { %v3839_v9 = vpop.eup %3838  ;;  %v2132_v10 = vpop.permute.xlu1 %2131  ;;  %v2553_v1 = vmul.f32 %v3837_v50, %v3821_v46 }
 0xa16   : > { %3531 = vmatprep.subr.mxu0 %v2132_v10  ;;  %v2129_v11 = vpop.permute.xlu0 %2128  ;;  %v2552_v12 = vmul.f32 %v3839_v9, %v3823_v48 }
 0xa17   : > { %3526 = vmatprep.subr.mxu1 %v2129_v11  ;;  %3532 = vmatpush3.msra.mxu0 %v2132_v10 }
 0xa18   : > { %v3841_v13 = vpop.eup %3840  ;;  %3527 = vmatpush3.msra.mxu1 %v2129_v11  ;;  %3528 = vmatprep.mubr.msk.f32.mxu1 %vm1083_vm4, %v2552_v12 }
 0xa19   : > { %v3843_v14 = vpop.eup %3842  ;;  %v2135_v15 = vpop.permute.xlu1 %2134  ;;  %3529 = vmatmul.mubr.msk.f32.vlgmr.msra.gmra.mrb[22].mxu1 %vm1083_vm4, %v2553_v1  ;;  %v2555_v17 = vmul.f32 %v3841_v13, %v3825_v55  ;;  %3605 = vmatprep.subr.bf16.mxu0 %v3604_v26 }
 0xa1a   : > { %3536 = vmatprep.subr.mxu1 %v2135_v15  ;;  %v2554_v16 = vmul.f32 %v3843_v14, %v3827_v56 }
 0xa1b   : > { %3537 = vmatpush3.msra.mxu1 %v2135_v15 }
 0xa1c   : > { %v3845_v18 = vpop.eup %3844  ;;  %3533 = vmatprep.mubr.msk.f32.mxu0 %vm1083_vm4, %v2554_v16 }
 0xa1d   : > { %v3847_v19 = vpop.eup %3846  ;;  %3534 = vmatmul.mubr.msk.f32.vlgmr.msra.gmra.mrb[18].mxu0 %vm1083_vm4, %v2555_v17  ;;  %v2557_v21 = vmul.f32 %v3845_v18, %v3829_v59 }
 0xa1e   : > { %v2556_v20 = vmul.f32 %v3847_v19, %v3831_v60  ;;  %3607 = vmatpush3.bf16.msra.mxu0 %v3604_v26 }
 0xa1f   : > { %3609 = vmatprep.subr.bf16.mxu0 %v3608_v29 }
 0xa20   : > { %3538 = vmatprep.mubr.msk.f32.mxu1 %vm1083_vm4, %v2556_v20 }
 0xa21   : > { %3539 = vmatmul.mubr.msk.f32.vlgmr.msra.gmra.mrb[24].mxu1 %vm1083_vm4, %v2557_v21 }
 0xa22   : > { %3611 = vmatpush3.bf16.msra.mxu0 %v3608_v29 }
 0xa79   : > { %v3525_v22 = vpop.f32.mrb[16].mxu0 }
 0xa7a   : > { %v2630_v0 = vpop.f32.mrb[17].mxu0  ;;  %v2636_v55 = vadd.f32 %v3525_v22, %v4787_v37  ;;  %v3292_v37 = vld [vmem:[%s5034_s22] ss:$0 sm:$0xff] }
 0xaec   : > { %v3530_v30 = vpop.f32.mrb[22].mxu1 }
 0xaed   : > { %v2717_v31 = vadd.f32 %v3530_v30, %v4814_v43  ;;  %v2711_v32 = vpop.f32.mrb[23].mxu1 }
 0xaee   : > { %v2712_v33 = vadd.f32 %v2711_v32, %v4816_v47 }
 0xaef   : > { %2886 = vrot.lane.b32.xlu1 %v2717_v31, %s4217_s28 }
 0xaf0   : > { %v3535_v34 = vpop.f32.mrb[18].mxu0  ;;  %2884 = vrot.lane.b32.xlu0 %v2712_v33, %s4217_s28 }
 0xaf1   : > { %v2798_v35 = vadd.f32 %v3535_v34, %v4812_v41  ;;  %v2792_v36 = vpop.f32.mrb[19].mxu0 }
 0xaf2   : > { %v2793_v38 = vadd.f32 %v2792_v36, %v4822_v49  ;;  %v2631_v49 = vadd.f32 %v2630_v0, %v4789_v39 }
 0xaf3   : > { %2894 = vrot.lane.b32.xlu1 %v2798_v35, %s4218_s5 }
 0xaf4   : > { %v3540_v40 = vpop.f32.mrb[24].mxu1  ;;  %2892 = vrot.lane.b32.xlu0 %v2793_v38, %s4218_s5  ;;  %s4106_s5 = scalar_lea.vmem %s4105_s18, 512 }
 0xaf5   : > { %v2879_v43 = vadd.f32 %v3540_v40, %v4842_v53  ;;  %v2873_v46 = vpop.f32.mrb[25].mxu1  ;;  %p4108_p3 = scmp.lt.s32.totalorder %s4106_s5, %s4100_s25 }
 0xaf6   : > { %v2874_v47 = vadd.f32 %v2873_v46, %v4833_v52 }
 0xaf7   : > { %2902 = vrot.lane.b32.xlu1 %v2879_v43, %s4219_s0  ;;  %p4109_p5 = por %p4108_p3, %p4107_p11 }
 0xaf8   : > { %2900 = vrot.lane.b32.xlu0 %v2874_v47, %s4219_s0 }
 0xaf9   : > { %p4110_p6 = pnand %p4109_p5, %p4103_p10 }
 0xb61   : > { %v2887_v48 = vpop.permute.xlu1 %2886 }
 0xb62   : > { %v2885_v41 = vpop.permute.xlu0 %2884  ;;  %v2907_v53 = vsel %vm1083_vm4, %v2636_v55, %v2887_v48 }
 0xb63   : > { %v2906_v56 = vsel %vm1083_vm4, %v2631_v49, %v2885_v41 }
 0xb65   : > { %v2895_v51 = vpop.permute.xlu1 %2894 }
 0xb66   : > { %v2893_v54 = vpop.permute.xlu0 %2892  ;;  %v2910_v59 = vsel %vm1392_vm6, %v2907_v53, %v2895_v51 }
 0xb67   : > { %v2909_v52 = vsel %vm1392_vm6, %v2906_v56, %v2893_v54 }
 0xb69   : > { %v2903_v57 = vpop.permute.xlu1 %2902 }
 0xb6a   : > { %v2901_v58 = vpop.permute.xlu0 %2900  ;;  %v2913_v61 = vsel %vm1747_vm7, %v2910_v59, %v2903_v57 }
 0xb6b   : > { %v2912_v60 = vsel %vm1747_vm7, %v2909_v52, %v2901_v58 }
 0xb6c   : > { %3549 = vmatprep.mubr.msk.f32.mxu0 %vm785_vm3, %v2912_v60 }
 0xb6d   : > { %3550 = vmatmul.mubr.msk.f32.vlgmr.msra.gmra.mrb[20].mxu0 %vm785_vm3, %v2913_v61 }
 0xc40   : > { %v3551_v39 = vpop.f32.mrb[20].mxu0 }
 0xc41   : > { %v3004_v62 = vadd.f32 %v3551_v39, %v3292_v37  ;;  %v2998_v63 = vpop.f32.mrb[21].mxu0 }
 0xc42   : > { %v2999_v2 = vadd.f32 %v3292_v37, %v2998_v63 }
 0xc43   : > { %v3008_v3 = vmax.f32 %v3004_v62, 0.0 }
 0xc44   : > { %v3007_v4 = vmax.f32 %v2999_v2, 0.0 }
 0xc45   : > { %v3010_v42 = vadd.f32 %v3008_v3, %v2913_v61 }
 0xc46   : > { %v3009_v5 = vadd.f32 %v3007_v4, %v2912_v60 }
 0xc47   : > { %3012 = vst.msk [vmem:[%s750_s1 + $0x8] sm:$0xff] %vm785_vm3, %v3010_v42 }
 0xc48   : > { %3011 = vst.msk [vmem:[%s750_s1] sm:$0xff] %vm785_vm3, %v3009_v5 }
 0xc49   : > { %4113 = shalt.err (!%p4110_p6)
}
 0xc4a   : > { %s4114_s3 = scalar_lea.hbm %s4906_s7, 256  ;;  %s4118_s20 = scalar_lea.hbm %s5037_s29, 512 }
 0xc4b   : > { %p4115_p7 = scmp.ne.s32.totalorder %s4906_s7, %s4114_s3  ;;  %p4119_p0 = scmp.lt.u32.totalorder %s4906_s7, %s5037_s29 }
 0xc4c   : > { %p4120_p2 = scmp.lt.u32.totalorder %s4118_s20, %s4114_s3  ;;  %p4122_p1 = scmp.lt.u32.totalorder %s4114_s3, %s4906_s7 }
 0xc4d   : > { %p4116_p9 = pnand %p4115_p7, %p5038_p4 }
 0xc4e   : > { %p4121_p13 = por %p4120_p2, %p4119_p0 }
 0xc4f   : > { %p4117_p12 = pneg %p4116_p9 }
 0xc50   : > { %p4123_p8 = por %p4122_p1, %p4121_p13 }
 0xc52   : > { %p4124_p10 = pnand %p4123_p8, %p4117_p12 }
 0xc54   : > { %4127 = shalt.err (!%p4124_p10)
}
 0xc55   : > { %s4221_s27 = smov 128  }
 0xc56   : > { %3648 = dma.vmem_to_hbm [thread:$0]  (%p5038_p4), %s4908_s10, 256, %s4906_s7, %s4912_s21, %s4221_s27, %s4221_s27, %s4217_s28  }
 0xc57 PF: > { %s5039_s30 = sld [smem:[#allocation30_spill]]  ;;  %s5040_s25 = sld [smem:[#allocation26_spill]] }
 0xc58   : > { %s5041_s19 = sld [smem:[#allocation33_spill]] }
 0xc5d   : > { %p3700_p11 = scmp.ge.s32.totalorder %s5039_s30, 2  ;;  %s3044_s18 = sand.u32 1, %s5040_s25  }
 0xc5e   : > { %p5042_p3 = scmp.ne.s32.totalorder %s5041_s19, 0  ;;  %s3045_s5 = scalar_lea.sflag [#allocation6], %s3044_s18 }
 0xc60   : > { %p3679_p5 = pnand %p3700_p11, %p5042_p3 }
 0xc62   : > { %4173 = dma.done.wait (!%p3679_p5), %s3045_s5, 256  }
 0xc63   : > { %4175 = vsyncadd (!%p3679_p5), %s3045_s5, 4294967040  ;;  %s37_s22 = sadd.s32 1, %s5039_s30   ;;  %s5043_s0 = sld [smem:[#allocation27_spill]] }
 0xc64   : > { %p34_p6 = scmp.ge.s32.totalorder %s37_s22, 4   ;;  %s5044_s30 = sld [smem:[#allocation28_spill]] }
 0xc65   : > { %s5045_s20 = sld [smem:[#allocation34_spill]]  ;;  %s5046_s21 = sld [smem:[#allocation29_spill]] }
 0xc66   : > { %s5047_s1 = sld [smem:[#allocation31_spill]]  ;;  %36 = sbr.rel (!%p34_p6) target bundleno = 19 (0x13), region = 175 }
 0xc6d   :  { %3050 = vsyncpa [#allocation5], 1 }
 0xc6e   :  { %3052 = vsyncpa [#allocation5 + $0x1], 1 }
 0xc6f   :  { %3053 = vsyncpa [#allocation8], 1 }
 0xc70   :  { %3054 = vsyncpa [#allocation11], 1 }
 0xc71   :  { %3055 = vsyncpa [#allocation14], 1 }
 0xc72   :  { %3056 = vsyncpa [#allocation17], 1 }
 0xc73   :  { %3057 = vsyncpa [#allocation6], 1 }
 0xc74   :  { %3059 = vsyncpa [#allocation6 + $0x1], 1 }

</bundles_post_ra>
